<compile_context>
chip_gen: v5e
topology: v5e:2x2
jax: 0.10.0
libtpu: 0.0.40
codegen_flags: <defaults>
</compile_context>

<pallas_src>
import jax
import jax.numpy as jnp
from jax.experimental import pallas as pl
from jax.experimental.pallas import tpu as pltpu

FIRST_BLOCK_CHANNELS = 1024   # as in the PyTorch Generator
BN_EPS = 1e-5

# (kh, start-offset-into-1-padded-input) per tap, for each output phase of a
# 1-D ConvTranspose(kernel=4, stride=2, pad=1):
#   even outputs:  y[2t]   = x[t]  *w[1] + x[t-1]*w[3]
#   odd  outputs:  y[2t+1] = x[t+1]*w[0] + x[t]  *w[2]
_PHASE_TAPS = (((1, 1), (3, 0)),   # phase 0 (even)
               ((0, 2), (2, 1)))   # phase 1 (odd)


def _ceil_to(x, m):
    return ((x + m - 1) // m) * m


# ---------------------------------------------------------------------------
# Pallas kernel 1: M/N/K-tiled matmul (bf16 operands, f32 acc) with fused
# Tanh and optional streamed per-channel statistics for BatchNorm.
# ---------------------------------------------------------------------------
def _make_matmul_kernel(activation, with_stats):
    def kernel(a_ref, b_ref, *refs):
        if with_stats:
            o_ref, ssum_ref, ssq_ref, acc_ref = refs
        else:
            o_ref, acc_ref = refs
        k = pl.program_id(2)

        @pl.when(k == 0)
        def _():
            acc_ref[...] = jnp.zeros_like(acc_ref)

        acc_ref[...] += jnp.dot(a_ref[...], b_ref[...],
                                preferred_element_type=jnp.float32)

        @pl.when(k == pl.num_programs(2) - 1)
        def _():
            acc = acc_ref[...]
            out = jnp.tanh(acc) if activation == "tanh" else acc
            o_ref[...] = out.astype(o_ref.dtype)
            if with_stats:
                tn = acc.shape[1]
                psum = jnp.sum(acc, axis=0, keepdims=True)        # (1, tn)
                psq = jnp.sum(acc * acc, axis=0, keepdims=True)   # (1, tn)
                ssum_ref[...] = jnp.broadcast_to(psum, (8, tn))
                ssq_ref[...] = jnp.broadcast_to(psq, (8, tn))

    return kernel


def fused_matmul(a, b, *, activation="none", with_stats=False,
                 out_dtype=jnp.bfloat16):
    """(M, K) @ (K, N) on the MXU.  Returns the padded (Mp, Ncp) product and,
    when with_stats, per-column (sum, sum-of-squares) f32 vectors over all
    rows (padded rows are zero so they do not perturb the statistics)."""
    M, K = a.shape
    K2, Nc = b.shape
    assert K == K2
    Kp = _ceil_to(K, 128)
    Ncp = _ceil_to(Nc, 128)
    Mp8 = _ceil_to(max(M, 8), 8)
    tm = min(512, Mp8)
    Mp = _ceil_to(Mp8, tm)
    tk = 512 if Kp % 512 == 0 else (256 if Kp % 256 == 0 else 128)
    tn = 256 if Ncp % 256 == 0 else 128
    nm, nn, nk = Mp // tm, Ncp // tn, Kp // tk

    a = jnp.pad(a, ((0, Mp - M), (0, Kp - K))).astype(jnp.bfloat16)
    b = jnp.pad(b, ((0, Kp - K), (0, Ncp - Nc))).astype(jnp.bfloat16)

    in_specs = [pl.BlockSpec((tm, tk), lambda i, j, k: (i, k)),
                pl.BlockSpec((tk, tn), lambda i, j, k: (k, j))]
    o_spec = pl.BlockSpec((tm, tn), lambda i, j, k: (i, j))
    o_shape = jax.ShapeDtypeStruct((Mp, Ncp), out_dtype)
    if with_stats:
        s_spec = pl.BlockSpec((8, tn), lambda i, j, k: (i, j))
        s_shape = jax.ShapeDtypeStruct((8 * nm, Ncp), jnp.float32)
        out_specs = (o_spec, s_spec, s_spec)
        out_shape = (o_shape, s_shape, s_shape)
    else:
        out_specs = o_spec
        out_shape = o_shape

    res = pl.pallas_call(
        _make_matmul_kernel(activation, with_stats),
        out_shape=out_shape,
        grid_spec=pltpu.PrefetchScalarGridSpec(
            num_scalar_prefetch=0,
            grid=(nm, nn, nk),
            in_specs=in_specs,
            out_specs=out_specs,
            scratch_shapes=[pltpu.VMEM((tm, tn), jnp.float32)],
        ),
        compiler_params=pltpu.CompilerParams(
            dimension_semantics=("parallel", "parallel", "arbitrary")),
    )(a, b)

    if with_stats:
        out, ssum, ssq = res
        col_sum = ssum.reshape(nm, 8, Ncp)[:, 0, :].sum(axis=0)
        col_sq = ssq.reshape(nm, 8, Ncp)[:, 0, :].sum(axis=0)
        return out, col_sum, col_sq
    return res


# ---------------------------------------------------------------------------
# Pallas kernel 2: per-channel affine (BatchNorm apply) + ReLU, row-tiled.
# ---------------------------------------------------------------------------
def _bn_relu_kernel(y_ref, scale_ref, shift_ref, o_ref):
    y = y_ref[...].astype(jnp.float32)
    o_ref[...] = jnp.maximum(y * scale_ref[...] + shift_ref[...], 0.0
                             ).astype(o_ref.dtype)


def bn_relu_apply(y, scale, shift, out_dtype=jnp.bfloat16):
    """y: (R, C) with C a multiple of 128.  scale/shift: (C,) f32."""
    R, C = y.shape
    tr = min(512, _ceil_to(R, 8))
    Rp = _ceil_to(R, tr)
    if Rp != R:
        y = jnp.pad(y, ((0, Rp - R), (0, 0)))
    out = pl.pallas_call(
        _bn_relu_kernel,
        out_shape=jax.ShapeDtypeStruct((Rp, C), out_dtype),
        grid_spec=pltpu.PrefetchScalarGridSpec(
            num_scalar_prefetch=0,
            grid=(Rp // tr,),
            in_specs=[pl.BlockSpec((tr, C), lambda i: (i, 0)),
                      pl.BlockSpec((1, C), lambda i: (0, 0)),
                      pl.BlockSpec((1, C), lambda i: (0, 0))],
            out_specs=pl.BlockSpec((tr, C), lambda i: (i, 0)),
        ),
        compiler_params=pltpu.CompilerParams(
            dimension_semantics=("parallel",)),
    )(y, scale.reshape(1, C).astype(jnp.float32),
      shift.reshape(1, C).astype(jnp.float32))
    return out[:R]


# ---------------------------------------------------------------------------
# ConvTranspose2d(k=4, s=2, p=1) block via sub-pixel decomposition (JAX glue
# around the Pallas matmuls), with fused BN(train)+ReLU or Tanh epilogue.
# ---------------------------------------------------------------------------
def _sub_pixel_conv_block(x, wmats, epilogue):
    """x: (N, H, W, C) NHWC bf16.  wmats: (4, 4*C, C_out) per-phase weights."""
    N, H, W, C = x.shape
    C_out = wmats.shape[-1]
    M = N * H * W
    xp = jnp.pad(x, ((0, 0), (1, 1), (1, 1), (0, 0)))

    with_stats = epilogue == "bn_relu"
    act = "tanh" if epilogue == "tanh" else "none"
    out_dtype = jnp.float32 if epilogue == "tanh" else jnp.bfloat16

    ys, col_sum, col_sq = [], 0.0, 0.0
    for rh in range(2):
        for rw in range(2):
            taps = [xp[:, hs:hs + H, ws:ws + W, :]
                    for _, hs in _PHASE_TAPS[rh] for _, ws in _PHASE_TAPS[rw]]
            A = jnp.concatenate(taps, axis=-1).reshape(M, 4 * C)
            res = fused_matmul(A, wmats[2 * rh + rw], activation=act,
                               with_stats=with_stats, out_dtype=out_dtype)
            if with_stats:
                y, s, q = res
                col_sum, col_sq = col_sum + s, col_sq + q
            else:
                y = res
            ys.append(y)

    Mp, Ncp = ys[0].shape
    y_all = jnp.stack(ys, axis=0)                       # (4, Mp, Ncp)
    if with_stats:
        # BatchNorm2d in train mode; gamma=1, beta=0 (fresh PyTorch init).
        cnt = 4.0 * M                                   # = N * (2H) * (2W)
        mean = col_sum / cnt
        var = col_sq / cnt - mean * mean                # E[x^2] - E[x]^2
        scale = jax.lax.rsqrt(var + BN_EPS)
        shift = -mean * scale
        y_all = bn_relu_apply(y_all.reshape(4 * Mp, Ncp), scale, shift
                              ).reshape(4, Mp, Ncp)
    # pixel shuffle: phase (rh, rw) lands at output (2*t_h + rh, 2*t_w + rw)
    y_all = y_all[:, :M, :C_out].reshape(2, 2, N, H, W, C_out)
    return y_all.transpose(2, 3, 0, 4, 1, 5).reshape(N, 2 * H, 2 * W, C_out)


# ---------------------------------------------------------------------------
# Generator parameters (raw PyTorch layout), hoisted matmul weights, forward.
# ---------------------------------------------------------------------------
def make_generator_params(key, noise_dim, image_shape):
    out_c, out_h, out_w = image_shape[-3:]
    assert out_h == out_w and out_h > 0 and out_h & (out_h - 1) == 0
    shapes, epilogues = [(noise_dim, FIRST_BLOCK_CHANNELS, 4, 4)], ["none"]
    chans, width = FIRST_BLOCK_CHANNELS, 4
    while width < out_w / 2:
        shapes.append((chans, chans // 2, 4, 4))
        epilogues.append("bn_relu")
        chans //= 2
        width *= 2
    shapes.append((chans, out_c, 4, 4))
    epilogues.append("tanh")
    keys = jax.random.split(key, len(shapes))
    weights = [0.05 * jax.random.normal(kk, s, jnp.float32)
               for kk, s in zip(keys, shapes)]
    return weights, epilogues


def _phase_weight_mats(w):
    """w: (C_in, C_out, 4, 4) -> (4, 4*C_in, C_out) per-phase matmul weights
    (bf16), row order matching the tap order of the im2col A blocks."""
    mats = []
    for rh in range(2):
        for rw in range(2):
            rows = [w[:, :, kh, kw]
                    for kh, _ in _PHASE_TAPS[rh] for kw, _ in _PHASE_TAPS[rw]]
            mats.append(jnp.concatenate(rows, axis=0))
    return jnp.stack(mats, axis=0).astype(jnp.bfloat16)


def prepare_generator_weights(weights):
    """Hoist static weight transforms (phase split, transpose, bf16) out of
    the per-forward path."""
    w0 = weights[0]
    nd, c1 = w0.shape[0], w0.shape[1]
    prepared = [w0.transpose(0, 2, 3, 1).reshape(nd, 16 * c1).astype(jnp.bfloat16)]
    prepared += [_phase_weight_mats(w) for w in weights[1:]]
    return prepared


def generator_forward(noise, prepared, epilogues):
    """NCHW-out forward pass matching the PyTorch Generator (NHWC inside)."""
    N = noise.shape[0]
    w0m = prepared[0]
    c1 = w0m.shape[1] // 16
    # First block: ConvTranspose2d(noise_dim, 1024, 4, 1, 0) on a 1x1 input is
    # exactly (N, nd) @ (nd, 4*4*1024).
    y = fused_matmul(noise, w0m, activation="none", out_dtype=jnp.bfloat16)
    x = y[:N, :16 * c1].reshape(N, 4, 4, c1)            # NHWC
    for wm, epi in zip(prepared[1:], epilogues[1:]):
        x = _sub_pixel_conv_block(x, wm, epi)
    return x.transpose(0, 3, 1, 2).astype(jnp.float32)  # NCHW


# ---------------------------------------------------------------------------
# Pure-JAX reference (for correctness check)
# ---------------------------------------------------------------------------
def _conv_transpose_ref(x, w, stride, pad):
    k = w.shape[-1]
    wt = jnp.flip(w, axis=(-2, -1)).transpose(1, 0, 2, 3)   # (C_out, C_in, k, k)
    return jax.lax.conv_general_dilated(
        x, wt, window_strides=(1, 1),
        padding=[(k - 1 - pad, k - 1 - pad)] * 2,
        lhs_dilation=(stride, stride),
        dimension_numbers=("NCHW", "OIHW", "NCHW"),
        precision=jax.lax.Precision.HIGHEST)


def generator_ref(noise, weights, epilogues):
    x = noise[:, :, None, None]
    x = _conv_transpose_ref(x, weights[0], stride=1, pad=0)
    for w, epi in zip(weights[1:], epilogues[1:]):
        x = _conv_transpose_ref(x, w, stride=2, pad=1)
        if epi == "bn_relu":
            mean = x.mean(axis=(0, 2, 3), keepdims=True)
            var = ((x - mean) ** 2).mean(axis=(0, 2, 3), keepdims=True)
            x = jnp.maximum((x - mean) / jnp.sqrt(var + BN_EPS), 0.0)
        elif epi == "tanh":
            x = jnp.tanh(x)
    return x


if __name__ == "__main__":
    key = jax.random.PRNGKey(0)
    kp, kn = jax.random.split(key)
    batch, noise_dim = 2, 32
    image_shape = (3, 16, 16)          # out_channels, out_height, out_width

    weights, epilogues = make_generator_params(kp, noise_dim, image_shape)
    prepared = prepare_generator_weights(weights)
    noise = jax.random.normal(kn, (batch, noise_dim), jnp.float32)

    fwd = jax.jit(lambda n, p: generator_forward(n, p, epilogues))
    out = jax.block_until_ready(fwd(noise, prepared))
    assert out.shape == (batch,) + image_shape, out.shape

    ref = jax.block_until_ready(generator_ref(noise, weights, epilogues))
    max_err = float(jnp.max(jnp.abs(out - ref)))
    mean_err = float(jnp.mean(jnp.abs(out - ref)))
    # bf16 MXU operands + bf16 intermediates vs an f32 HIGHEST reference.
    assert max_err < 5e-2 and mean_err < 1e-2, (max_err, mean_err)
    print("KERNEL_OK")
</pallas_src>

<mosaic_0001>
module attributes {stable_mosaic.version = 11 : i64} {
  func.func @kernel(%arg0: i32, %arg1: i32, %arg2: i32, %arg3: memref<8x128xbf16, #tpu.memory_space<vmem>>, %arg4: memref<128x256xbf16, #tpu.memory_space<vmem>>, %arg5: memref<8x256xbf16, #tpu.memory_space<vmem>>, %arg6: memref<8x256xf32, #tpu.memory_space<vmem>>) attributes {dimension_semantics = [#tpu.dimension_semantics<parallel>, #tpu.dimension_semantics<parallel>, #tpu.dimension_semantics<arbitrary>], iteration_bounds = array<i64: 1, 64, 1>, scalar_prefetch = 0 : i64, scratch_operands = 1 : i64, tpu.core_type = #tpu.core_type<tc>, window_params = [{transform_indices = @transform_0, window_bounds = array<i64: 8, 128>}, {transform_indices = @transform_1, window_bounds = array<i64: 128, 256>}, {transform_indices = @transform_2, window_bounds = array<i64: 8, 256>}]} {
    %c0_i32 = arith.constant 0 : i32
    %0 = arith.cmpi eq, %arg2, %c0_i32 : i32
    %1 = arith.extui %0 : i1 to i32
    %c0_i32_0 = arith.constant 0 : i32
    %2 = arith.cmpi ne, %1, %c0_i32_0 : i32
    scf.if %2 {
      %cst_10 = arith.constant 0.000000e+00 : f32
      %12 = vector.broadcast %cst_10 : f32 to vector<8x256xf32>
      %c0_11 = arith.constant 0 : index
      %c0_12 = arith.constant 0 : index
      %13 = vector.load %arg6[%c0_11, %c0_12] : memref<8x256xf32, #tpu.memory_space<vmem>>, vector<8x256xf32>
      tpu.vector_store %arg6[%c0_11, %c0_12], %12 {strides = array<i32>} : memref<8x256xf32, #tpu.memory_space<vmem>>, vector<8x256xf32>,
    } else {
    }
    %c0 = arith.constant 0 : index
    %c0_1 = arith.constant 0 : index
    %3 = vector.load %arg6[%c0, %c0_1] : memref<8x256xf32, #tpu.memory_space<vmem>>, vector<8x256xf32>
    %c0_2 = arith.constant 0 : index
    %c0_3 = arith.constant 0 : index
    %4 = vector.load %arg3[%c0_2, %c0_3] : memref<8x128xbf16, #tpu.memory_space<vmem>>, vector<8x128xbf16>
    %c0_4 = arith.constant 0 : index
    %c0_5 = arith.constant 0 : index
    %5 = vector.load %arg4[%c0_4, %c0_5] : memref<128x256xbf16, #tpu.memory_space<vmem>>, vector<128x256xbf16>
    %cst = arith.constant dense<0.000000e+00> : vector<8x256xf32>
    %6 = tpu.matmul %4, %5, %cst {dimension_numbers = #tpu.dot_dimension_numbers<[1], [0], [0], [1], [0, 0, 1, 1], [], []>} : vector<8x128xbf16>, vector<128x256xbf16>, vector<8x256xf32> -> vector<8x256xf32>
    %7 = arith.addf %3, %6 : vector<8x256xf32>
    %c0_6 = arith.constant 0 : index
    %c0_7 = arith.constant 0 : index
    %8 = vector.load %arg6[%c0_6, %c0_7] : memref<8x256xf32, #tpu.memory_space<vmem>>, vector<8x256xf32>
    tpu.vector_store %arg6[%c0_6, %c0_7], %7 {strides = array<i32>} : memref<8x256xf32, #tpu.memory_space<vmem>>, vector<8x256xf32>,
    %c0_i32_8 = arith.constant 0 : i32
    %9 = arith.cmpi eq, %arg2, %c0_i32_8 : i32
    %10 = arith.extui %9 : i1 to i32
    %c0_i32_9 = arith.constant 0 : i32
    %11 = arith.cmpi ne, %10, %c0_i32_9 : i32
    scf.if %11 {
      %c0_10 = arith.constant 0 : index
      %c0_11 = arith.constant 0 : index
      %12 = vector.load %arg6[%c0_10, %c0_11] : memref<8x256xf32, #tpu.memory_space<vmem>>, vector<8x256xf32>
      %13 = arith.truncf %12 : vector<8x256xf32> to vector<8x256xbf16>
      %c0_12 = arith.constant 0 : index
      %c0_13 = arith.constant 0 : index
      %14 = vector.load %arg5[%c0_12, %c0_13] : memref<8x256xbf16, #tpu.memory_space<vmem>>, vector<8x256xbf16>
      tpu.vector_store %arg5[%c0_12, %c0_13], %13 {strides = array<i32>} : memref<8x256xbf16, #tpu.memory_space<vmem>>, vector<8x256xbf16>,
    } else {
    }
    return
  }
  func.func @transform_0(%arg0: i32, %arg1: i32, %arg2: i32) -> (i32, i32) {
    %c0_i32 = arith.constant 0 : i32
    return %arg0, %arg2 : i32, i32
  }
  func.func @transform_1(%arg0: i32, %arg1: i32, %arg2: i32) -> (i32, i32) {
    %c0_i32 = arith.constant 0 : i32
    return %arg2, %arg1 : i32, i32
  }
  func.func @transform_2(%arg0: i32, %arg1: i32, %arg2: i32) -> (i32, i32) {
    %c0_i32 = arith.constant 0 : i32
    return %arg0, %arg1 : i32, i32
  }
}

module attributes {stable_mosaic.version = 11 : i64} {
  func.func @kernel(%arg0: i32, %arg1: i32, %arg2: i32, %arg3: memref<32x512xbf16, #tpu.memory_space<vmem>>, %arg4: memref<512x256xbf16, #tpu.memory_space<vmem>>, %arg5: memref<32x256xbf16, #tpu.memory_space<vmem>>, %arg6: memref<8x256xf32, #tpu.memory_space<vmem>>, %arg7: memref<8x256xf32, #tpu.memory_space<vmem>>, %arg8: memref<32x256xf32, #tpu.memory_space<vmem>>) attributes {dimension_semantics = [#tpu.dimension_semantics<parallel>, #tpu.dimension_semantics<parallel>, #tpu.dimension_semantics<arbitrary>], iteration_bounds = array<i64: 1, 2, 8>, scalar_prefetch = 0 : i64, scratch_operands = 1 : i64, tpu.core_type = #tpu.core_type<tc>, window_params = [{transform_indices = @transform_0, window_bounds = array<i64: 32, 512>}, {transform_indices = @transform_1, window_bounds = array<i64: 512, 256>}, {transform_indices = @transform_2, window_bounds = array<i64: 32, 256>}, {transform_indices = @transform_3, window_bounds = array<i64: 8, 256>}, {transform_indices = @transform_4, window_bounds = array<i64: 8, 256>}]} {
    %c0_i32 = arith.constant 0 : i32
    %0 = arith.cmpi eq, %arg2, %c0_i32 : i32
    %1 = arith.extui %0 : i1 to i32
    %c0_i32_0 = arith.constant 0 : i32
    %2 = arith.cmpi ne, %1, %c0_i32_0 : i32
    scf.if %2 {
      %cst_9 = arith.constant 0.000000e+00 : f32
      %12 = vector.broadcast %cst_9 : f32 to vector<32x256xf32>
      %c0_10 = arith.constant 0 : index
      %c0_11 = arith.constant 0 : index
      %13 = vector.load %arg8[%c0_10, %c0_11] : memref<32x256xf32, #tpu.memory_space<vmem>>, vector<32x256xf32>
      tpu.vector_store %arg8[%c0_10, %c0_11], %12 {strides = array<i32>} : memref<32x256xf32, #tpu.memory_space<vmem>>, vector<32x256xf32>,
    } else {
    }
    %c0 = arith.constant 0 : index
    %c0_1 = arith.constant 0 : index
    %3 = vector.load %arg8[%c0, %c0_1] : memref<32x256xf32, #tpu.memory_space<vmem>>, vector<32x256xf32>
    %c0_2 = arith.constant 0 : index
    %c0_3 = arith.constant 0 : index
    %4 = vector.load %arg3[%c0_2, %c0_3] : memref<32x512xbf16, #tpu.memory_space<vmem>>, vector<32x512xbf16>
    %c0_4 = arith.constant 0 : index
    %c0_5 = arith.constant 0 : index
    %5 = vector.load %arg4[%c0_4, %c0_5] : memref<512x256xbf16, #tpu.memory_space<vmem>>, vector<512x256xbf16>
    %cst = arith.constant dense<0.000000e+00> : vector<32x256xf32>
    %6 = tpu.matmul %4, %5, %cst {dimension_numbers = #tpu.dot_dimension_numbers<[1], [0], [0], [1], [0, 0, 1, 1], [], []>} : vector<32x512xbf16>, vector<512x256xbf16>, vector<32x256xf32> -> vector<32x256xf32>
    %7 = arith.addf %3, %6 : vector<32x256xf32>
    %c0_6 = arith.constant 0 : index
    %c0_7 = arith.constant 0 : index
    %8 = vector.load %arg8[%c0_6, %c0_7] : memref<32x256xf32, #tpu.memory_space<vmem>>, vector<32x256xf32>
    tpu.vector_store %arg8[%c0_6, %c0_7], %7 {strides = array<i32>} : memref<32x256xf32, #tpu.memory_space<vmem>>, vector<32x256xf32>,
    %c7_i32 = arith.constant 7 : i32
    %9 = arith.cmpi eq, %arg2, %c7_i32 : i32
    %10 = arith.extui %9 : i1 to i32
    %c0_i32_8 = arith.constant 0 : i32
    %11 = arith.cmpi ne, %10, %c0_i32_8 : i32
    scf.if %11 {
      %c0_9 = arith.constant 0 : index
      %c0_10 = arith.constant 0 : index
      %12 = vector.load %arg8[%c0_9, %c0_10] : memref<32x256xf32, #tpu.memory_space<vmem>>, vector<32x256xf32>
      %13 = arith.truncf %12 : vector<32x256xf32> to vector<32x256xbf16>
      %c0_11 = arith.constant 0 : index
      %c0_12 = arith.constant 0 : index
      %14 = vector.load %arg5[%c0_11, %c0_12] : memref<32x256xbf16, #tpu.memory_space<vmem>>, vector<32x256xbf16>
      tpu.vector_store %arg5[%c0_11, %c0_12], %13 {strides = array<i32>} : memref<32x256xbf16, #tpu.memory_space<vmem>>, vector<32x256xbf16>,
      %cst_13 = arith.constant dense<0.000000e+00> : vector<256xf32>
      %15 = vector.multi_reduction <add>, %12, %cst_13 [0] : vector<32x256xf32> to vector<256xf32>
      %16 = vector.shape_cast %15 : vector<256xf32> to vector<1x256xf32>
      %17 = arith.mulf %12, %12 : vector<32x256xf32>
      %cst_14 = arith.constant dense<0.000000e+00> : vector<256xf32>
      %18 = vector.multi_reduction <add>, %17, %cst_14 [0] : vector<32x256xf32> to vector<256xf32>
      %19 = vector.shape_cast %18 : vector<256xf32> to vector<1x256xf32>
      %20 = vector.shape_cast %16 : vector<1x256xf32> to vector<1x256xf32>
      %21 = vector.broadcast %20 : vector<1x256xf32> to vector<8x256xf32>
      %c0_15 = arith.constant 0 : index
      %c0_16 = arith.constant 0 : index
      %22 = vector.load %arg6[%c0_15, %c0_16] : memref<8x256xf32, #tpu.memory_space<vmem>>, vector<8x256xf32>
      tpu.vector_store %arg6[%c0_15, %c0_16], %21 {strides = array<i32>} : memref<8x256xf32, #tpu.memory_space<vmem>>, vector<8x256xf32>,
      %23 = vector.shape_cast %19 : vector<1x256xf32> to vector<1x256xf32>
      %24 = vector.broadcast %23 : vector<1x256xf32> to vector<8x256xf32>
      %c0_17 = arith.constant 0 : index
      %c0_18 = arith.constant 0 : index
      %25 = vector.load %arg7[%c0_17, %c0_18] : memref<8x256xf32, #tpu.memory_space<vmem>>, vector<8x256xf32>
      tpu.vector_store %arg7[%c0_17, %c0_18], %24 {strides = array<i32>} : memref<8x256xf32, #tpu.memory_space<vmem>>, vector<8x256xf32>,
    } else {
    }
    return
  }
  func.func @transform_0(%arg0: i32, %arg1: i32, %arg2: i32) -> (i32, i32) {
    %c0_i32 = arith.constant 0 : i32
    return %arg0, %arg2 : i32, i32
  }
  func.func @transform_1(%arg0: i32, %arg1: i32, %arg2: i32) -> (i32, i32) {
    %c0_i32 = arith.constant 0 : i32
    return %arg2, %arg1 : i32, i32
  }
  func.func @transform_2(%arg0: i32, %arg1: i32, %arg2: i32) -> (i32, i32) {
    %c0_i32 = arith.constant 0 : i32
    return %arg0, %arg1 : i32, i32
  }
  func.func @transform_3(%arg0: i32, %arg1: i32, %arg2: i32) -> (i32, i32) {
    %c0_i32 = arith.constant 0 : i32
    return %arg0, %arg1 : i32, i32
  }
  func.func @transform_4(%arg0: i32, %arg1: i32, %arg2: i32) -> (i32, i32) {
    %c0_i32 = arith.constant 0 : i32
    return %arg0, %arg1 : i32, i32
  }
}

module attributes {stable_mosaic.version = 11 : i64} {
  func.func @_bn_relu_kernel(%arg0: i32, %arg1: memref<128x512xbf16, #tpu.memory_space<vmem>>, %arg2: memref<1x512xf32, #tpu.memory_space<vmem>>, %arg3: memref<1x512xf32, #tpu.memory_space<vmem>>, %arg4: memref<128x512xbf16, #tpu.memory_space<vmem>>) attributes {dimension_semantics = [#tpu.dimension_semantics<parallel>], iteration_bounds = array<i64: 1>, scalar_prefetch = 0 : i64, scratch_operands = 0 : i64, tpu.core_type = #tpu.core_type<tc>, window_params = [{transform_indices = @transform_0, window_bounds = array<i64: 128, 512>}, {pipeline_mode = #tpu.pipeline_mode<synchronous>, transform_indices = @transform_1, window_bounds = array<i64: 1, 512>}, {pipeline_mode = #tpu.pipeline_mode<synchronous>, transform_indices = @transform_2, window_bounds = array<i64: 1, 512>}, {transform_indices = @transform_3, window_bounds = array<i64: 128, 512>}]} {
    %c0 = arith.constant 0 : index
    %c0_0 = arith.constant 0 : index
    %0 = vector.load %arg1[%c0, %c0_0] : memref<128x512xbf16, #tpu.memory_space<vmem>>, vector<128x512xbf16>
    %1 = arith.extf %0 : vector<128x512xbf16> to vector<128x512xf32>
    %c0_1 = arith.constant 0 : index
    %c0_2 = arith.constant 0 : index
    %2 = vector.load %arg2[%c0_1, %c0_2] : memref<1x512xf32, #tpu.memory_space<vmem>>, vector<1x512xf32>
    %3 = vector.broadcast %2 : vector<1x512xf32> to vector<128x512xf32>
    %4 = arith.mulf %1, %3 : vector<128x512xf32>
    %c0_3 = arith.constant 0 : index
    %c0_4 = arith.constant 0 : index
    %5 = vector.load %arg3[%c0_3, %c0_4] : memref<1x512xf32, #tpu.memory_space<vmem>>, vector<1x512xf32>
    %6 = vector.broadcast %5 : vector<1x512xf32> to vector<128x512xf32>
    %7 = arith.addf %4, %6 : vector<128x512xf32>
    %cst = arith.constant 0.000000e+00 : f32
    %8 = vector.broadcast %cst : f32 to vector<128x512xf32>
    %9 = arith.maximumf %7, %8 : vector<128x512xf32>
    %10 = arith.truncf %9 : vector<128x512xf32> to vector<128x512xbf16>
    %c0_5 = arith.constant 0 : index
    %c0_6 = arith.constant 0 : index
    %11 = vector.load %arg4[%c0_5, %c0_6] : memref<128x512xbf16, #tpu.memory_space<vmem>>, vector<128x512xbf16>
    tpu.vector_store %arg4[%c0_5, %c0_6], %10 {strides = array<i32>} : memref<128x512xbf16, #tpu.memory_space<vmem>>, vector<128x512xbf16>,
    return
  }
  func.func @transform_0(%arg0: i32) -> (i32, i32) {
    %c0_i32 = arith.constant 0 : i32
    %c0_i32_0 = arith.constant 0 : i32
    return %arg0, %c0_i32 : i32, i32
  }
  func.func @transform_1(%arg0: i32) -> (i32, i32) {
    %c0_i32 = arith.constant 0 : i32
    %c0_i32_0 = arith.constant 0 : i32
    %c0_i32_1 = arith.constant 0 : i32
    return %c0_i32, %c0_i32_0 : i32, i32
  }
  func.func @transform_2(%arg0: i32) -> (i32, i32) {
    %c0_i32 = arith.constant 0 : i32
    %c0_i32_0 = arith.constant 0 : i32
    %c0_i32_1 = arith.constant 0 : i32
    return %c0_i32, %c0_i32_0 : i32, i32
  }
  func.func @transform_3(%arg0: i32) -> (i32, i32) {
    %c0_i32 = arith.constant 0 : i32
    %c0_i32_0 = arith.constant 0 : i32
    return %arg0, %c0_i32 : i32, i32
  }
}

module attributes {stable_mosaic.version = 11 : i64} {
  func.func @kernel(%arg0: i32, %arg1: i32, %arg2: i32, %arg3: memref<128x512xbf16, #tpu.memory_space<vmem>>, %arg4: memref<512x128xbf16, #tpu.memory_space<vmem>>, %arg5: memref<128x128xf32, #tpu.memory_space<vmem>>, %arg6: memref<128x128xf32, #tpu.memory_space<vmem>>) attributes {dimension_semantics = [#tpu.dimension_semantics<parallel>, #tpu.dimension_semantics<parallel>, #tpu.dimension_semantics<arbitrary>], iteration_bounds = array<i64: 1, 1, 4>, scalar_prefetch = 0 : i64, scratch_operands = 1 : i64, tpu.core_type = #tpu.core_type<tc>, window_params = [{transform_indices = @transform_0, window_bounds = array<i64: 128, 512>}, {transform_indices = @transform_1, window_bounds = array<i64: 512, 128>}, {transform_indices = @transform_2, window_bounds = array<i64: 128, 128>}]} {
    %c0_i32 = arith.constant 0 : i32
    %0 = arith.cmpi eq, %arg2, %c0_i32 : i32
    %1 = arith.extui %0 : i1 to i32
    %c0_i32_0 = arith.constant 0 : i32
    %2 = arith.cmpi ne, %1, %c0_i32_0 : i32
    scf.if %2 {
      %cst_9 = arith.constant 0.000000e+00 : f32
      %12 = vector.broadcast %cst_9 : f32 to vector<128x128xf32>
      %c0_10 = arith.constant 0 : index
      %c0_11 = arith.constant 0 : index
      %13 = vector.load %arg6[%c0_10, %c0_11] : memref<128x128xf32, #tpu.memory_space<vmem>>, vector<128x128xf32>
      tpu.vector_store %arg6[%c0_10, %c0_11], %12 {strides = array<i32>} : memref<128x128xf32, #tpu.memory_space<vmem>>, vector<128x128xf32>,
    } else {
    }
    %c0 = arith.constant 0 : index
    %c0_1 = arith.constant 0 : index
    %3 = vector.load %arg6[%c0, %c0_1] : memref<128x128xf32, #tpu.memory_space<vmem>>, vector<128x128xf32>
    %c0_2 = arith.constant 0 : index
    %c0_3 = arith.constant 0 : index
    %4 = vector.load %arg3[%c0_2, %c0_3] : memref<128x512xbf16, #tpu.memory_space<vmem>>, vector<128x512xbf16>
    %c0_4 = arith.constant 0 : index
    %c0_5 = arith.constant 0 : index
    %5 = vector.load %arg4[%c0_4, %c0_5] : memref<512x128xbf16, #tpu.memory_space<vmem>>, vector<512x128xbf16>
    %cst = arith.constant dense<0.000000e+00> : vector<128x128xf32>
    %6 = tpu.matmul %4, %5, %cst {dimension_numbers = #tpu.dot_dimension_numbers<[1], [0], [0], [1], [0, 0, 1, 1], [], []>} : vector<128x512xbf16>, vector<512x128xbf16>, vector<128x128xf32> -> vector<128x128xf32>
    %7 = arith.addf %3, %6 : vector<128x128xf32>
    %c0_6 = arith.constant 0 : index
    %c0_7 = arith.constant 0 : index
    %8 = vector.load %arg6[%c0_6, %c0_7] : memref<128x128xf32, #tpu.memory_space<vmem>>, vector<128x128xf32>
    tpu.vector_store %arg6[%c0_6, %c0_7], %7 {strides = array<i32>} : memref<128x128xf32, #tpu.memory_space<vmem>>, vector<128x128xf32>,
    %c3_i32 = arith.constant 3 : i32
    %9 = arith.cmpi eq, %arg2, %c3_i32 : i32
    %10 = arith.extui %9 : i1 to i32
    %c0_i32_8 = arith.constant 0 : i32
    %11 = arith.cmpi ne, %10, %c0_i32_8 : i32
    scf.if %11 {
      %c0_9 = arith.constant 0 : index
      %c0_10 = arith.constant 0 : index
      %12 = vector.load %arg6[%c0_9, %c0_10] : memref<128x128xf32, #tpu.memory_space<vmem>>, vector<128x128xf32>
      %13 = math.tanh %12 : vector<128x128xf32>
      %c0_11 = arith.constant 0 : index
      %c0_12 = arith.constant 0 : index
      %14 = vector.load %arg5[%c0_11, %c0_12] : memref<128x128xf32, #tpu.memory_space<vmem>>, vector<128x128xf32>
      tpu.vector_store %arg5[%c0_11, %c0_12], %13 {strides = array<i32>} : memref<128x128xf32, #tpu.memory_space<vmem>>, vector<128x128xf32>,
    } else {
    }
    return
  }
  func.func @transform_0(%arg0: i32, %arg1: i32, %arg2: i32) -> (i32, i32) {
    %c0_i32 = arith.constant 0 : i32
    return %arg0, %arg2 : i32, i32
  }
  func.func @transform_1(%arg0: i32, %arg1: i32, %arg2: i32) -> (i32, i32) {
    %c0_i32 = arith.constant 0 : i32
    return %arg2, %arg1 : i32, i32
  }
  func.func @transform_2(%arg0: i32, %arg1: i32, %arg2: i32) -> (i32, i32) {
    %c0_i32 = arith.constant 0 : i32
    return %arg0, %arg1 : i32, i32
  }
}

</mosaic_0001>

<bundles_post_ra>
// kernel: _lambda_.10
= control target key start
LH: loop header
LB: loop body
LE: loop exit
PB: predicated region body
PF: predicated region fallthrough
CT: control target
= control target key end

     0   :  { %s748_s9 = smov 0   ;;  %s750_s10 = smov 0   ;;  %s868_s0 = inlined_call_operand.vmem [shape: bf16[8,128], index: 0, kind: input, shape index: {}]   ;;  %s869_s1 = inlined_call_operand.vmem [shape: bf16[128,16384], index: 1, kind: input, shape index: {}]   ;;  %s870_s2 = inlined_call_operand.vmem [shape: bf16[8,16384], index: 2, kind: output, shape index: {}]  }
   0x1   :  { %s752_s11 = smov 0   ;;  %s754_s12 = smov 0  }
   0x2   :  { %s756_s13 = smov 0  }
   0x3 LB: > { %s27_s14 = sadd.s32 1, %s727_s12  ;;  %p75_p1 = scmp.ne.s32.totalorder %s719_s10, %s715_s9  ;;  %s731_s13 = sphi %s756_s13, %s12_s13   ;;  %s727_s12 = sphi %s754_s12, %s874_s12   ;;  %s723_s11 = sphi %s752_s11, %s873_s11   ;;  %s719_s10 = sphi %s750_s10, %s872_s10   ;;  %s715_s9 = sphi %s748_s9, %s871_s9  }
   0x4   : > { %p29_p0 = scmp.ge.s32.totalorder %s27_s14, 64  ;;  %p76_p2 = scmp.eq.s32.totalorder %s731_s13, 0 }
   0x5   : > { %s68_s16 = sadd.s32 1, %s719_s10  ;;  %p562_p5 = scmp.ge.s32.totalorder %s731_s13, 64 }
   0x6   : > { %s876_s14 = smov (%p29_p0, %s27_s14), 0  ;;  %p77_p3 = por %p76_p2, %p75_p1 }
   0x7   : > { %s64_s15 = ssub.s32 %s727_s12, %s876_s14  ;;  %139 = sbr.rel (%p562_p5) target bundleno = 32 (0x20), region = 20 }
   0x8   : > { %p66_p4 = scmp.eq.s32.totalorder %s64_s15, 0 }
   0xa   : > { %s783_s17 = scalar_select %p66_p4, %s719_s10, %s68_s16  }
   0xc   : > { %142 = sbr.rel (!%p77_p3) target bundleno = 32 (0x20), region = 24  ;;  %s144_s18 = sand.u32 (%p77_p3), 1, %s719_s10  }
   0xd   : > { %s636_s19 = sshll.u32 (%p77_p3), %s727_s12, 3  ;;  %s563_s20 = sshll.u32 (%p77_p3), %s144_s18, 7 }
   0xe   : > { %s791_s23 = scalar_lea.vmem (%p77_p3), %s869_s1, %s636_s19  ;;  %s146_s24 = scalar_lea.vmem (%p77_p3), [#allocation3], %s563_s20 }
   0xf   : > { %v211_v0 = vld [vmem:[%s791_s23] sm:$0xff] (%p77_p3) }
  0x10   : > { %v213_v1 = vld [vmem:[%s791_s23 + $0x200] sm:$0xff] (%p77_p3)  ;;  %212 = vst [vmem:[%s146_s24] sm:$0xff] (%p77_p3), %v211_v0 }
  0x11   : > { %v215_v2 = vld [vmem:[%s791_s23 + $0x400] sm:$0xff]  ;;  %214 = vst [vmem:[%s146_s24 + $0x8] sm:$0xff] %v213_v1 }
  0x12   : > { %v217_v3 = vld [vmem:[%s791_s23 + $0x600] sm:$0xff]  ;;  %216 = vst [vmem:[%s146_s24 + $0x10] sm:$0xff] %v215_v2 }
  0x13   : > { %v219_v4 = vld [vmem:[%s791_s23 + $0x800] sm:$0xff]  ;;  %218 = vst [vmem:[%s146_s24 + $0x18] sm:$0xff] %v217_v3 }
  0x14   : > { %v221_v5 = vld [vmem:[%s791_s23 + $0xa00] sm:$0xff]  ;;  %220 = vst [vmem:[%s146_s24 + $0x20] sm:$0xff] %v219_v4 }
  0x15   : > { %v223_v6 = vld [vmem:[%s791_s23 + $0xc00] sm:$0xff]  ;;  %222 = vst [vmem:[%s146_s24 + $0x28] sm:$0xff] %v221_v5 }
  0x16   : > { %v225_v7 = vld [vmem:[%s791_s23 + $0xe00] sm:$0xff]  ;;  %224 = vst [vmem:[%s146_s24 + $0x30] sm:$0xff] %v223_v6 }
  0x17   : > { %v227_v8 = vld [vmem:[%s791_s23 + $0x1000] sm:$0xff]  ;;  %226 = vst [vmem:[%s146_s24 + $0x38] sm:$0xff] %v225_v7 }
  0x18   : > { %v229_v9 = vld [vmem:[%s791_s23 + $0x1200] sm:$0xff]  ;;  %228 = vst [vmem:[%s146_s24 + $0x40] sm:$0xff] %v227_v8 }
  0x19   : > { %v231_v10 = vld [vmem:[%s791_s23 + $0x1400] sm:$0xff]  ;;  %230 = vst [vmem:[%s146_s24 + $0x48] sm:$0xff] %v229_v9 }
  0x1a   : > { %v233_v11 = vld [vmem:[%s791_s23 + $0x1600] sm:$0xff]  ;;  %232 = vst [vmem:[%s146_s24 + $0x50] sm:$0xff] %v231_v10 }
  0x1b   : > { %v235_v12 = vld [vmem:[%s791_s23 + $0x1800] sm:$0xff]  ;;  %234 = vst [vmem:[%s146_s24 + $0x58] sm:$0xff] %v233_v11 }
  0x1c   : > { %v237_v13 = vld [vmem:[%s791_s23 + $0x1a00] sm:$0xff]  ;;  %236 = vst [vmem:[%s146_s24 + $0x60] sm:$0xff] %v235_v12 }
  0x1d   : > { %v239_v14 = vld [vmem:[%s791_s23 + $0x1c00] sm:$0xff]  ;;  %238 = vst [vmem:[%s146_s24 + $0x68] sm:$0xff] %v237_v13 }
  0x1e   : > { %v241_v15 = vld [vmem:[%s791_s23 + $0x1e00] sm:$0xff]  ;;  %240 = vst [vmem:[%s146_s24 + $0x70] sm:$0xff] %v239_v14 }
  0x1f   : > { %242 = vst [vmem:[%s146_s24 + $0x78] sm:$0xff] %v241_v15 }
  0x20 PF: > { %p566_p6 = scmp.ge.s32.totalorder %s731_s13, 1  ;;  %p247_p7 = scmp.lt.s32.totalorder %s731_s13, 65 }
  0x22   : > { %p248_p8 = pnand %p566_p6, %p247_p7 }
  0x23   : > { %s254_s25 = sand.u32 (!%p248_p8), 1, %s715_s9   ;;  %s568_s30 = sshll.u32 (!%p248_p8), %s723_s11, 1 }
  0x24   : > { %251 = sbr.rel (%p248_p8) target bundleno = 210 (0xd2), region = 62  ;;  %s567_s26 = sshll.u32 (!%p248_p8), %s254_s25, 7 }
  0x25   : > { %s812_s27 = scalar_lea.vmem (!%p248_p8), [#allocation3], %s567_s26  ;;  %p298_p9 = scmp.lt.s32.totalorder (!%p248_p8), %s568_s30, 127 }
  0x29   : > { %v628_v16 = vld [vmem:[%s812_s27 + $0x70] sm:$0xf]  ;;  %v652_v17 = vld [vmem:[%s812_s27 + $0x74] sm:$0xf0]  ;;  %v651_v18 = vld [vmem:[%s812_s27 + $0x74] sm:$0xf] }
  0x2a   : > { %v629_v19 = vor.u32 %v652_v17, %v628_v16  ;;  %v630_v20 = vld [vmem:[%s812_s27 + $0x78] sm:$0xf0]  ;;  %v620_v21 = vld [vmem:[%s812_s27 + $0x60] sm:$0xf]  ;;  %v650_v22 = vld [vmem:[%s812_s27 + $0x64] sm:$0xf0] }
  0x2b   : > { %v633_v23 = vor.u32 %v651_v18, %v630_v20  ;;  %v649_v24 = vld [vmem:[%s812_s27 + $0x64] sm:$0xf]  ;;  %v622_v25 = vld [vmem:[%s812_s27 + $0x68] sm:$0xf0]  ;;  %v621_v26 = vor.u32 %v650_v22, %v620_v21  ;;  %v612_v28 = vld [vmem:[%s812_s27 + $0x50] sm:$0xf] }
  0x2c   : > { %410 = vmatpush.bf16.msra.mxu0 %v629_v19  ;;  %v625_v27 = vor.u32 %v649_v24, %v622_v25  ;;  %v648_v29 = vld [vmem:[%s812_s27 + $0x54] sm:$0xf0]  ;;  %v647_v30 = vld [vmem:[%s812_s27 + $0x54] sm:$0xf]  ;;  %v614_v31 = vld [vmem:[%s812_s27 + $0x58] sm:$0xf0] }
  0x2d   : > { %423 = vmatpush.bf16.msra.mxu1 %v633_v23  ;;  %v613_v32 = vor.u32 %v648_v29, %v612_v28  ;;  %v617_v33 = vor.u32 %v647_v30, %v614_v31  ;;  %v604_v34 = vld [vmem:[%s812_s27 + $0x40] sm:$0xf]  ;;  %v646_v35 = vld [vmem:[%s812_s27 + $0x44] sm:$0xf0]  ;;  %v645_v36 = vld [vmem:[%s812_s27 + $0x44] sm:$0xf] }
  0x2e   : > { %v606_v37 = vld [vmem:[%s812_s27 + $0x48] sm:$0xf0]  ;;  %v605_v38 = vor.u32 %v646_v35, %v604_v34  ;;  %v596_v40 = vld [vmem:[%s812_s27 + $0x30] sm:$0xf]  ;;  %v644_v41 = vld [vmem:[%s812_s27 + $0x34] sm:$0xf0] }
  0x2f   : > { %v609_v39 = vor.u32 %v645_v36, %v606_v37  ;;  %v643_v42 = vld [vmem:[%s812_s27 + $0x34] sm:$0xf]  ;;  %v598_v43 = vld [vmem:[%s812_s27 + $0x38] sm:$0xf0]  ;;  %v597_v44 = vor.u32 %v644_v41, %v596_v40  ;;  %v588_v46 = vld [vmem:[%s812_s27 + $0x20] sm:$0xf] }
  0x30   : > { %411 = vmatpush.bf16.msra.mxu0 %v621_v26  ;;  %v601_v45 = vor.u32 %v643_v42, %v598_v43  ;;  %v642_v47 = vld [vmem:[%s812_s27 + $0x24] sm:$0xf0]  ;;  %v641_v48 = vld [vmem:[%s812_s27 + $0x24] sm:$0xf]  ;;  %v590_v49 = vld [vmem:[%s812_s27 + $0x28] sm:$0xf0] }
  0x31   : > { %424 = vmatpush.bf16.msra.mxu1 %v625_v27  ;;  %v589_v50 = vor.u32 %v642_v47, %v588_v46  ;;  %v593_v51 = vor.u32 %v641_v48, %v590_v49  ;;  %v580_v52 = vld [vmem:[%s812_s27 + $0x10] sm:$0xf]  ;;  %v640_v53 = vld [vmem:[%s812_s27 + $0x14] sm:$0xf0]  ;;  %v639_v54 = vld [vmem:[%s812_s27 + $0x14] sm:$0xf] }
  0x32   : > { %v582_v55 = vld [vmem:[%s812_s27 + $0x18] sm:$0xf0]  ;;  %v581_v56 = vor.u32 %v640_v53, %v580_v52  ;;  %v572_v58 = vld [vmem:[%s812_s27] sm:$0xf]  ;;  %v638_v59 = vld [vmem:[%s812_s27 + $0x4] sm:$0xf0] }
  0x33   : > { %v585_v57 = vor.u32 %v639_v54, %v582_v55  ;;  %v637_v60 = vld [vmem:[%s812_s27 + $0x4] sm:$0xf]  ;;  %v574_v61 = vld [vmem:[%s812_s27 + $0x8] sm:$0xf0]  ;;  %v573_v62 = vor.u32 %v638_v59, %v572_v58  ;;  %v313_v0 = vld [vmem:[%s868_s0] sm:$0xf] }
  0x34   : > { %412 = vmatpush.bf16.msra.mxu0 %v613_v32  ;;  %v577_v63 = vor.u32 %v637_v60, %v574_v61  ;;  %s878_s30 = smov (!%p298_p9, %s568_s30), 127 }
  0x35   : > { %425 = vmatpush.bf16.msra.mxu1 %v617_v33  ;;  %s569_s3 = sshll.u32 %s878_s30, 2 }
  0x36   : > { %s303_s6 = scalar_lea.vmem %s870_s2, %s569_s3 }
  0x38   : > { %413 = vmatpush.bf16.msra.mxu0 %v605_v38 }
  0x39   : > { %426 = vmatpush.bf16.msra.mxu1 %v609_v39 }
  0x3c   : > { %414 = vmatpush.bf16.msra.mxu0 %v597_v44 }
  0x3d   : > { %427 = vmatpush.bf16.msra.mxu1 %v601_v45 }
  0x40   : > { %415 = vmatpush.bf16.msra.mxu0 %v589_v50 }
  0x41   : > { %428 = vmatpush.bf16.msra.mxu1 %v593_v51 }
  0x44   : > { %416 = vmatpush.bf16.msra.mxu0 %v581_v56 }
  0x45   : > { %429 = vmatpush.bf16.msra.mxu1 %v585_v57 }
  0x48   : > { %417 = vmatpush.bf16.msra.mxu0 %v573_v62 }
  0x49   : > { %430 = vmatpush.bf16.msra.mxu1 %v577_v63 }
  0x4b   : > { %418 = vmatmul.bf16.vlgmr.msra.gmra.mxu0 %v313_v0 }
  0x4c   : > { %431 = vmatmul.bf16.vlgmr.msra.gmra.mxu1 %v313_v0 }
  0xc8   : > { %v419_v1 = vpop.f32.mrf.mxu0 }
  0xc9   : > { %v432_v2 = vpop.f32.mrf.mxu1 }
  0xca   : > { %v445_v3 = vpack.c.bf16 %v432_v2, %v419_v1 }
  0xcc   : > { %446 = vst [vmem:[%s303_s6] sm:$0xff] %v445_v3 }
  0xd0   : > { %v421_v4 = vpop.f32.mrf.mxu0 }
  0xd1   : > { %v434_v5 = vpop.f32.mrf.mxu1 }
  0xd2 PF: > { %s12_s13 = sadd.s32 1, %s731_s13   ;;  %s871_s9 = smov %s719_s10 }
  0xd3   : > { %p9_p10 = scmp.ge.s32.totalorder %s12_s13, 66   ;;  %s872_s10 = smov %s783_s17 }
  0xd4   : > { %s873_s11 = smov %s727_s12  ;;  %s874_s12 = smov %s876_s14 }
  0xd5   :  { %11 = sbr.rel (!%p9_p10) target bundleno = 3 (0x3), region = 112 }

// kernel: _lambda_.12
= control target key start
LH: loop header
LB: loop body
LE: loop exit
PB: predicated region body
PF: predicated region fallthrough
CT: control target
= control target key end

     0   :  { %s2648_s0 = inlined_call_operand.vmem [shape: bf16[32,4096], index: 0, kind: input, shape index: {}]   ;;  %s2649_s1 = inlined_call_operand.vmem [shape: bf16[4096,512], index: 1, kind: input, shape index: {}]   ;;  %s2650_s2 = inlined_call_operand.vmem [shape: bf16[32,512], index: 2, kind: output, shape index: {0}]   ;;  %s2651_s3 = inlined_call_operand.vmem [shape: f32[8,512], index: 3, kind: output, shape index: {1}]   ;;  %s2652_s4 = inlined_call_operand.vmem [shape: f32[8,512], index: 4, kind: output, shape index: {2}]  }
   0x1   :  { %2656 = sst [smem:[#allocation9_spill]] %s2648_s0 }
   0x2   :  { %2657 = sst [smem:[#allocation10_spill]] %s2649_s1 }
   0x3   :  { %s2155_s15 = smov 0   ;;  %s2157_s16 = smov 0  }
   0x4   :  { %s2159_s17 = smov 0   ;;  %s2161_s18 = smov 0  }
   0x5   :  { %s2163_s19 = smov 0   ;;  %s2165_s20 = smov 0  }
   0x6   :  { %s2167_s21 = smov 0   ;;  %s2169_s22 = smov 0  }
   0x7   :  { %s2171_s23 = smov 0   ;;  %s2173_s24 = smov 0  }
   0x8   :  { %s2175_s25 = smov 0  }
   0x9 LB: > { %2658 = sst [smem:[#allocation6_spill]] %s2123_s24  ;;  %s1562_s26 = sadd.s32 4294967295, %s2127_s25   ;;  %s2127_s25 = sphi %s2175_s25, %s15_s25   ;;  %s2123_s24 = sphi %s2173_s24, %s2677_s24   ;;  %s2119_s23 = sphi %s2171_s23, %s2676_s23   ;;  %s2115_s22 = sphi %s2169_s22, %s2666_s22   ;;  %s2111_s21 = sphi %s2167_s21, %s2675_s21   ;;  %s2107_s20 = sphi %s2165_s20, %s2674_s20   ;;  %s2103_s19 = sphi %s2163_s19, %s2673_s19   ;;  %s2099_s18 = sphi %s2161_s18, %s2672_s18   ;;  %s2095_s17 = sphi %s2159_s17, %s2671_s17   ;;  %s2091_s16 = sphi %s2157_s16, %s2670_s16   ;;  %s2087_s15 = sphi %s2155_s15, %s2669_s15  }
   0xa   : > { %s27_s27 = sadd.s32 1, %s2119_s23  ;;  %s30_s28 = sadd.s32 1, %s2123_s24 }
   0xb   : > { %p28_p0 = scmp.ge.s32.totalorder %s27_s27, 8  ;;  %s43_s29 = sadd.s32 1, %s2107_s20 }
   0xc   : > { %p50_p1 = scmp.ne.s32.totalorder %s2107_s20, %s2103_s19  ;;  %p51_p2 = scmp.eq.s32.totalorder %s2127_s25, 0 }
   0xd   : > { %s2679_s27 = smov (%p28_p0, %s27_s27), 0  ;;  %s2681_s28 = smov (!%p28_p0, %s30_s28), %s2123_s24 }
   0xe   : > { %2659 = sst [smem:[#allocation7_spill]] %s2679_s27  ;;  %s39_s30 = ssub.s32 %s2119_s23, %s2679_s27 }
   0xf   : > { %p32_p3 = scmp.ge.s32.totalorder %s2681_s28, 2  ;;  %p41_p4 = scmp.eq.s32.totalorder %s39_s30, 0 }
  0x10   : > { %p2222_p5 = por %p51_p2, %p50_p1  ;;  %s71_s6 = sadd.s32 1, %s2099_s18 }
  0x11   : > { %s2683_s28 = smov (%p32_p3, %s2681_s28), 0  ;;  %p78_p6 = scmp.ne.s32.totalorder %s2099_s18, %s2095_s17 }
  0x12   : > { %2661 = sst [smem:[#allocation8_spill]] %s2683_s28  ;;  %s67_s8 = ssub.s32 %s2123_s24, %s2683_s28 }
  0x13   : > { %s2230_s7 = scalar_select %p41_p4, %s2107_s20, %s43_s29  }
  0x14   : > { %s68_s9 = sor.u32 %s67_s8, %s39_s30  ;;  %p97_p7 = scmp.eq.s32.totalorder %s67_s8, 0 }
  0x15   : > { %p69_p8 = scmp.eq.s32.totalorder %s68_s9, 0  ;;  %p2236_p9 = por %p78_p6, %p51_p2 }
  0x16   : > { %s99_s11 = sadd.s32 1, %s2091_s16  ;;  %p109_p10 = scmp.ne.s32.totalorder %s2091_s16, %s2087_s15 }
  0x17   : > { %s2244_s12 = scalar_select %p69_p8, %s2099_s18, %s71_s6  }
  0x18   : > { %s2247_s13 = scalar_select %p97_p7, %s2091_s16, %s99_s11  }
  0x19   : > { %p110_p11 = scmp.eq.s32.totalorder %s1562_s26, 15  ;;  %p1565_p13 = scmp.ge.s32.totalorder %s2127_s25, 16 }
  0x1b   : > { %p2249_p12 = por %p110_p11, %p109_p10  ;;  %188 = sbr.rel (%p1565_p13) target bundleno = 124 (0x7c), region = 16 }
  0x20   : > { %191 = sbr.rel (!%p2222_p5) target bundleno = 50 (0x32), region = 20  ;;  %s193_s29 = sand.u32 (%p2222_p5), 1, %s2107_s20  }
  0x21   : > { %s1877_s30 = sshll.u32 (%p2222_p5), %s2119_s23, 4  ;;  %s1566_s8 = sshll.u32 (%p2222_p5), %s193_s29, 6 }
  0x22   : > { %s2664_s0 = sld [smem:[#allocation9_spill]] (%p2222_p5)  ;;  %s195_s26 = scalar_lea.vmem (%p2222_p5), [#allocation3], %s1566_s8 }
  0x28   : > { %s201_s11 = scalar_lea.vmem %s2664_s0, %s1877_s30 }
  0x29   : > { %v214_v0 = vld [vmem:[%s201_s11] sm:$0xff]  ;;  %v216_v1 = vld [vmem:[%s201_s11 + $0x8] sm:$0xff] }
  0x2a   : > { %v218_v2 = vld [vmem:[%s201_s11 + $0x80] sm:$0xff]  ;;  %215 = vst [vmem:[%s195_s26] sm:$0xff] %v214_v0  ;;  %v220_v3 = vld [vmem:[%s201_s11 + $0x88] sm:$0xff] }
  0x2b   : > { %217 = vst [vmem:[%s195_s26 + $0x8] sm:$0xff] %v216_v1  ;;  %v222_v4 = vld [vmem:[%s201_s11 + $0x100] sm:$0xff]  ;;  %v224_v5 = vld [vmem:[%s201_s11 + $0x108] sm:$0xff] }
  0x2c   : > { %219 = vst [vmem:[%s195_s26 + $0x10] sm:$0xff] %v218_v2  ;;  %v226_v6 = vld [vmem:[%s201_s11 + $0x180] sm:$0xff]  ;;  %v228_v7 = vld [vmem:[%s201_s11 + $0x188] sm:$0xff] }
  0x2d   : > { %221 = vst [vmem:[%s195_s26 + $0x18] sm:$0xff] %v220_v3 }
  0x2e   : > { %223 = vst [vmem:[%s195_s26 + $0x20] sm:$0xff] %v222_v4 }
  0x2f   : > { %225 = vst [vmem:[%s195_s26 + $0x28] sm:$0xff] %v224_v5 }
  0x30   : > { %227 = vst [vmem:[%s195_s26 + $0x30] sm:$0xff] %v226_v6 }
  0x31   : > { %229 = vst [vmem:[%s195_s26 + $0x38] sm:$0xff] %v228_v7 }
  0x32 PF: > { %235 = sbr.rel (!%p2236_p9) target bundleno = 124 (0x7c), region = 43  ;;  %s237_s5 = sand.u32 (%p2236_p9), 1, %s2099_s18  }
  0x33   : > { %s1571_s29 = sshll.u32 (%p2236_p9), %s2123_s24, 1  ;;  %s1569_s30 = sshll.u32 (%p2236_p9), %s237_s5, 9 }
  0x34   : > { %s1878_s8 = sshll.u32 (%p2236_p9), %s2119_s23, 8  ;;  %s2665_s1 = sld [smem:[#allocation10_spill]] (%p2236_p9) }
  0x35   : > { %s243_s6 = sadd.s32 (%p2236_p9), %s1878_s8, %s1571_s29  ;;  %s2274_s10 = scalar_lea.vmem (%p2236_p9), [#allocation4], %s1569_s30 }
  0x36   : > { %s1573_s9 = sshll.u32 (%p2236_p9), %s243_s6, 2 }
  0x3a   : > { %s2269_s11 = scalar_lea.vmem %s2665_s1, %s1573_s9 }
  0x3b   : > { %v400_v8 = vld [vmem:[%s2269_s11] sm:$0xff]  ;;  %v402_v9 = vld [vmem:[%s2269_s11 + $0x10] sm:$0xff] }
  0x3c   : > { %v404_v10 = vld [vmem:[%s2269_s11 + $0x20] sm:$0xff]  ;;  %401 = vst [vmem:[%s2274_s10] sm:$0xff] %v400_v8  ;;  %v406_v11 = vld [vmem:[%s2269_s11 + $0x30] sm:$0xff] }
  0x3d   : > { %403 = vst [vmem:[%s2274_s10 + $0x8] sm:$0xff] %v402_v9  ;;  %v408_v12 = vld [vmem:[%s2269_s11 + $0x40] sm:$0xff]  ;;  %v410_v13 = vld [vmem:[%s2269_s11 + $0x50] sm:$0xff] }
  0x3e   : > { %405 = vst [vmem:[%s2274_s10 + $0x10] sm:$0xff] %v404_v10  ;;  %v412_v14 = vld [vmem:[%s2269_s11 + $0x60] sm:$0xff]  ;;  %v414_v15 = vld [vmem:[%s2269_s11 + $0x70] sm:$0xff] }
  0x3f   : > { %407 = vst [vmem:[%s2274_s10 + $0x18] sm:$0xff] %v406_v11  ;;  %v416_v16 = vld [vmem:[%s2269_s11 + $0x80] sm:$0xff]  ;;  %v418_v17 = vld [vmem:[%s2269_s11 + $0x90] sm:$0xff] }
  0x40   : > { %409 = vst [vmem:[%s2274_s10 + $0x20] sm:$0xff] %v408_v12  ;;  %v420_v18 = vld [vmem:[%s2269_s11 + $0xa0] sm:$0xff]  ;;  %v422_v19 = vld [vmem:[%s2269_s11 + $0xb0] sm:$0xff] }
  0x41   : > { %411 = vst [vmem:[%s2274_s10 + $0x28] sm:$0xff] %v410_v13  ;;  %v424_v20 = vld [vmem:[%s2269_s11 + $0xc0] sm:$0xff]  ;;  %v426_v21 = vld [vmem:[%s2269_s11 + $0xd0] sm:$0xff] }
  0x42   : > { %413 = vst [vmem:[%s2274_s10 + $0x30] sm:$0xff] %v412_v14  ;;  %v428_v22 = vld [vmem:[%s2269_s11 + $0xe0] sm:$0xff]  ;;  %v430_v23 = vld [vmem:[%s2269_s11 + $0xf0] sm:$0xff] }
  0x43   : > { %415 = vst [vmem:[%s2274_s10 + $0x38] sm:$0xff] %v414_v15  ;;  %v432_v24 = vld [vmem:[%s2269_s11 + $0x100] sm:$0xff]  ;;  %v434_v25 = vld [vmem:[%s2269_s11 + $0x110] sm:$0xff] }
  0x44   : > { %417 = vst [vmem:[%s2274_s10 + $0x40] sm:$0xff] %v416_v16  ;;  %v436_v26 = vld [vmem:[%s2269_s11 + $0x120] sm:$0xff]  ;;  %v438_v27 = vld [vmem:[%s2269_s11 + $0x130] sm:$0xff] }
  0x45   : > { %419 = vst [vmem:[%s2274_s10 + $0x48] sm:$0xff] %v418_v17  ;;  %v440_v28 = vld [vmem:[%s2269_s11 + $0x140] sm:$0xff]  ;;  %v442_v29 = vld [vmem:[%s2269_s11 + $0x150] sm:$0xff] }
  0x46   : > { %421 = vst [vmem:[%s2274_s10 + $0x50] sm:$0xff] %v420_v18  ;;  %v444_v30 = vld [vmem:[%s2269_s11 + $0x160] sm:$0xff]  ;;  %v446_v31 = vld [vmem:[%s2269_s11 + $0x170] sm:$0xff] }
  0x47   : > { %423 = vst [vmem:[%s2274_s10 + $0x58] sm:$0xff] %v422_v19  ;;  %v448_v32 = vld [vmem:[%s2269_s11 + $0x180] sm:$0xff]  ;;  %v450_v33 = vld [vmem:[%s2269_s11 + $0x190] sm:$0xff] }
  0x48   : > { %425 = vst [vmem:[%s2274_s10 + $0x60] sm:$0xff] %v424_v20  ;;  %v452_v34 = vld [vmem:[%s2269_s11 + $0x1a0] sm:$0xff]  ;;  %v454_v35 = vld [vmem:[%s2269_s11 + $0x1b0] sm:$0xff] }
  0x49   : > { %427 = vst [vmem:[%s2274_s10 + $0x68] sm:$0xff] %v426_v21  ;;  %v456_v36 = vld [vmem:[%s2269_s11 + $0x1c0] sm:$0xff]  ;;  %v458_v37 = vld [vmem:[%s2269_s11 + $0x1d0] sm:$0xff] }
  0x4a   : > { %429 = vst [vmem:[%s2274_s10 + $0x70] sm:$0xff] %v428_v22  ;;  %v460_v38 = vld [vmem:[%s2269_s11 + $0x1e0] sm:$0xff]  ;;  %v462_v39 = vld [vmem:[%s2269_s11 + $0x1f0] sm:$0xff] }
  0x4b   : > { %431 = vst [vmem:[%s2274_s10 + $0x78] sm:$0xff] %v430_v23  ;;  %v464_v40 = vld [vmem:[%s2269_s11 + $0x200] sm:$0xff]  ;;  %v466_v41 = vld [vmem:[%s2269_s11 + $0x210] sm:$0xff] }
  0x4c   : > { %433 = vst [vmem:[%s2274_s10 + $0x80] sm:$0xff] %v432_v24  ;;  %v468_v42 = vld [vmem:[%s2269_s11 + $0x220] sm:$0xff]  ;;  %v470_v43 = vld [vmem:[%s2269_s11 + $0x230] sm:$0xff] }
  0x4d   : > { %435 = vst [vmem:[%s2274_s10 + $0x88] sm:$0xff] %v434_v25  ;;  %v472_v44 = vld [vmem:[%s2269_s11 + $0x240] sm:$0xff]  ;;  %v474_v45 = vld [vmem:[%s2269_s11 + $0x250] sm:$0xff] }
  0x4e   : > { %437 = vst [vmem:[%s2274_s10 + $0x90] sm:$0xff] %v436_v26  ;;  %v476_v46 = vld [vmem:[%s2269_s11 + $0x260] sm:$0xff]  ;;  %v478_v47 = vld [vmem:[%s2269_s11 + $0x270] sm:$0xff] }
  0x4f   : > { %439 = vst [vmem:[%s2274_s10 + $0x98] sm:$0xff] %v438_v27  ;;  %v480_v48 = vld [vmem:[%s2269_s11 + $0x280] sm:$0xff]  ;;  %v482_v49 = vld [vmem:[%s2269_s11 + $0x290] sm:$0xff] }
  0x50   : > { %441 = vst [vmem:[%s2274_s10 + $0xa0] sm:$0xff] %v440_v28  ;;  %v484_v50 = vld [vmem:[%s2269_s11 + $0x2a0] sm:$0xff]  ;;  %v486_v51 = vld [vmem:[%s2269_s11 + $0x2b0] sm:$0xff] }
  0x51   : > { %443 = vst [vmem:[%s2274_s10 + $0xa8] sm:$0xff] %v442_v29  ;;  %v488_v52 = vld [vmem:[%s2269_s11 + $0x2c0] sm:$0xff]  ;;  %v490_v53 = vld [vmem:[%s2269_s11 + $0x2d0] sm:$0xff] }
  0x52   : > { %445 = vst [vmem:[%s2274_s10 + $0xb0] sm:$0xff] %v444_v30  ;;  %v492_v54 = vld [vmem:[%s2269_s11 + $0x2e0] sm:$0xff]  ;;  %v494_v55 = vld [vmem:[%s2269_s11 + $0x2f0] sm:$0xff] }
  0x53   : > { %447 = vst [vmem:[%s2274_s10 + $0xb8] sm:$0xff] %v446_v31  ;;  %v496_v56 = vld [vmem:[%s2269_s11 + $0x300] sm:$0xff]  ;;  %v498_v57 = vld [vmem:[%s2269_s11 + $0x310] sm:$0xff] }
  0x54   : > { %449 = vst [vmem:[%s2274_s10 + $0xc0] sm:$0xff] %v448_v32  ;;  %v500_v58 = vld [vmem:[%s2269_s11 + $0x320] sm:$0xff]  ;;  %v502_v59 = vld [vmem:[%s2269_s11 + $0x330] sm:$0xff] }
  0x55   : > { %451 = vst [vmem:[%s2274_s10 + $0xc8] sm:$0xff] %v450_v33  ;;  %v504_v60 = vld [vmem:[%s2269_s11 + $0x340] sm:$0xff]  ;;  %v506_v61 = vld [vmem:[%s2269_s11 + $0x350] sm:$0xff] }
  0x56   : > { %453 = vst [vmem:[%s2274_s10 + $0xd0] sm:$0xff] %v452_v34  ;;  %v508_v62 = vld [vmem:[%s2269_s11 + $0x360] sm:$0xff]  ;;  %v510_v63 = vld [vmem:[%s2269_s11 + $0x370] sm:$0xff] }
  0x57   : > { %455 = vst [vmem:[%s2274_s10 + $0xd8] sm:$0xff] %v454_v35  ;;  %v512_v0 = vld [vmem:[%s2269_s11 + $0x380] sm:$0xff]  ;;  %v514_v1 = vld [vmem:[%s2269_s11 + $0x390] sm:$0xff] }
  0x58   : > { %457 = vst [vmem:[%s2274_s10 + $0xe0] sm:$0xff] %v456_v36  ;;  %v516_v2 = vld [vmem:[%s2269_s11 + $0x3a0] sm:$0xff]  ;;  %v518_v3 = vld [vmem:[%s2269_s11 + $0x3b0] sm:$0xff] }
  0x59   : > { %459 = vst [vmem:[%s2274_s10 + $0xe8] sm:$0xff] %v458_v37  ;;  %v520_v4 = vld [vmem:[%s2269_s11 + $0x3c0] sm:$0xff]  ;;  %v522_v5 = vld [vmem:[%s2269_s11 + $0x3d0] sm:$0xff] }
  0x5a   : > { %461 = vst [vmem:[%s2274_s10 + $0xf0] sm:$0xff] %v460_v38  ;;  %v524_v6 = vld [vmem:[%s2269_s11 + $0x3e0] sm:$0xff]  ;;  %v526_v7 = vld [vmem:[%s2269_s11 + $0x3f0] sm:$0xff] }
  0x5b   : > { %463 = vst [vmem:[%s2274_s10 + $0xf8] sm:$0xff] %v462_v39 }
  0x5c   : > { %465 = vst [vmem:[%s2274_s10 + $0x100] sm:$0xff] %v464_v40 }
  0x5d   : > { %467 = vst [vmem:[%s2274_s10 + $0x108] sm:$0xff] %v466_v41 }
  0x5e   : > { %469 = vst [vmem:[%s2274_s10 + $0x110] sm:$0xff] %v468_v42 }
  0x5f   : > { %471 = vst [vmem:[%s2274_s10 + $0x118] sm:$0xff] %v470_v43 }
  0x60   : > { %473 = vst [vmem:[%s2274_s10 + $0x120] sm:$0xff] %v472_v44 }
  0x61   : > { %475 = vst [vmem:[%s2274_s10 + $0x128] sm:$0xff] %v474_v45 }
  0x62   : > { %477 = vst [vmem:[%s2274_s10 + $0x130] sm:$0xff] %v476_v46 }
  0x63   : > { %479 = vst [vmem:[%s2274_s10 + $0x138] sm:$0xff] %v478_v47 }
  0x64   : > { %481 = vst [vmem:[%s2274_s10 + $0x140] sm:$0xff] %v480_v48 }
  0x65   : > { %483 = vst [vmem:[%s2274_s10 + $0x148] sm:$0xff] %v482_v49 }
  0x66   : > { %485 = vst [vmem:[%s2274_s10 + $0x150] sm:$0xff] %v484_v50 }
  0x67   : > { %487 = vst [vmem:[%s2274_s10 + $0x158] sm:$0xff] %v486_v51 }
  0x68   : > { %489 = vst [vmem:[%s2274_s10 + $0x160] sm:$0xff] %v488_v52 }
  0x69   : > { %491 = vst [vmem:[%s2274_s10 + $0x168] sm:$0xff] %v490_v53 }
  0x6a   : > { %493 = vst [vmem:[%s2274_s10 + $0x170] sm:$0xff] %v492_v54 }
  0x6b   : > { %495 = vst [vmem:[%s2274_s10 + $0x178] sm:$0xff] %v494_v55 }
  0x6c   : > { %497 = vst [vmem:[%s2274_s10 + $0x180] sm:$0xff] %v496_v56 }
  0x6d   : > { %499 = vst [vmem:[%s2274_s10 + $0x188] sm:$0xff] %v498_v57 }
  0x6e   : > { %501 = vst [vmem:[%s2274_s10 + $0x190] sm:$0xff] %v500_v58 }
  0x6f   : > { %503 = vst [vmem:[%s2274_s10 + $0x198] sm:$0xff] %v502_v59 }
  0x70   : > { %505 = vst [vmem:[%s2274_s10 + $0x1a0] sm:$0xff] %v504_v60 }
  0x71   : > { %507 = vst [vmem:[%s2274_s10 + $0x1a8] sm:$0xff] %v506_v61 }
  0x72   : > { %509 = vst [vmem:[%s2274_s10 + $0x1b0] sm:$0xff] %v508_v62 }
  0x73   : > { %511 = vst [vmem:[%s2274_s10 + $0x1b8] sm:$0xff] %v510_v63 }
  0x74   : > { %513 = vst [vmem:[%s2274_s10 + $0x1c0] sm:$0xff] %v512_v0 }
  0x75   : > { %515 = vst [vmem:[%s2274_s10 + $0x1c8] sm:$0xff] %v514_v1 }
  0x76   : > { %517 = vst [vmem:[%s2274_s10 + $0x1d0] sm:$0xff] %v516_v2 }
  0x77   : > { %519 = vst [vmem:[%s2274_s10 + $0x1d8] sm:$0xff] %v518_v3 }
  0x78   : > { %521 = vst [vmem:[%s2274_s10 + $0x1e0] sm:$0xff] %v520_v4 }
  0x79   : > { %523 = vst [vmem:[%s2274_s10 + $0x1e8] sm:$0xff] %v522_v5 }
  0x7a   : > { %525 = vst [vmem:[%s2274_s10 + $0x1f0] sm:$0xff] %v524_v6 }
  0x7b   : > { %527 = vst [vmem:[%s2274_s10 + $0x1f8] sm:$0xff] %v526_v7 }
  0x7c PF: > { %p1574_p0 = scmp.ge.s32.totalorder %s2127_s25, 1  ;;  %p532_p1 = scmp.lt.s32.totalorder %s2127_s25, 17 }
  0x7e   : > { %p533_p2 = pnand %p1574_p0, %p532_p1 }
  0x7f   : > { %s539_s0 = sand.u32 (!%p533_p2), 1, %s2103_s19   ;;  %s546_s28 = sand.u32 (!%p533_p2), 1, %s2095_s17  }
  0x80   : > { %536 = sbr.rel (%p533_p2) target bundleno = 412 (0x19c), region = 81  ;;  %s1575_s26 = sshll.u32 (!%p533_p2), %s539_s0, 6 }
  0x81   : > { %s1576_s5 = sshll.u32 (!%p533_p2), %s546_s28, 9  ;;  %s567_s29 = sand.u32 (!%p533_p2), 1, %s2087_s15  }
  0x82   : > { %s1578_s30 = sshll.u32 (!%p533_p2), %s2115_s22, 1  ;;  %s1577_s8 = sshll.u32 (!%p533_p2), %s567_s29, 5 }
  0x83   : > { %p601_p3 = scmp.lt.s32.totalorder (!%p533_p2), %s1578_s30, 3  ;;  %s2417_s19 = scalar_lea.vmem (!%p533_p2), [#allocation3], %s1575_s26 }
  0x84   : > { %s2419_s17 = scalar_lea.vmem (!%p533_p2), [#allocation4], %s1576_s5  ;;  %s2421_s15 = scalar_lea.vmem (!%p533_p2), [#allocation5], %s1577_s8 }
  0x85   : > { %s2685_s30 = smov (!%p601_p3, %s1578_s30), 3  ;;  %p1582_p4 = scmp.ne.s32.totalorder %s2111_s21, 0 }
  0x86   : > { %s1579_s6 = sshll.u32 %s2685_s30, 3 }
  0x87   : > { %s2410_s10 = scalar_lea.vmem %s2651_s3, %s1579_s6  ;;  %s2415_s24 = scalar_lea.vmem %s2652_s4, %s1579_s6 }
  0x88   : > { %621 = sbr.rel (%p1582_p4) target bundleno = 150 (0x96), region = 93 }
  0x8d   : > { %v2129_v8 = vmov 0.0  }
  0x8e   : > { %622 = vst [vmem:[#allocation2 + $0x30] sm:$0xff] %v2129_v8 }
  0x8f   : > { %623 = vst [vmem:[#allocation2] sm:$0xff] %v2129_v8 }
  0x90   : > { %624 = vst [vmem:[#allocation2 + $0x18] sm:$0xff] %v2129_v8 }
  0x91   : > { %625 = vst [vmem:[#allocation2 + $0x10] sm:$0xff] %v2129_v8 }
  0x92   : > { %626 = vst [vmem:[#allocation2 + $0x8] sm:$0xff] %v2129_v8 }
  0x93   : > { %627 = vst [vmem:[#allocation2 + $0x20] sm:$0xff] %v2129_v8 }
  0x94   : > { %628 = vst [vmem:[#allocation2 + $0x28] sm:$0xff] %v2129_v8 }
  0x95   : > { %629 = vst [vmem:[#allocation2 + $0x38] sm:$0xff] %v2129_v8 }
  0x96 PF: > { %v1673_v9 = vld [vmem:[%s2419_s17 + $0x70] sm:$0xf]  ;;  %v1902_v10 = vld [vmem:[%s2419_s17 + $0x74] sm:$0xf0]  ;;  %v1665_v20 = vld [vmem:[%s2419_s17 + $0x60] sm:$0xf] }
  0x97   : > { %v1737_v11 = vld [vmem:[%s2419_s17 + $0xf0] sm:$0xf]  ;;  %v1674_v12 = vor.u32 %v1902_v10, %v1673_v9  ;;  %v1918_v13 = vld [vmem:[%s2419_s17 + $0xf4] sm:$0xf0]  ;;  %v1900_v22 = vld [vmem:[%s2419_s17 + $0x64] sm:$0xf0] }
  0x98   : > { %v1801_v14 = vld [vmem:[%s2419_s17 + $0x170] sm:$0xf]  ;;  %v1934_v15 = vld [vmem:[%s2419_s17 + $0x174] sm:$0xf0]  ;;  %v1738_v16 = vor.u32 %v1918_v13, %v1737_v11  ;;  %v1729_v23 = vld [vmem:[%s2419_s17 + $0xe0] sm:$0xf]  ;;  %v1666_v25 = vor.u32 %v1900_v22, %v1665_v20 }
  0x99   : > { %v1802_v17 = vor.u32 %v1934_v15, %v1801_v14  ;;  %v1865_v18 = vld [vmem:[%s2419_s17 + $0x1f0] sm:$0xf]  ;;  %v1950_v19 = vld [vmem:[%s2419_s17 + $0x1f4] sm:$0xf0]  ;;  %1070 = vmatpush.bf16.msra.mxu0 %v1674_v12  ;;  %v1916_v24 = vld [vmem:[%s2419_s17 + $0xe4] sm:$0xf0] }
  0x9a   : > { %v1866_v21 = vor.u32 %v1950_v19, %v1865_v18  ;;  %1089 = vmatpush.bf16.msra.mxu1 %v1738_v16  ;;  %v1730_v26 = vor.u32 %v1916_v24, %v1729_v23  ;;  %v1793_v27 = vld [vmem:[%s2419_s17 + $0x160] sm:$0xf]  ;;  %v1932_v28 = vld [vmem:[%s2419_s17 + $0x164] sm:$0xf0]  ;;  %v1657_v32 = vld [vmem:[%s2419_s17 + $0x50] sm:$0xf] }
  0x9b   : > { %1108 = vmatpush.bf16.msra.mxu2 %v1802_v17  ;;  %v1857_v29 = vld [vmem:[%s2419_s17 + $0x1e0] sm:$0xf]  ;;  %v1794_v30 = vor.u32 %v1932_v28, %v1793_v27  ;;  %v1948_v31 = vld [vmem:[%s2419_s17 + $0x1e4] sm:$0xf0]  ;;  %v1898_v33 = vld [vmem:[%s2419_s17 + $0x54] sm:$0xf0] }
  0x9c   : > { %1127 = vmatpush.bf16.msra.mxu3 %v1866_v21  ;;  %v1858_v34 = vor.u32 %v1948_v31, %v1857_v29  ;;  %v1721_v35 = vld [vmem:[%s2419_s17 + $0xd0] sm:$0xf]  ;;  %v1914_v36 = vld [vmem:[%s2419_s17 + $0xd4] sm:$0xf0]  ;;  %v1658_v38 = vor.u32 %v1898_v33, %v1657_v32  ;;  %v1649_v44 = vld [vmem:[%s2419_s17 + $0x40] sm:$0xf] }
  0x9d   : > { %v1785_v37 = vld [vmem:[%s2419_s17 + $0x150] sm:$0xf]  ;;  %1071 = vmatpush.bf16.msra.mxu0 %v1666_v25  ;;  %v1930_v39 = vld [vmem:[%s2419_s17 + $0x154] sm:$0xf0]  ;;  %v1722_v42 = vor.u32 %v1914_v36, %v1721_v35  ;;  %v1896_v45 = vld [vmem:[%s2419_s17 + $0x44] sm:$0xf0] }
  0x9e   : > { %v1849_v40 = vld [vmem:[%s2419_s17 + $0x1d0] sm:$0xf]  ;;  %v1946_v41 = vld [vmem:[%s2419_s17 + $0x1d4] sm:$0xf0]  ;;  %1090 = vmatpush.bf16.msra.mxu1 %v1730_v26  ;;  %v1786_v43 = vor.u32 %v1930_v39, %v1785_v37  ;;  %v1713_v46 = vld [vmem:[%s2419_s17 + $0xc0] sm:$0xf]  ;;  %v1650_v53 = vor.u32 %v1896_v45, %v1649_v44 }
  0x9f   : > { %1109 = vmatpush.bf16.msra.mxu2 %v1794_v30  ;;  %v1850_v47 = vor.u32 %v1946_v41, %v1849_v40  ;;  %v1912_v48 = vld [vmem:[%s2419_s17 + $0xc4] sm:$0xf0]  ;;  %v1777_v49 = vld [vmem:[%s2419_s17 + $0x140] sm:$0xf]  ;;  %v1641_v56 = vld [vmem:[%s2419_s17 + $0x30] sm:$0xf] }
  0xa0   : > { %1128 = vmatpush.bf16.msra.mxu3 %v1858_v34  ;;  %v1928_v50 = vld [vmem:[%s2419_s17 + $0x144] sm:$0xf0]  ;;  %v1841_v51 = vld [vmem:[%s2419_s17 + $0x1c0] sm:$0xf]  ;;  %v1714_v54 = vor.u32 %v1912_v48, %v1713_v46  ;;  %v1894_v57 = vld [vmem:[%s2419_s17 + $0x34] sm:$0xf0] }
  0xa1   : > { %v1944_v52 = vld [vmem:[%s2419_s17 + $0x1c4] sm:$0xf0]  ;;  %1072 = vmatpush.bf16.msra.mxu0 %v1658_v38  ;;  %v1778_v55 = vor.u32 %v1928_v50, %v1777_v49  ;;  %v1705_v58 = vld [vmem:[%s2419_s17 + $0xb0] sm:$0xf]  ;;  %v1910_v60 = vld [vmem:[%s2419_s17 + $0xb4] sm:$0xf0]  ;;  %v1642_v1 = vor.u32 %v1894_v57, %v1641_v56 }
  0xa2   : > { %1091 = vmatpush.bf16.msra.mxu1 %v1722_v42  ;;  %v1842_v59 = vor.u32 %v1944_v52, %v1841_v51  ;;  %v1769_v61 = vld [vmem:[%s2419_s17 + $0x130] sm:$0xf]  ;;  %v1926_v62 = vld [vmem:[%s2419_s17 + $0x134] sm:$0xf0]  ;;  %v1706_v2 = vor.u32 %v1910_v60, %v1705_v58  ;;  %v1633_v4 = vld [vmem:[%s2419_s17 + $0x20] sm:$0xf] }
  0xa3   : > { %1110 = vmatpush.bf16.msra.mxu2 %v1786_v43  ;;  %v1833_v63 = vld [vmem:[%s2419_s17 + $0x1b0] sm:$0xf]  ;;  %v1942_v0 = vld [vmem:[%s2419_s17 + $0x1b4] sm:$0xf0]  ;;  %v1770_v3 = vor.u32 %v1926_v62, %v1769_v61  ;;  %v1892_v5 = vld [vmem:[%s2419_s17 + $0x24] sm:$0xf0] }
  0xa4   : > { %1129 = vmatpush.bf16.msra.mxu3 %v1850_v47  ;;  %v1697_v6 = vld [vmem:[%s2419_s17 + $0xa0] sm:$0xf]  ;;  %v1834_v7 = vor.u32 %v1942_v0, %v1833_v63  ;;  %v1908_v8 = vld [vmem:[%s2419_s17 + $0xa4] sm:$0xf0]  ;;  %v1634_v13 = vor.u32 %v1892_v5, %v1633_v4  ;;  %v1625_v16 = vld [vmem:[%s2419_s17 + $0x10] sm:$0xf] }
  0xa5   : > { %1073 = vmatpush.bf16.msra.mxu0 %v1650_v53  ;;  %v1761_v9 = vld [vmem:[%s2419_s17 + $0x120] sm:$0xf]  ;;  %v1924_v10 = vld [vmem:[%s2419_s17 + $0x124] sm:$0xf0]  ;;  %v1698_v14 = vor.u32 %v1908_v8, %v1697_v6  ;;  %v1890_v17 = vld [vmem:[%s2419_s17 + $0x14] sm:$0xf0] }
  0xa6   : > { %1092 = vmatpush.bf16.msra.mxu1 %v1714_v54  ;;  %v1825_v11 = vld [vmem:[%s2419_s17 + $0x1a0] sm:$0xf]  ;;  %v1940_v12 = vld [vmem:[%s2419_s17 + $0x1a4] sm:$0xf0]  ;;  %v1762_v15 = vor.u32 %v1924_v10, %v1761_v9  ;;  %v1689_v18 = vld [vmem:[%s2419_s17 + $0x90] sm:$0xf]  ;;  %v1626_v26 = vor.u32 %v1890_v17, %v1625_v16 }
  0xa7   : > { %1111 = vmatpush.bf16.msra.mxu2 %v1778_v55  ;;  %v1826_v19 = vor.u32 %v1940_v12, %v1825_v11  ;;  %v1906_v20 = vld [vmem:[%s2419_s17 + $0x94] sm:$0xf0]  ;;  %v1753_v21 = vld [vmem:[%s2419_s17 + $0x110] sm:$0xf]  ;;  %v1617_v25 = vld [vmem:[%s2419_s17] sm:$0xf] }
  0xa8   : > { %1130 = vmatpush.bf16.msra.mxu3 %v1842_v59  ;;  %v1922_v22 = vld [vmem:[%s2419_s17 + $0x114] sm:$0xf0]  ;;  %v1817_v23 = vld [vmem:[%s2419_s17 + $0x190] sm:$0xf]  ;;  %v1888_v27 = vld [vmem:[%s2419_s17 + $0x4] sm:$0xf0]  ;;  %v1690_v30 = vor.u32 %v1906_v20, %v1689_v18 }
  0xa9   : > { %1074 = vmatpush.bf16.msra.mxu0 %v1642_v1  ;;  %v1938_v24 = vld [vmem:[%s2419_s17 + $0x194] sm:$0xf0]  ;;  %v1681_v28 = vld [vmem:[%s2419_s17 + $0x80] sm:$0xf]  ;;  %v1904_v29 = vld [vmem:[%s2419_s17 + $0x84] sm:$0xf0]  ;;  %v1754_v31 = vor.u32 %v1922_v22, %v1753_v21  ;;  %v1618_v43 = vor.u32 %v1888_v27, %v1617_v25 }
  0xaa   : > { %1093 = vmatpush.bf16.msra.mxu1 %v1706_v2  ;;  %v1745_v32 = vld [vmem:[%s2419_s17 + $0x100] sm:$0xf]  ;;  %v1920_v33 = vld [vmem:[%s2419_s17 + $0x104] sm:$0xf0]  ;;  %v1818_v35 = vor.u32 %v1938_v24, %v1817_v23  ;;  %v1881_v38 = vld [vmem:[%s2417_s19 + $0xc] sm:$0xf0]  ;;  %v1682_v47 = vor.u32 %v1904_v29, %v1681_v28 }
  0xab   : > { %1112 = vmatpush.bf16.msra.mxu2 %v1770_v3  ;;  %v1809_v34 = vld [vmem:[%s2419_s17 + $0x180] sm:$0xf]  ;;  %v1936_v36 = vld [vmem:[%s2419_s17 + $0x184] sm:$0xf0]  ;;  %v1879_v39 = vld [vmem:[%s2417_s19 + $0x4] sm:$0xf]  ;;  %v1746_v48 = vor.u32 %v1920_v33, %v1745_v32 }
  0xac   : > { %1131 = vmatpush.bf16.msra.mxu3 %v1834_v7  ;;  %v1585_v37 = vld [vmem:[%s2417_s19] sm:$0xf]  ;;  %v1587_v40 = vld [vmem:[%s2417_s19 + $0x10] sm:$0xf0]  ;;  %v1803_v42 = vld [vmem:[%s2419_s17 + $0x178] sm:$0xf0]  ;;  %v1810_v52 = vor.u32 %v1936_v36, %v1809_v34 }
  0xad   : > { %1075 = vmatpush.bf16.msra.mxu0 %v1634_v13  ;;  %v1933_v41 = vld [vmem:[%s2419_s17 + $0x174] sm:$0xf]  ;;  %v1593_v44 = vld [vmem:[%s2417_s19 + $0x8] sm:$0xf]  ;;  %v1739_v46 = vld [vmem:[%s2419_s17 + $0xf8] sm:$0xf0]  ;;  %v2503_v57 = vor.u32 %v1881_v38, %v1585_v37  ;;  %v2508_v62 = vor.u32 %v1879_v39, %v1587_v40 }
  0xae   : > { %1094 = vmatpush.bf16.msra.mxu1 %v1698_v14  ;;  %v1917_v45 = vld [vmem:[%s2419_s17 + $0xf4] sm:$0xf]  ;;  %v1882_v49 = vld [vmem:[%s2417_s19 + $0x14] sm:$0xf0]  ;;  %v1880_v50 = vld [vmem:[%s2417_s19 + $0xc] sm:$0xf]  ;;  %v1806_v53 = vor.u32 %v1933_v41, %v1803_v42 }
  0xaf   : > { %1113 = vmatpush.bf16.msra.mxu2 %v1762_v15  ;;  %v1595_v51 = vld [vmem:[%s2417_s19 + $0x18] sm:$0xf0]  ;;  %v1901_v54 = vld [vmem:[%s2419_s17 + $0x74] sm:$0xf]  ;;  %v1742_v58 = vor.u32 %v1917_v45, %v1739_v46  ;;  %v1931_v60 = vld [vmem:[%s2419_s17 + $0x164] sm:$0xf]  ;;  %v2510_v63 = vor.u32 %v1882_v49, %v1593_v44 }
  0xb0   : > { %1132 = vmatpush.bf16.msra.mxu3 %v1826_v19  ;;  %v1675_v55 = vld [vmem:[%s2419_s17 + $0x78] sm:$0xf0]  ;;  %v1949_v56 = vld [vmem:[%s2419_s17 + $0x1f4] sm:$0xf]  ;;  %v1795_v61 = vld [vmem:[%s2419_s17 + $0x168] sm:$0xf0]  ;;  %v2514_v2 = vor.u32 %v1880_v50, %v1595_v51 }
  0xb1   : > { %1076 = vmatpush.bf16.msra.mxu0 %v1626_v26  ;;  %v1867_v59 = vld [vmem:[%s2419_s17 + $0x1f8] sm:$0xf0]  ;;  %v1915_v0 = vld [vmem:[%s2419_s17 + $0xe4] sm:$0xf]  ;;  %v1731_v1 = vld [vmem:[%s2419_s17 + $0xe8] sm:$0xf0]  ;;  %v1678_v3 = vor.u32 %v1901_v54, %v1675_v55  ;;  %v1798_v5 = vor.u32 %v1931_v60, %v1795_v61 }
  0xb2   : > { %1095 = vmatpush.bf16.msra.mxu1 %v1690_v30  ;;  %v1870_v4 = vor.u32 %v1949_v56, %v1867_v59  ;;  %v1899_v6 = vld [vmem:[%s2419_s17 + $0x64] sm:$0xf]  ;;  %v1667_v7 = vld [vmem:[%s2419_s17 + $0x68] sm:$0xf0]  ;;  %v1734_v9 = vor.u32 %v1915_v0, %v1731_v1  ;;  %v1929_v11 = vld [vmem:[%s2419_s17 + $0x154] sm:$0xf] }
  0xb3   : > { %1114 = vmatpush.bf16.msra.mxu2 %v1754_v31  ;;  %v1947_v8 = vld [vmem:[%s2419_s17 + $0x1e4] sm:$0xf]  ;;  %v1859_v10 = vld [vmem:[%s2419_s17 + $0x1e8] sm:$0xf0]  ;;  %v1787_v12 = vld [vmem:[%s2419_s17 + $0x158] sm:$0xf0]  ;;  %v1670_v15 = vor.u32 %v1899_v6, %v1667_v7 }
  0xb4   : > { %1133 = vmatpush.bf16.msra.mxu3 %v1818_v35  ;;  %v1913_v13 = vld [vmem:[%s2419_s17 + $0xd4] sm:$0xf]  ;;  %v1723_v14 = vld [vmem:[%s2419_s17 + $0xd8] sm:$0xf0]  ;;  %v1862_v16 = vor.u32 %v1947_v8, %v1859_v10  ;;  %v1790_v17 = vor.u32 %v1929_v11, %v1787_v12  ;;  %v1927_v23 = vld [vmem:[%s2419_s17 + $0x144] sm:$0xf] }
  0xb5   : > { %1077 = vmatpush.bf16.msra.mxu0 %v1618_v43  ;;  %v1897_v18 = vld [vmem:[%s2419_s17 + $0x54] sm:$0xf]  ;;  %v1659_v19 = vld [vmem:[%s2419_s17 + $0x58] sm:$0xf0]  ;;  %v1726_v21 = vor.u32 %v1913_v13, %v1723_v14  ;;  %v1779_v24 = vld [vmem:[%s2419_s17 + $0x148] sm:$0xf0] }
  0xb6   : > { %1096 = vmatpush.bf16.msra.mxu1 %v1682_v47  ;;  %v1945_v20 = vld [vmem:[%s2419_s17 + $0x1d4] sm:$0xf]  ;;  %v1851_v22 = vld [vmem:[%s2419_s17 + $0x1d8] sm:$0xf0]  ;;  %v1911_v25 = vld [vmem:[%s2419_s17 + $0xc4] sm:$0xf]  ;;  %v1662_v27 = vor.u32 %v1897_v18, %v1659_v19  ;;  %v1782_v32 = vor.u32 %v1927_v23, %v1779_v24 }
  0xb7   : > { %1115 = vmatpush.bf16.msra.mxu2 %v1746_v48  ;;  %v1715_v26 = vld [vmem:[%s2419_s17 + $0xc8] sm:$0xf0]  ;;  %v1895_v28 = vld [vmem:[%s2419_s17 + $0x44] sm:$0xf]  ;;  %v1854_v31 = vor.u32 %v1945_v20, %v1851_v22  ;;  %v1601_v34 = vld [vmem:[%s2417_s19 + $0x20] sm:$0xf] }
  0xb8   : > { %1134 = vmatpush.bf16.msra.mxu3 %v1810_v52  ;;  %1078 = vmatmul.bf16.vlgmr.msra.gmra.mxu0 %v2503_v57  ;;  %v1651_v29 = vld [vmem:[%s2419_s17 + $0x48] sm:$0xf0]  ;;  %v1943_v30 = vld [vmem:[%s2419_s17 + $0x1c4] sm:$0xf]  ;;  %v1885_v35 = vld [vmem:[%s2417_s19 + $0x2c] sm:$0xf0]  ;;  %v1718_v36 = vor.u32 %v1911_v25, %v1715_v26 }
  0xb9   : > { %1097 = vmatmul.bf16.vlgmr.msra.gmra.mxu1 %v2508_v62  ;;  %1146 = vmatpush.bf16.msrb.mxu0 %v1678_v3  ;;  %v1843_v33 = vld [vmem:[%s2419_s17 + $0x1c8] sm:$0xf0]  ;;  %v1883_v37 = vld [vmem:[%s2417_s19 + $0x24] sm:$0xf]  ;;  %v1603_v38 = vld [vmem:[%s2417_s19 + $0x30] sm:$0xf0]  ;;  %v1654_v44 = vor.u32 %v1895_v28, %v1651_v29 }
  0xba   : > { %1165 = vmatpush.bf16.msrb.mxu1 %v1742_v58  ;;  %1116 = vmatmul.bf16.vlgmr.msra.gmra.mxu2 %v2510_v63  ;;  %v1925_v39 = vld [vmem:[%s2419_s17 + $0x134] sm:$0xf]  ;;  %v1771_v40 = vld [vmem:[%s2419_s17 + $0x138] sm:$0xf0]  ;;  %v1609_v41 = vld [vmem:[%s2417_s19 + $0x28] sm:$0xf]  ;;  %v1846_v48 = vor.u32 %v1943_v30, %v1843_v33  ;;  %v2560_v59 = vor.u32 %v1883_v37, %v1603_v38 }
  0xbb   : > { %1184 = vmatpush.bf16.msrb.mxu2 %v1806_v53  ;;  %1135 = vmatmul.bf16.vlgmr.msra.gmra.mxu3 %v2514_v2  ;;  %v1909_v42 = vld [vmem:[%s2419_s17 + $0xb4] sm:$0xf]  ;;  %v1707_v43 = vld [vmem:[%s2419_s17 + $0xb8] sm:$0xf0]  ;;  %v1886_v45 = vld [vmem:[%s2417_s19 + $0x34] sm:$0xf0]  ;;  %v1774_v49 = vor.u32 %v1925_v39, %v1771_v40  ;;  %v2555_v53 = vor.u32 %v1885_v35, %v1601_v34 }
  0xbc   : > { %1203 = vmatpush.bf16.msrb.mxu3 %v1870_v4  ;;  %v1884_v46 = vld [vmem:[%s2417_s19 + $0x2c] sm:$0xf]  ;;  %v1611_v47 = vld [vmem:[%s2417_s19 + $0x38] sm:$0xf0]  ;;  %v1893_v50 = vld [vmem:[%s2419_s17 + $0x34] sm:$0xf]  ;;  %v1710_v54 = vor.u32 %v1909_v42, %v1707_v43  ;;  %v2562_v60 = vor.u32 %v1886_v45, %v1609_v41 }
  0xbd   : > { %1147 = vmatpush.bf16.msrb.mxu0 %v1670_v15  ;;  %v1643_v51 = vld [vmem:[%s2419_s17 + $0x38] sm:$0xf0]  ;;  %v1941_v52 = vld [vmem:[%s2419_s17 + $0x1b4] sm:$0xf]  ;;  %v1923_v56 = vld [vmem:[%s2419_s17 + $0x124] sm:$0xf]  ;;  %v1614_v1 = vor.u32 %v1884_v46, %v1611_v47 }
  0xbe   : > { %1166 = vmatpush.bf16.msrb.mxu1 %v1734_v9  ;;  %v1835_v55 = vld [vmem:[%s2419_s17 + $0x1b8] sm:$0xf0]  ;;  %v1763_v58 = vld [vmem:[%s2419_s17 + $0x128] sm:$0xf0]  ;;  %v1907_v61 = vld [vmem:[%s2419_s17 + $0xa4] sm:$0xf]  ;;  %v1646_v3 = vor.u32 %v1893_v50, %v1643_v51 }
  0xbf   : > { %1185 = vmatpush.bf16.msrb.mxu2 %v1798_v5  ;;  %v1699_v0 = vld [vmem:[%s2419_s17 + $0xa8] sm:$0xf0]  ;;  %v1838_v4 = vor.u32 %v1941_v52, %v1835_v55  ;;  %v1766_v5 = vor.u32 %v1923_v56, %v1763_v58  ;;  %v1891_v6 = vld [vmem:[%s2419_s17 + $0x24] sm:$0xf]  ;;  %v1921_v11 = vld [vmem:[%s2419_s17 + $0x114] sm:$0xf] }
  0xc0   : > { %1204 = vmatpush.bf16.msrb.mxu3 %v1862_v16  ;;  %v1635_v7 = vld [vmem:[%s2419_s17 + $0x28] sm:$0xf0]  ;;  %v1939_v8 = vld [vmem:[%s2419_s17 + $0x1a4] sm:$0xf]  ;;  %v1702_v9 = vor.u32 %v1907_v61, %v1699_v0  ;;  %v1755_v12 = vld [vmem:[%s2419_s17 + $0x118] sm:$0xf0] }
  0xc1   : > { %1148 = vmatpush.bf16.msrb.mxu0 %v1662_v27  ;;  %v1827_v10 = vld [vmem:[%s2419_s17 + $0x1a8] sm:$0xf0]  ;;  %v1905_v13 = vld [vmem:[%s2419_s17 + $0x94] sm:$0xf]  ;;  %v1691_v14 = vld [vmem:[%s2419_s17 + $0x98] sm:$0xf0]  ;;  %v1638_v15 = vor.u32 %v1891_v6, %v1635_v7 }
  0xc2   : > { %1167 = vmatpush.bf16.msrb.mxu1 %v1726_v21  ;;  %v1830_v16 = vor.u32 %v1939_v8, %v1827_v10  ;;  %v1889_v18 = vld [vmem:[%s2419_s17 + $0x14] sm:$0xf]  ;;  %v1627_v19 = vld [vmem:[%s2419_s17 + $0x18] sm:$0xf0]  ;;  %v1694_v21 = vor.u32 %v1905_v13, %v1691_v14  ;;  %v1919_v23 = vld [vmem:[%s2419_s17 + $0x104] sm:$0xf] }
  0xc3   : > { %1186 = vmatpush.bf16.msrb.mxu2 %v1790_v17  ;;  %v1758_v17 = vor.u32 %v1921_v11, %v1755_v12  ;;  %v1937_v20 = vld [vmem:[%s2419_s17 + $0x194] sm:$0xf]  ;;  %v1819_v22 = vld [vmem:[%s2419_s17 + $0x198] sm:$0xf0]  ;;  %v1747_v24 = vld [vmem:[%s2419_s17 + $0x108] sm:$0xf0]  ;;  %v1630_v27 = vor.u32 %v1889_v18, %v1627_v19 }
  0xc4   : > { %1205 = vmatpush.bf16.msrb.mxu3 %v1854_v31  ;;  %v1903_v25 = vld [vmem:[%s2419_s17 + $0x84] sm:$0xf]  ;;  %v1683_v26 = vld [vmem:[%s2419_s17 + $0x88] sm:$0xf0]  ;;  %v1822_v28 = vor.u32 %v1937_v20, %v1819_v22  ;;  %v1750_v29 = vor.u32 %v1919_v23, %v1747_v24  ;;  %v630_v43 = vld [vmem:[#allocation2 + $0x30] sm:$0xff]  ;;  %p1871_p5 = scmp.ne.s32.totalorder %s2111_s21, 7 }
  0xc5   : > { %1149 = vmatpush.bf16.msrb.mxu0 %v1654_v44  ;;  %v1887_v30 = vld [vmem:[%s2419_s17 + $0x4] sm:$0xf]  ;;  %v1619_v31 = vld [vmem:[%s2419_s17 + $0x8] sm:$0xf0]  ;;  %v633_v24 = vld [vmem:[#allocation2 + $0x10] sm:$0xff] }
  0xc6   : > { %1168 = vmatpush.bf16.msrb.mxu1 %v1718_v36  ;;  %v1935_v33 = vld [vmem:[%s2419_s17 + $0x184] sm:$0xf]  ;;  %v1811_v34 = vld [vmem:[%s2419_s17 + $0x188] sm:$0xf0]  ;;  %v1622_v35 = vor.u32 %v1887_v30, %v1619_v31 }
  0xc7   : > { %1187 = vmatpush.bf16.msrb.mxu2 %v1782_v32  ;;  %v1686_v32 = vor.u32 %v1903_v25, %v1683_v26  ;;  %v1814_v36 = vor.u32 %v1935_v33, %v1811_v34  ;;  %v636_v6 = vld [vmem:[#allocation2 + $0x28] sm:$0xff]  ;;  %v635_v33 = vld [vmem:[#allocation2 + $0x20] sm:$0xff] }
  0xc8   : > { %1206 = vmatpush.bf16.msrb.mxu3 %v1846_v48  ;;  %1083 = vmatmul.bf16.gmra.mxu0 %v2555_v53 }
  0xc9   : > { %1102 = vmatmul.bf16.gmra.mxu1 %v2560_v59  ;;  %1150 = vmatpush.bf16.msrb.mxu0 %v1646_v3 }
  0xca   : > { %1169 = vmatpush.bf16.msrb.mxu1 %v1710_v54  ;;  %1121 = vmatmul.bf16.gmra.mxu2 %v2562_v60 }
  0xcb   : > { %1188 = vmatpush.bf16.msrb.mxu2 %v1774_v49  ;;  %1140 = vmatmul.bf16.gmra.mxu3 %v1614_v1  ;;  %v632_v49 = vld [vmem:[#allocation2 + $0x18] sm:$0xff] }
  0xcc   : > { %1207 = vmatpush.bf16.msrb.mxu3 %v1838_v4 }
  0xcd   : > { %1151 = vmatpush.bf16.msrb.mxu0 %v1638_v15 }
  0xce   : > { %1170 = vmatpush.bf16.msrb.mxu1 %v1702_v9 }
  0xcf   : > { %1189 = vmatpush.bf16.msrb.mxu2 %v1766_v5 }
  0xd0   : > { %1208 = vmatpush.bf16.msrb.mxu3 %v1830_v16 }
  0xd1   : > { %1152 = vmatpush.bf16.msrb.mxu0 %v1630_v27 }
  0xd2   : > { %1171 = vmatpush.bf16.msrb.mxu1 %v1694_v21 }
  0xd3   : > { %1190 = vmatpush.bf16.msrb.mxu2 %v1758_v17  ;;  %v631_v17 = vld [vmem:[#allocation2] sm:$0xff] }
  0xd4   : > { %1209 = vmatpush.bf16.msrb.mxu3 %v1822_v28 }
  0xd5   : > { %1153 = vmatpush.bf16.msrb.mxu0 %v1622_v35 }
  0xd6   : > { %1172 = vmatpush.bf16.msrb.mxu1 %v1686_v32 }
  0xd7   : > { %1191 = vmatpush.bf16.msrb.mxu2 %v1750_v29 }
  0xd8   : > { %1210 = vmatpush.bf16.msrb.mxu3 %v1814_v36  ;;  %1154 = vmatmul.bf16.vlgmr.msrb.gmra.mxu0 %v2503_v57 }
  0xd9   : > { %1173 = vmatmul.bf16.vlgmr.msrb.gmra.mxu1 %v2508_v62 }
  0xda   : > { %1192 = vmatmul.bf16.vlgmr.msrb.gmra.mxu2 %v2510_v63 }
  0xdb   : > { %1211 = vmatmul.bf16.vlgmr.msrb.gmra.mxu3 %v2514_v2 }
  0xe8   : > { %1159 = vmatmul.bf16.gmra.mxu0 %v2555_v53 }
  0xe9   : > { %1178 = vmatmul.bf16.gmra.mxu1 %v2560_v59  ;;  %v634_v59 = vld [vmem:[#allocation2 + $0x8] sm:$0xff] }
  0xea   : > { %1197 = vmatmul.bf16.gmra.mxu2 %v2562_v60 }
  0xeb   : > { %1216 = vmatmul.bf16.gmra.mxu3 %v1614_v1 }
 0x135   : > { %v1079_v37 = vpop.f32.mrf.mxu0 }
 0x136   : > { %v1098_v38 = vpop.f32.mrf.mxu1 }
 0x137   : > { %v1099_v39 = vadd.f32 %v1098_v38, %v1079_v37 }
 0x13d   : > { %v1117_v40 = vpop.f32.mrf.mxu2  ;;  %v1081_v57 = vpop.f32.mrf.mxu0 }
 0x13e   : > { %v1118_v41 = vadd.f32 %v1117_v40, %v1099_v39  ;;  %v1136_v42 = vpop.f32.mrf.mxu3  ;;  %v1100_v62 = vpop.f32.mrf.mxu1 }
 0x13f   : > { %v1101_v2 = vadd.f32 %v1100_v62, %v1081_v57 }
 0x140   : > { %v1137_v44 = vadd.f32 %v1136_v42, %v1118_v41  ;;  %v637_v41 = vld [vmem:[#allocation2 + $0x38] sm:$0xff] }
 0x142   : > { %v1222_v63 = vadd.f32 %v1137_v44, %v630_v43 }
 0x144   : > { %1230 = vst [vmem:[#allocation2 + $0x30] sm:$0xff] %v1222_v63 }
 0x145   : > { %v1119_v45 = vpop.f32.mrf.mxu2  ;;  %v1084_v48 = vpop.f32.mrf.mxu0 }
 0x146   : > { %v1120_v46 = vadd.f32 %v1119_v45, %v1101_v2  ;;  %v1138_v47 = vpop.f32.mrf.mxu3  ;;  %v1103_v50 = vpop.f32.mrf.mxu1 }
 0x147   : > { %v1104_v53 = vadd.f32 %v1103_v50, %v1084_v48 }
 0x148   : > { %v1139_v51 = vadd.f32 %v1138_v47, %v1120_v46 }
 0x14a   : > { %v1224_v52 = vadd.f32 %v1139_v51, %v632_v49 }
 0x14c   : > { %1232 = vst [vmem:[#allocation2 + $0x18] sm:$0xff] %v1224_v52 }
 0x14d   : > { %v1122_v54 = vpop.f32.mrf.mxu2  ;;  %v1086_v58 = vpop.f32.mrf.mxu0 }
 0x14e   : > { %v1123_v55 = vadd.f32 %v1122_v54, %v1104_v53  ;;  %v1141_v56 = vpop.f32.mrf.mxu3  ;;  %v1105_v60 = vpop.f32.mrf.mxu1 }
 0x14f   : > { %v1106_v1 = vadd.f32 %v1105_v60, %v1086_v58 }
 0x150   : > { %v1142_v61 = vadd.f32 %v1141_v56, %v1123_v55 }
 0x152   : > { %v1226_v0 = vadd.f32 %v1142_v61, %v634_v59 }
 0x154   : > { %1234 = vst [vmem:[#allocation2 + $0x8] sm:$0xff] %v1226_v0 }
 0x155   : > { %v1124_v3 = vpop.f32.mrf.mxu2  ;;  %v1155_v7 = vpop.f32.mrf.mxu0 }
 0x156   : > { %v1125_v4 = vadd.f32 %v1124_v3, %v1106_v1  ;;  %v1143_v5 = vpop.f32.mrf.mxu3  ;;  %v1174_v8 = vpop.f32.mrf.mxu1 }
 0x157   : > { %v1175_v11 = vadd.f32 %v1174_v8, %v1155_v7 }
 0x158   : > { %v1144_v9 = vadd.f32 %v1143_v5, %v1125_v4 }
 0x15a   : > { %v1228_v10 = vadd.f32 %v1144_v9, %v636_v6 }
 0x15c   : > { %1236 = vst [vmem:[#allocation2 + $0x28] sm:$0xff] %v1228_v10 }
 0x15d   : > { %v1193_v12 = vpop.f32.mrf.mxu2  ;;  %v1157_v15 = vpop.f32.mrf.mxu0 }
 0x15e   : > { %v1212_v13 = vpop.f32.mrf.mxu3  ;;  %v1194_v14 = vadd.f32 %v1193_v12, %v1175_v11  ;;  %v1176_v16 = vpop.f32.mrf.mxu1 }
 0x15f   : > { %v1177_v20 = vadd.f32 %v1176_v16, %v1157_v15 }
 0x160   : > { %v1213_v18 = vadd.f32 %v1212_v13, %v1194_v14 }
 0x162   : > { %v1223_v19 = vadd.f32 %v1213_v18, %v631_v17 }
 0x164   : > { %1231 = vst [vmem:[#allocation2] sm:$0xff] %v1223_v19 }
 0x165   : > { %v1195_v21 = vpop.f32.mrf.mxu2  ;;  %v1160_v25 = vpop.f32.mrf.mxu0 }
 0x166   : > { %v1214_v22 = vpop.f32.mrf.mxu3  ;;  %v1196_v23 = vadd.f32 %v1195_v21, %v1177_v20  ;;  %v1179_v26 = vpop.f32.mrf.mxu1 }
 0x167   : > { %v1180_v29 = vadd.f32 %v1179_v26, %v1160_v25 }
 0x168   : > { %v1215_v27 = vadd.f32 %v1214_v22, %v1196_v23 }
 0x16a   : > { %v1225_v28 = vadd.f32 %v1215_v27, %v633_v24 }
 0x16c   : > { %1233 = vst [vmem:[#allocation2 + $0x10] sm:$0xff] %v1225_v28 }
 0x16d   : > { %v1198_v30 = vpop.f32.mrf.mxu2  ;;  %v1162_v35 = vpop.f32.mrf.mxu0 }
 0x16e   : > { %v1217_v31 = vpop.f32.mrf.mxu3  ;;  %v1199_v32 = vadd.f32 %v1198_v30, %v1180_v29  ;;  %v1181_v36 = vpop.f32.mrf.mxu1 }
 0x16f   : > { %v1182_v38 = vadd.f32 %v1181_v36, %v1162_v35 }
 0x170   : > { %v1218_v34 = vadd.f32 %v1217_v31, %v1199_v32 }
 0x172   : > { %v1227_v37 = vadd.f32 %v1218_v34, %v635_v33 }
 0x174   : > { %1235 = vst [vmem:[#allocation2 + $0x20] sm:$0xff] %v1227_v37 }
 0x175   : > { %v1200_v39 = vpop.f32.mrf.mxu2 }
 0x176   : > { %v1201_v40 = vadd.f32 %v1200_v39, %v1182_v38  ;;  %v1219_v42 = vpop.f32.mrf.mxu3 }
 0x178   : > { %v1220_v57 = vadd.f32 %v1219_v42, %v1201_v40  ;;  %1241 = sbr.rel (%p1871_p5) target bundleno = 406 (0x196), region = 97 }
 0x17a   : > { %v1229_v43 = vadd.f32 %v1220_v57, %v637_v41 }
 0x17c   : > { %1237 = vst [vmem:[#allocation2 + $0x38] sm:$0xff] %v1229_v43 }
 0x17d   : > { %v1242_v62 = vld [vmem:[#allocation2 + $0x30] sm:$0xff]  ;;  %v1244_v44 = vld [vmem:[#allocation2 + $0x18] sm:$0xff]  ;;  %v1246_v63 = vld [vmem:[#allocation2 + $0x8] sm:$0xff] }
 0x17e   : > { %v1248_v2 = vld [vmem:[#allocation2 + $0x28] sm:$0xff]  ;;  %v1258_v45 = vadd.f32 %v1244_v44, %v1242_v62  ;;  %v1276_v46 = vmul.f32 %v1242_v62, %v1242_v62  ;;  %v1278_v47 = vmul.f32 %v1244_v44, %v1244_v44  ;;  %v1280_v48 = vmul.f32 %v1246_v63, %v1246_v63  ;;  %v1243_v49 = vld [vmem:[#allocation2] sm:$0xff]  ;;  %v1245_v50 = vld [vmem:[#allocation2 + $0x10] sm:$0xff] }
 0x17f   : > { %v1282_v51 = vmul.f32 %v1248_v2, %v1248_v2  ;;  %v1250_v52 = vpack.c.bf16 %v1243_v49, %v1242_v62  ;;  %v1277_v53 = vmul.f32 %v1243_v49, %v1243_v49  ;;  %v1251_v54 = vpack.c.bf16 %v1245_v50, %v1244_v44  ;;  %v1247_v55 = vld [vmem:[#allocation2 + $0x20] sm:$0xff] }
 0x180   : > { %v1259_v58 = vadd.f32 %v1258_v45, %v1246_v63  ;;  %v1284_v59 = vadd.f32 %v1278_v47, %v1276_v46  ;;  %v1267_v60 = vadd.f32 %v1245_v50, %v1243_v49  ;;  %v1279_v61 = vmul.f32 %v1245_v50, %v1245_v50 }
 0x181   : > { %1254 = vst [vmem:[%s2421_s15] sm:$0xff] %v1250_v52  ;;  %v1252_v0 = vpack.c.bf16 %v1247_v55, %v1246_v63  ;;  %v1281_v1 = vmul.f32 %v1247_v55, %v1247_v55 }
 0x182   : > { %v1260_v5 = vadd.f32 %v1259_v58, %v1248_v2  ;;  %v1285_v6 = vadd.f32 %v1284_v59, %v1280_v48  ;;  %1255 = vst [vmem:[%s2421_s15 + $0x8] sm:$0xff] %v1251_v54  ;;  %v1293_v7 = vadd.f32 %v1279_v61, %v1277_v53  ;;  %v1268_v8 = vadd.f32 %v1267_v60, %v1247_v55 }
 0x183   : > { %v1249_v56 = vld [vmem:[#allocation2 + $0x38] sm:$0xff]  ;;  %1256 = vst [vmem:[%s2421_s15 + $0x10] sm:$0xff] %v1252_v0 }
 0x184   : > { %v1253_v3 = vpack.c.bf16 %v1249_v56, %v1248_v2  ;;  %v1283_v4 = vmul.f32 %v1249_v56, %v1249_v56  ;;  %v1261_v9 = vrot.slane %v1260_v5, 4  ;;  %v1286_v10 = vadd.f32 %v1285_v6, %v1282_v51 }
 0x185   : > { %v1294_v11 = vadd.f32 %v1293_v7, %v1281_v1  ;;  %v1269_v12 = vadd.f32 %v1268_v8, %v1249_v56 }
 0x186   : > { %1257 = vst [vmem:[%s2421_s15 + $0x18] sm:$0xff] %v1253_v3  ;;  %v1262_v13 = vadd.f32 %v1261_v9, %v1260_v5  ;;  %v1287_v14 = vrot.slane %v1286_v10, 4 }
 0x187   : > { %v1270_v15 = vrot.slane %v1269_v12, 4  ;;  %v1295_v16 = vadd.f32 %v1294_v11, %v1283_v4 }
 0x188   : > { %v1263_v17 = vrot.slane %v1262_v13, 2  ;;  %v1288_v18 = vadd.f32 %v1287_v14, %v1286_v10 }
 0x189   : > { %v1271_v19 = vadd.f32 %v1270_v15, %v1269_v12  ;;  %v1296_v20 = vrot.slane %v1295_v16, 4 }
 0x18a   : > { %v1264_v21 = vadd.f32 %v1263_v17, %v1262_v13  ;;  %v1289_v22 = vrot.slane %v1288_v18, 2 }
 0x18b   : > { %v1272_v23 = vrot.slane %v1271_v19, 2  ;;  %v1297_v24 = vadd.f32 %v1296_v20, %v1295_v16 }
 0x18c   : > { %v1265_v25 = vrot.slane %v1264_v21, 1  ;;  %v1290_v26 = vadd.f32 %v1289_v22, %v1288_v18 }
 0x18d   : > { %v1273_v27 = vadd.f32 %v1272_v23, %v1271_v19  ;;  %v1298_v28 = vrot.slane %v1297_v24, 2 }
 0x18e   : > { %v1266_v29 = vadd.f32 %v1265_v25, %v1264_v21  ;;  %v1291_v30 = vrot.slane %v1290_v26, 1 }
 0x18f   : > { %v1274_v31 = vrot.slane %v1273_v27, 1  ;;  %v1299_v32 = vadd.f32 %v1298_v28, %v1297_v24 }
 0x190   : > { %1302 = vst [vmem:[%s2410_s10] sm:$0xff] %v1266_v29  ;;  %v1292_v33 = vadd.f32 %v1291_v30, %v1290_v26 }
 0x191   : > { %v1275_v34 = vadd.f32 %v1274_v31, %v1273_v27  ;;  %v1300_v35 = vrot.slane %v1299_v32, 1 }
 0x192   : > { %1304 = vst [vmem:[%s2415_s24] sm:$0xff] %v1292_v33 }
 0x193   : > { %v1301_v36 = vadd.f32 %v1300_v35, %v1299_v32  ;;  %1303 = vst [vmem:[%s2410_s10 + $0x8] sm:$0xff] %v1275_v34 }
 0x195   : > { %1305 = vst [vmem:[%s2415_s24 + $0x8] sm:$0xff] %v1301_v36 }
 0x196 PF: > { %1330 = sbr.rel (!%p2249_p12) target bundleno = 412 (0x19c), region = 101  ;;  %s1951_s1 = sshll.u32 (%p2249_p12), %s2115_s22, 3  ;;  %v1371_v37 = vld [vmem:[%s2421_s15] sm:$0xff] (%p2249_p12)  ;;  %v1373_v38 = vld [vmem:[%s2421_s15 + $0x8] sm:$0xff] (%p2249_p12)  ;;  %v1375_v39 = vld [vmem:[%s2421_s15 + $0x10] sm:$0xff] (%p2249_p12) }
 0x197   : > { %s1336_s0 = scalar_lea.vmem (%p2249_p12), %s2650_s2, %s1951_s1  ;;  %v1377_v40 = vld [vmem:[%s2421_s15 + $0x18] sm:$0xff] (%p2249_p12) }
 0x198   : > { %1372 = vst [vmem:[%s1336_s0] sm:$0xff] (%p2249_p12), %v1371_v37 }
 0x199   : > { %1374 = vst [vmem:[%s1336_s0 + $0x10] sm:$0xff] (%p2249_p12), %v1373_v38 }
 0x19a   : > { %1376 = vst [vmem:[%s1336_s0 + $0x20] sm:$0xff] (%p2249_p12), %v1375_v39 }
 0x19b   : > { %1378 = vst [vmem:[%s1336_s0 + $0x30] sm:$0xff] %v1377_v40 }
 0x19c PF: > { %s15_s25 = sadd.s32 1, %s2127_s25   ;;  %s2666_s22 = sld [smem:[#allocation6_spill]] }
 0x19d   : > { %p12_p6 = scmp.ge.s32.totalorder %s15_s25, 18   ;;  %s2667_s24 = sld [smem:[#allocation7_spill]] }
 0x19e   : > { %s2668_s14 = sld [smem:[#allocation8_spill]]  ;;  %s2669_s15 = smov %s2091_s16 }
 0x19f   : > { %s2670_s16 = smov %s2247_s13  ;;  %s2671_s17 = smov %s2099_s18 }
 0x1a0   : > { %s2672_s18 = smov %s2244_s12  ;;  %s2673_s19 = smov %s2107_s20 }
 0x1a1   : > { %s2674_s20 = smov %s2230_s7  ;;  %s2675_s21 = smov %s2119_s23 }
 0x1a2   :  { %14 = sbr.rel (!%p12_p6) target bundleno = 9 (0x9), region = 202 }
 0x1a3   : > { %s2676_s23 = smov %s2667_s24 }
 0x1a4   : > { %s2677_s24 = smov %s2668_s14 }

// kernel: _lambda_.15
= control target key start
LH: loop header
LB: loop body
LE: loop exit
PB: predicated region body
PF: predicated region fallthrough
CT: control target
= control target key end

     0   :  { %s752_s0 = inlined_call_operand.vmem [shape: bf16[128,512], index: 0, kind: input, shape index: {}]   ;;  %s753_s1 = inlined_call_operand.vmem [shape: f32[1,512], index: 1, kind: input, shape index: {}]   ;;  %s754_s2 = inlined_call_operand.vmem [shape: f32[1,512], index: 2, kind: input, shape index: {}]   ;;  %s755_s3 = inlined_call_operand.vmem [shape: bf16[128,512], index: 3, kind: output, shape index: {}]  }
   0x1   :  { %v14_v0 = vld [vmem:[%s752_s0] sm:$0xff]  ;;  %v15_v7 = vld [vmem:[%s752_s0 + $0x8] sm:$0xff]  ;;  %v16_v8 = vld [vmem:[%s752_s0 + $0x10] sm:$0xff] }
   0x2   :  { %v110_v1 = vld [vmem:[%s753_s1] sm:$0xf]  ;;  %v46_v3 = vunpack.c.l.bf16 %v14_v0  ;;  %v47_v4 = vunpack.c.h.bf16 %v14_v0  ;;  %v48_v11 = vunpack.c.l.bf16 %v15_v7  ;;  %v49_v12 = vunpack.c.h.bf16 %v15_v7  ;;  %v17_v17 = vld [vmem:[%s752_s0 + $0x18] sm:$0xff]  ;;  %v19_v39 = vld [vmem:[%s752_s0 + $0x28] sm:$0xff] }
   0x3   :  { %v184_v2 = vld [vmem:[%s754_s2] sm:$0xf]  ;;  %v419_v5 = vperm.slane %v110_v1, 0  ;;  %v421_v6 = vperm.slane %v110_v1, 1  ;;  %v435_v15 = vperm.slane %v110_v1, 2  ;;  %v437_v16 = vperm.slane %v110_v1, 3 }
   0x4   :  { %v429_v9 = vperm.slane %v184_v2, 0  ;;  %v431_v10 = vperm.slane %v184_v2, 1  ;;  %v442_v18 = vperm.slane %v184_v2, 2  ;;  %v444_v19 = vperm.slane %v184_v2, 3  ;;  %v18_v30 = vld [vmem:[%s752_s0 + $0x20] sm:$0xff]  ;;  %v20_v48 = vld [vmem:[%s752_s0 + $0x30] sm:$0xff] }
   0x5   :  { %v120_v13 = vmul.f32 %v419_v5, %v46_v3  ;;  %v121_v14 = vmul.f32 %v421_v6, %v47_v4  ;;  %v50_v20 = vunpack.c.l.bf16 %v16_v8  ;;  %v51_v21 = vunpack.c.h.bf16 %v16_v8  ;;  %v21_v53 = vld [vmem:[%s752_s0 + $0x38] sm:$0xff]  ;;  %v22_v2 = vld [vmem:[%s752_s0 + $0x40] sm:$0xff] }
   0x6   :  { %v122_v24 = vmul.f32 %v435_v15, %v48_v11  ;;  %v123_v25 = vmul.f32 %v437_v16, %v49_v12  ;;  %v52_v28 = vunpack.c.l.bf16 %v17_v17  ;;  %v53_v29 = vunpack.c.h.bf16 %v17_v17 }
   0x7   :  { %v194_v22 = vadd.f32 %v429_v9, %v120_v13  ;;  %v195_v23 = vadd.f32 %v431_v10, %v121_v14  ;;  %v124_v26 = vmul.f32 %v419_v5, %v50_v20  ;;  %v125_v27 = vmul.f32 %v421_v6, %v51_v21 }
   0x8   :  { %v196_v33 = vadd.f32 %v442_v18, %v122_v24  ;;  %v197_v34 = vadd.f32 %v444_v19, %v123_v25  ;;  %v126_v37 = vmul.f32 %v435_v15, %v52_v28  ;;  %v127_v38 = vmul.f32 %v437_v16, %v53_v29 }
   0x9   :  { %v258_v31 = vmax.f32 %v194_v22, 0.0  ;;  %v259_v32 = vmax.f32 %v195_v23, 0.0  ;;  %v198_v35 = vadd.f32 %v429_v9, %v124_v26  ;;  %v199_v36 = vadd.f32 %v431_v10, %v125_v27  ;;  %v23_v27 = vld [vmem:[%s752_s0 + $0x48] sm:$0xff] }
   0xa   :  { %v260_v41 = vmax.f32 %v196_v33, 0.0  ;;  %v261_v42 = vmax.f32 %v197_v34, 0.0  ;;  %v54_v43 = vunpack.c.l.bf16 %v18_v30  ;;  %v200_v46 = vadd.f32 %v442_v18, %v126_v37 }
   0xb   :  { %v322_v40 = vpack.c.bf16 %v259_v32, %v258_v31  ;;  %v262_v44 = vmax.f32 %v198_v35, 0.0  ;;  %v263_v45 = vmax.f32 %v199_v36, 0.0  ;;  %v201_v47 = vadd.f32 %v444_v19, %v127_v38  ;;  %v24_v32 = vld [vmem:[%s752_s0 + $0x50] sm:$0xff] }
   0xc   :  { %v323_v49 = vpack.c.bf16 %v261_v42, %v260_v41  ;;  %v55_v50 = vunpack.c.h.bf16 %v18_v30  ;;  %v128_v51 = vmul.f32 %v419_v5, %v54_v43  ;;  %v56_v52 = vunpack.c.l.bf16 %v19_v39  ;;  %v25_v41 = vld [vmem:[%s752_s0 + $0x58] sm:$0xff] }
   0xd   :  { %354 = vst [vmem:[%s755_s3] sm:$0xff] %v322_v40  ;;  %v324_v54 = vpack.c.bf16 %v263_v45, %v262_v44  ;;  %v264_v55 = vmax.f32 %v200_v46, 0.0  ;;  %v265_v56 = vmax.f32 %v201_v47, 0.0  ;;  %v57_v57 = vunpack.c.h.bf16 %v19_v39 }
   0xe   :  { %355 = vst [vmem:[%s755_s3 + $0x8] sm:$0xff] %v323_v49  ;;  %v129_v58 = vmul.f32 %v421_v6, %v55_v50  ;;  %v202_v59 = vadd.f32 %v429_v9, %v128_v51  ;;  %v130_v60 = vmul.f32 %v435_v15, %v56_v52  ;;  %v58_v61 = vunpack.c.l.bf16 %v20_v48  ;;  %v26_v50 = vld [vmem:[%s752_s0 + $0x60] sm:$0xff] }
   0xf   :  { %356 = vst [vmem:[%s755_s3 + $0x10] sm:$0xff] %v324_v54  ;;  %v325_v62 = vpack.c.bf16 %v265_v56, %v264_v55  ;;  %v131_v63 = vmul.f32 %v437_v16, %v57_v57  ;;  %v59_v0 = vunpack.c.h.bf16 %v20_v48  ;;  %v60_v1 = vunpack.c.l.bf16 %v21_v53 }
  0x10   :  { %v203_v3 = vadd.f32 %v431_v10, %v129_v58  ;;  %v266_v4 = vmax.f32 %v202_v59, 0.0  ;;  %v204_v7 = vadd.f32 %v442_v18, %v130_v60  ;;  %v132_v8 = vmul.f32 %v419_v5, %v58_v61 }
  0x11   :  { %357 = vst [vmem:[%s755_s3 + $0x18] sm:$0xff] %v325_v62  ;;  %v205_v11 = vadd.f32 %v444_v19, %v131_v63  ;;  %v133_v12 = vmul.f32 %v421_v6, %v59_v0  ;;  %v61_v13 = vunpack.c.h.bf16 %v21_v53  ;;  %v134_v14 = vmul.f32 %v435_v15, %v60_v1  ;;  %v27_v63 = vld [vmem:[%s752_s0 + $0x68] sm:$0xff] }
  0x12   :  { %v267_v17 = vmax.f32 %v203_v3, 0.0  ;;  %v268_v20 = vmax.f32 %v204_v7, 0.0  ;;  %v206_v21 = vadd.f32 %v429_v9, %v132_v8  ;;  %v62_v22 = vunpack.c.l.bf16 %v22_v2 }
  0x13   :  { %v269_v23 = vmax.f32 %v205_v11, 0.0  ;;  %v207_v24 = vadd.f32 %v431_v10, %v133_v12  ;;  %v135_v25 = vmul.f32 %v437_v16, %v61_v13  ;;  %v208_v26 = vadd.f32 %v442_v18, %v134_v14  ;;  %v28_v12 = vld [vmem:[%s752_s0 + $0x70] sm:$0xff] }
  0x14   :  { %v326_v28 = vpack.c.bf16 %v267_v17, %v266_v4  ;;  %v270_v29 = vmax.f32 %v206_v21, 0.0  ;;  %v63_v30 = vunpack.c.h.bf16 %v22_v2  ;;  %v136_v31 = vmul.f32 %v419_v5, %v62_v22  ;;  %v29_v21 = vld [vmem:[%s752_s0 + $0x78] sm:$0xff] }
  0x15   :  { %v327_v33 = vpack.c.bf16 %v269_v23, %v268_v20  ;;  %v271_v34 = vmax.f32 %v207_v24, 0.0  ;;  %v209_v35 = vadd.f32 %v444_v19, %v135_v25  ;;  %v272_v36 = vmax.f32 %v208_v26, 0.0 }
  0x16   :  { %358 = vst [vmem:[%s755_s3 + $0x20] sm:$0xff] %v326_v28  ;;  %v137_v37 = vmul.f32 %v421_v6, %v63_v30  ;;  %v210_v38 = vadd.f32 %v429_v9, %v136_v31  ;;  %v64_v39 = vunpack.c.l.bf16 %v23_v27  ;;  %v65_v40 = vunpack.c.h.bf16 %v23_v27 }
  0x17   :  { %359 = vst [vmem:[%s755_s3 + $0x28] sm:$0xff] %v327_v33  ;;  %v328_v42 = vpack.c.bf16 %v271_v34, %v270_v29  ;;  %v273_v43 = vmax.f32 %v209_v35, 0.0  ;;  %v66_v44 = vunpack.c.l.bf16 %v24_v32  ;;  %v67_v45 = vunpack.c.h.bf16 %v24_v32  ;;  %v30_v34 = vld [vmem:[%s752_s0 + $0x80] sm:$0xff] }
  0x18   :  { %v211_v46 = vadd.f32 %v431_v10, %v137_v37  ;;  %v274_v47 = vmax.f32 %v210_v38, 0.0  ;;  %v138_v48 = vmul.f32 %v435_v15, %v64_v39  ;;  %v139_v49 = vmul.f32 %v437_v16, %v65_v40 }
  0x19   :  { %360 = vst [vmem:[%s755_s3 + $0x30] sm:$0xff] %v328_v42  ;;  %v329_v51 = vpack.c.bf16 %v273_v43, %v272_v36  ;;  %v140_v52 = vmul.f32 %v419_v5, %v66_v44  ;;  %v141_v53 = vmul.f32 %v421_v6, %v67_v45  ;;  %v68_v54 = vunpack.c.l.bf16 %v25_v41 }
  0x1a   :  { %v275_v55 = vmax.f32 %v211_v46, 0.0  ;;  %v212_v56 = vadd.f32 %v442_v18, %v138_v48  ;;  %v213_v57 = vadd.f32 %v444_v19, %v139_v49  ;;  %v69_v58 = vunpack.c.h.bf16 %v25_v41 }
  0x1b   :  { %361 = vst [vmem:[%s755_s3 + $0x38] sm:$0xff] %v329_v51  ;;  %v214_v59 = vadd.f32 %v429_v9, %v140_v52  ;;  %v215_v60 = vadd.f32 %v431_v10, %v141_v53  ;;  %v142_v61 = vmul.f32 %v435_v15, %v68_v54  ;;  %v70_v62 = vunpack.c.l.bf16 %v26_v50 }
  0x1c   :  { %v330_v0 = vpack.c.bf16 %v275_v55, %v274_v47  ;;  %v276_v1 = vmax.f32 %v212_v56, 0.0  ;;  %v277_v2 = vmax.f32 %v213_v57, 0.0  ;;  %v143_v3 = vmul.f32 %v437_v16, %v69_v58  ;;  %v31_v47 = vld [vmem:[%s752_s0 + $0x88] sm:$0xff]  ;;  %v32_v56 = vld [vmem:[%s752_s0 + $0x90] sm:$0xff] }
  0x1d   :  { %v278_v4 = vmax.f32 %v214_v59, 0.0  ;;  %v279_v7 = vmax.f32 %v215_v60, 0.0  ;;  %v216_v8 = vadd.f32 %v442_v18, %v142_v61  ;;  %v71_v11 = vunpack.c.h.bf16 %v26_v50 }
  0x1e   :  { %362 = vst [vmem:[%s755_s3 + $0x40] sm:$0xff] %v330_v0  ;;  %v331_v13 = vpack.c.bf16 %v277_v2, %v276_v1  ;;  %v217_v14 = vadd.f32 %v444_v19, %v143_v3  ;;  %v144_v17 = vmul.f32 %v419_v5, %v70_v62  ;;  %v72_v20 = vunpack.c.l.bf16 %v27_v63  ;;  %v33_v1 = vld [vmem:[%s752_s0 + $0x98] sm:$0xff] }
  0x1f   :  { %v332_v22 = vpack.c.bf16 %v279_v7, %v278_v4  ;;  %v280_v23 = vmax.f32 %v216_v8, 0.0  ;;  %v145_v24 = vmul.f32 %v421_v6, %v71_v11  ;;  %v73_v25 = vunpack.c.h.bf16 %v27_v63 }
  0x20   :  { %363 = vst [vmem:[%s755_s3 + $0x48] sm:$0xff] %v331_v13  ;;  %v281_v26 = vmax.f32 %v217_v14, 0.0  ;;  %v218_v27 = vadd.f32 %v429_v9, %v144_v17  ;;  %v146_v28 = vmul.f32 %v435_v15, %v72_v20  ;;  %v74_v29 = vunpack.c.l.bf16 %v28_v12  ;;  %v34_v14 = vld [vmem:[%s752_s0 + $0xa0] sm:$0xff] }
  0x21   :  { %364 = vst [vmem:[%s755_s3 + $0x50] sm:$0xff] %v332_v22  ;;  %v219_v30 = vadd.f32 %v431_v10, %v145_v24  ;;  %v147_v31 = vmul.f32 %v437_v16, %v73_v25  ;;  %v75_v32 = vunpack.c.h.bf16 %v28_v12  ;;  %v76_v33 = vunpack.c.l.bf16 %v29_v21 }
  0x22   :  { %v333_v35 = vpack.c.bf16 %v281_v26, %v280_v23  ;;  %v282_v36 = vmax.f32 %v218_v27, 0.0  ;;  %v220_v37 = vadd.f32 %v442_v18, %v146_v28  ;;  %v148_v38 = vmul.f32 %v419_v5, %v74_v29 }
  0x23   :  { %v283_v39 = vmax.f32 %v219_v30, 0.0  ;;  %v221_v40 = vadd.f32 %v444_v19, %v147_v31  ;;  %v149_v41 = vmul.f32 %v421_v6, %v75_v32  ;;  %v77_v42 = vunpack.c.h.bf16 %v29_v21  ;;  %v35_v31 = vld [vmem:[%s752_s0 + $0xa8] sm:$0xff] }
  0x24   :  { %365 = vst [vmem:[%s755_s3 + $0x58] sm:$0xff] %v333_v35  ;;  %v284_v43 = vmax.f32 %v220_v37, 0.0  ;;  %v222_v44 = vadd.f32 %v429_v9, %v148_v38  ;;  %v150_v45 = vmul.f32 %v435_v15, %v76_v33  ;;  %v78_v46 = vunpack.c.l.bf16 %v30_v34 }
  0x25   :  { %v334_v48 = vpack.c.bf16 %v283_v39, %v282_v36  ;;  %v285_v49 = vmax.f32 %v221_v40, 0.0  ;;  %v223_v50 = vadd.f32 %v431_v10, %v149_v41  ;;  %v151_v51 = vmul.f32 %v437_v16, %v77_v42  ;;  %v36_v40 = vld [vmem:[%s752_s0 + $0xb0] sm:$0xff] }
  0x26   :  { %v286_v52 = vmax.f32 %v222_v44, 0.0  ;;  %v224_v53 = vadd.f32 %v442_v18, %v150_v45  ;;  %v79_v54 = vunpack.c.h.bf16 %v30_v34  ;;  %v152_v55 = vmul.f32 %v419_v5, %v78_v46 }
  0x27   :  { %366 = vst [vmem:[%s755_s3 + $0x60] sm:$0xff] %v334_v48  ;;  %v335_v57 = vpack.c.bf16 %v285_v49, %v284_v43  ;;  %v287_v58 = vmax.f32 %v223_v50, 0.0  ;;  %v225_v59 = vadd.f32 %v444_v19, %v151_v51  ;;  %v80_v60 = vunpack.c.l.bf16 %v31_v47  ;;  %v37_v49 = vld [vmem:[%s752_s0 + $0xb8] sm:$0xff] }
  0x28   :  { %v288_v61 = vmax.f32 %v224_v53, 0.0  ;;  %v153_v62 = vmul.f32 %v421_v6, %v79_v54  ;;  %v226_v63 = vadd.f32 %v429_v9, %v152_v55  ;;  %v81_v0 = vunpack.c.h.bf16 %v31_v47 }
  0x29   :  { %367 = vst [vmem:[%s755_s3 + $0x68] sm:$0xff] %v335_v57  ;;  %v336_v2 = vpack.c.bf16 %v287_v58, %v286_v52  ;;  %v289_v3 = vmax.f32 %v225_v59, 0.0  ;;  %v154_v4 = vmul.f32 %v435_v15, %v80_v60  ;;  %v82_v7 = vunpack.c.l.bf16 %v32_v56  ;;  %v38_v58 = vld [vmem:[%s752_s0 + $0xc0] sm:$0xff] }
  0x2a   :  { %v227_v8 = vadd.f32 %v431_v10, %v153_v62  ;;  %v290_v11 = vmax.f32 %v226_v63, 0.0  ;;  %v155_v12 = vmul.f32 %v437_v16, %v81_v0  ;;  %v83_v13 = vunpack.c.h.bf16 %v32_v56 }
  0x2b   :  { %368 = vst [vmem:[%s755_s3 + $0x70] sm:$0xff] %v336_v2  ;;  %v337_v17 = vpack.c.bf16 %v289_v3, %v288_v61  ;;  %v228_v20 = vadd.f32 %v442_v18, %v154_v4  ;;  %v156_v21 = vmul.f32 %v419_v5, %v82_v7  ;;  %v84_v22 = vunpack.c.l.bf16 %v33_v1 }
  0x2c   :  { %v291_v23 = vmax.f32 %v227_v8, 0.0  ;;  %v229_v24 = vadd.f32 %v444_v19, %v155_v12  ;;  %v157_v25 = vmul.f32 %v421_v6, %v83_v13  ;;  %v85_v26 = vunpack.c.h.bf16 %v33_v1 }
  0x2d   :  { %369 = vst [vmem:[%s755_s3 + $0x78] sm:$0xff] %v337_v17  ;;  %v292_v27 = vmax.f32 %v228_v20, 0.0  ;;  %v230_v28 = vadd.f32 %v429_v9, %v156_v21  ;;  %v158_v29 = vmul.f32 %v435_v15, %v84_v22  ;;  %v86_v30 = vunpack.c.l.bf16 %v34_v14 }
  0x2e   :  { %v338_v32 = vpack.c.bf16 %v291_v23, %v290_v11  ;;  %v293_v33 = vmax.f32 %v229_v24, 0.0  ;;  %v231_v34 = vadd.f32 %v431_v10, %v157_v25  ;;  %v159_v35 = vmul.f32 %v437_v16, %v85_v26  ;;  %v39_v11 = vld [vmem:[%s752_s0 + $0xc8] sm:$0xff]  ;;  %v40_v24 = vld [vmem:[%s752_s0 + $0xd0] sm:$0xff] }
  0x2f   :  { %v294_v36 = vmax.f32 %v230_v28, 0.0  ;;  %v232_v37 = vadd.f32 %v442_v18, %v158_v29  ;;  %v87_v38 = vunpack.c.h.bf16 %v34_v14  ;;  %v160_v39 = vmul.f32 %v419_v5, %v86_v30 }
  0x30   :  { %370 = vst [vmem:[%s755_s3 + $0x80] sm:$0xff] %v338_v32  ;;  %v339_v41 = vpack.c.bf16 %v293_v33, %v292_v27  ;;  %v295_v42 = vmax.f32 %v231_v34, 0.0  ;;  %v233_v43 = vadd.f32 %v444_v19, %v159_v35  ;;  %v88_v44 = vunpack.c.l.bf16 %v35_v31  ;;  %v41_v33 = vld [vmem:[%s752_s0 + $0xd8] sm:$0xff] }
  0x31   :  { %v296_v45 = vmax.f32 %v232_v37, 0.0  ;;  %v161_v46 = vmul.f32 %v421_v6, %v87_v38  ;;  %v234_v47 = vadd.f32 %v429_v9, %v160_v39  ;;  %v89_v48 = vunpack.c.h.bf16 %v35_v31 }
  0x32   :  { %371 = vst [vmem:[%s755_s3 + $0x88] sm:$0xff] %v339_v41  ;;  %v340_v50 = vpack.c.bf16 %v295_v42, %v294_v36  ;;  %v297_v51 = vmax.f32 %v233_v43, 0.0  ;;  %v162_v52 = vmul.f32 %v435_v15, %v88_v44  ;;  %v90_v53 = vunpack.c.l.bf16 %v36_v40  ;;  %v42_v42 = vld [vmem:[%s752_s0 + $0xe0] sm:$0xff] }
  0x33   :  { %v235_v54 = vadd.f32 %v431_v10, %v161_v46  ;;  %v298_v55 = vmax.f32 %v234_v47, 0.0  ;;  %v163_v56 = vmul.f32 %v437_v16, %v89_v48  ;;  %v91_v57 = vunpack.c.h.bf16 %v36_v40 }
  0x34   :  { %372 = vst [vmem:[%s755_s3 + $0x90] sm:$0xff] %v340_v50  ;;  %v341_v59 = vpack.c.bf16 %v297_v51, %v296_v45  ;;  %v236_v60 = vadd.f32 %v442_v18, %v162_v52  ;;  %v164_v61 = vmul.f32 %v419_v5, %v90_v53  ;;  %v92_v62 = vunpack.c.l.bf16 %v37_v49 }
  0x35   :  { %v299_v63 = vmax.f32 %v235_v54, 0.0  ;;  %v237_v0 = vadd.f32 %v444_v19, %v163_v56  ;;  %v165_v1 = vmul.f32 %v421_v6, %v91_v57  ;;  %v93_v2 = vunpack.c.h.bf16 %v37_v49 }
  0x36   :  { %373 = vst [vmem:[%s755_s3 + $0x98] sm:$0xff] %v341_v59  ;;  %v300_v3 = vmax.f32 %v236_v60, 0.0  ;;  %v238_v4 = vadd.f32 %v429_v9, %v164_v61  ;;  %v166_v7 = vmul.f32 %v435_v15, %v92_v62  ;;  %v94_v8 = vunpack.c.l.bf16 %v38_v58 }
  0x37   :  { %v342_v12 = vpack.c.bf16 %v299_v63, %v298_v55  ;;  %v301_v13 = vmax.f32 %v237_v0, 0.0  ;;  %v239_v14 = vadd.f32 %v431_v10, %v165_v1  ;;  %v167_v17 = vmul.f32 %v437_v16, %v93_v2  ;;  %v43_v55 = vld [vmem:[%s752_s0 + $0xe8] sm:$0xff]  ;;  %v44_v0 = vld [vmem:[%s752_s0 + $0xf0] sm:$0xff] }
  0x38   :  { %v302_v20 = vmax.f32 %v238_v4, 0.0  ;;  %v240_v21 = vadd.f32 %v442_v18, %v166_v7  ;;  %v95_v22 = vunpack.c.h.bf16 %v38_v58  ;;  %v168_v23 = vmul.f32 %v419_v5, %v94_v8 }
  0x39   :  { %374 = vst [vmem:[%s755_s3 + $0xa0] sm:$0xff] %v342_v12  ;;  %v343_v25 = vpack.c.bf16 %v301_v13, %v300_v3  ;;  %v303_v26 = vmax.f32 %v239_v14, 0.0  ;;  %v241_v27 = vadd.f32 %v444_v19, %v167_v17  ;;  %v96_v28 = vunpack.c.l.bf16 %v39_v11  ;;  %v45_v13 = vld [vmem:[%s752_s0 + $0xf8] sm:$0xff] }
  0x3a   :  { %v304_v29 = vmax.f32 %v240_v21, 0.0  ;;  %v169_v30 = vmul.f32 %v421_v6, %v95_v22  ;;  %v242_v31 = vadd.f32 %v429_v9, %v168_v23  ;;  %v97_v32 = vunpack.c.h.bf16 %v39_v11 }
  0x3b   :  { %375 = vst [vmem:[%s755_s3 + $0xa8] sm:$0xff] %v343_v25  ;;  %v344_v34 = vpack.c.bf16 %v303_v26, %v302_v20  ;;  %v305_v35 = vmax.f32 %v241_v27, 0.0  ;;  %v170_v36 = vmul.f32 %v435_v15, %v96_v28  ;;  %v98_v37 = vunpack.c.l.bf16 %v40_v24 }
  0x3c   :  { %v243_v38 = vadd.f32 %v431_v10, %v169_v30  ;;  %v306_v39 = vmax.f32 %v242_v31, 0.0  ;;  %v171_v40 = vmul.f32 %v437_v16, %v97_v32  ;;  %v99_v41 = vunpack.c.h.bf16 %v40_v24 }
  0x3d   :  { %376 = vst [vmem:[%s755_s3 + $0xb0] sm:$0xff] %v344_v34  ;;  %v345_v43 = vpack.c.bf16 %v305_v35, %v304_v29  ;;  %v244_v44 = vadd.f32 %v442_v18, %v170_v36  ;;  %v172_v45 = vmul.f32 %v419_v5, %v98_v37  ;;  %v100_v46 = vunpack.c.l.bf16 %v41_v33 }
  0x3e   :  { %v307_v47 = vmax.f32 %v243_v38, 0.0  ;;  %v245_v48 = vadd.f32 %v444_v19, %v171_v40  ;;  %v173_v49 = vmul.f32 %v421_v6, %v99_v41  ;;  %v101_v50 = vunpack.c.h.bf16 %v41_v33 }
  0x3f   :  { %377 = vst [vmem:[%s755_s3 + $0xb8] sm:$0xff] %v345_v43  ;;  %v308_v51 = vmax.f32 %v244_v44, 0.0  ;;  %v246_v52 = vadd.f32 %v429_v9, %v172_v45  ;;  %v174_v53 = vmul.f32 %v435_v15, %v100_v46  ;;  %v102_v54 = vunpack.c.l.bf16 %v42_v42 }
  0x40   :  { %v346_v56 = vpack.c.bf16 %v307_v47, %v306_v39  ;;  %v309_v57 = vmax.f32 %v245_v48, 0.0  ;;  %v247_v58 = vadd.f32 %v431_v10, %v173_v49  ;;  %v175_v59 = vmul.f32 %v437_v16, %v101_v50 }
  0x41   :  { %v310_v60 = vmax.f32 %v246_v52, 0.0  ;;  %v248_v61 = vadd.f32 %v442_v18, %v174_v53  ;;  %v103_v62 = vunpack.c.h.bf16 %v42_v42  ;;  %v176_v63 = vmul.f32 %v419_v5, %v102_v54 }
  0x42   :  { %378 = vst [vmem:[%s755_s3 + $0xc0] sm:$0xff] %v346_v56  ;;  %v347_v1 = vpack.c.bf16 %v309_v57, %v308_v51  ;;  %v311_v2 = vmax.f32 %v247_v58, 0.0  ;;  %v249_v3 = vadd.f32 %v444_v19, %v175_v59  ;;  %v104_v4 = vunpack.c.l.bf16 %v43_v55 }
  0x43   :  { %v312_v7 = vmax.f32 %v248_v61, 0.0  ;;  %v177_v8 = vmul.f32 %v421_v6, %v103_v62  ;;  %v250_v11 = vadd.f32 %v429_v9, %v176_v63  ;;  %v105_v12 = vunpack.c.h.bf16 %v43_v55 }
  0x44   :  { %379 = vst [vmem:[%s755_s3 + $0xc8] sm:$0xff] %v347_v1  ;;  %v348_v14 = vpack.c.bf16 %v311_v2, %v310_v60  ;;  %v313_v17 = vmax.f32 %v249_v3, 0.0  ;;  %v178_v20 = vmul.f32 %v435_v15, %v104_v4  ;;  %v106_v21 = vunpack.c.l.bf16 %v44_v0 }
  0x45   :  { %v251_v22 = vadd.f32 %v431_v10, %v177_v8  ;;  %v314_v23 = vmax.f32 %v250_v11, 0.0  ;;  %v179_v24 = vmul.f32 %v437_v16, %v105_v12  ;;  %v107_v25 = vunpack.c.h.bf16 %v44_v0 }
  0x46   :  { %380 = vst [vmem:[%s755_s3 + $0xd0] sm:$0xff] %v348_v14  ;;  %v349_v26 = vpack.c.bf16 %v313_v17, %v312_v7  ;;  %v252_v27 = vadd.f32 %v442_v18, %v178_v20  ;;  %v180_v28 = vmul.f32 %v419_v5, %v106_v21  ;;  %v108_v29 = vunpack.c.l.bf16 %v45_v13 }
  0x47   :  { %v315_v30 = vmax.f32 %v251_v22, 0.0  ;;  %v253_v31 = vadd.f32 %v444_v19, %v179_v24  ;;  %v181_v32 = vmul.f32 %v421_v6, %v107_v25  ;;  %v109_v33 = vunpack.c.h.bf16 %v45_v13 }
  0x48   :  { %381 = vst [vmem:[%s755_s3 + $0xd8] sm:$0xff] %v349_v26  ;;  %v316_v34 = vmax.f32 %v252_v27, 0.0  ;;  %v254_v35 = vadd.f32 %v429_v9, %v180_v28  ;;  %v182_v36 = vmul.f32 %v435_v15, %v108_v29 }
  0x49   :  { %v350_v37 = vpack.c.bf16 %v315_v30, %v314_v23  ;;  %v317_v38 = vmax.f32 %v253_v31, 0.0  ;;  %v255_v5 = vadd.f32 %v431_v10, %v181_v32  ;;  %v183_v39 = vmul.f32 %v437_v16, %v109_v33 }
  0x4a   :  { %v318_v40 = vmax.f32 %v254_v35, 0.0  ;;  %v256_v41 = vadd.f32 %v442_v18, %v182_v36 }
  0x4b   :  { %382 = vst [vmem:[%s755_s3 + $0xe0] sm:$0xff] %v350_v37  ;;  %v351_v6 = vpack.c.bf16 %v317_v38, %v316_v34  ;;  %v319_v42 = vmax.f32 %v255_v5, 0.0  ;;  %v257_v43 = vadd.f32 %v444_v19, %v183_v39 }
  0x4c   :  { %v320_v9 = vmax.f32 %v256_v41, 0.0 }
  0x4d   :  { %383 = vst [vmem:[%s755_s3 + $0xe8] sm:$0xff] %v351_v6  ;;  %v352_v15 = vpack.c.bf16 %v319_v42, %v318_v40  ;;  %v321_v10 = vmax.f32 %v257_v43, 0.0 }
  0x4f   :  { %384 = vst [vmem:[%s755_s3 + $0xf0] sm:$0xff] %v352_v15  ;;  %v353_v16 = vpack.c.bf16 %v321_v10, %v320_v9 }
  0x51   :  { %385 = vst [vmem:[%s755_s3 + $0xf8] sm:$0xff] %v353_v16 }

// kernel: _lambda_.16
= control target key start
LH: loop header
LB: loop body
LE: loop exit
PB: predicated region body
PF: predicated region fallthrough
CT: control target
= control target key end

     0   :  { %s1623_s9 = smov 0   ;;  %s1625_s10 = smov 0   ;;  %s1906_s0 = inlined_call_operand.vmem [shape: bf16[128,2048], index: 0, kind: input, shape index: {}]   ;;  %s1907_s1 = inlined_call_operand.vmem [shape: bf16[2048,128], index: 1, kind: input, shape index: {}]   ;;  %s1908_s2 = inlined_call_operand.vmem [shape: f32[128,128], index: 2, kind: output, shape index: {}]  }
   0x1   :  { %s1627_s11 = smov 0   ;;  %s1629_s12 = smov 0  }
   0x2   :  { %s1631_s13 = smov 0  }
   0x3 LB: > { %s24_s14 = sadd.s32 1, %s1601_s12  ;;  %p47_p1 = scmp.ne.s32.totalorder %s1593_s10, %s1589_s9  ;;  %s1605_s13 = sphi %s1631_s13, %s12_s13   ;;  %s1601_s12 = sphi %s1629_s12, %s1912_s12   ;;  %s1597_s11 = sphi %s1627_s11, %s1911_s11   ;;  %s1593_s10 = sphi %s1625_s10, %s1910_s10   ;;  %s1589_s9 = sphi %s1623_s9, %s1909_s9  }
   0x4   : > { %p25_p0 = scmp.ge.s32.totalorder %s24_s14, 4  ;;  %p48_p2 = scmp.eq.s32.totalorder %s1605_s13, 0 }
   0x5   : > { %s40_s16 = sadd.s32 1, %s1593_s10  ;;  %p1159_p5 = scmp.ge.s32.totalorder %s1605_s13, 4 }
   0x6   : > { %s1914_s14 = smov (%p25_p0, %s24_s14), 0  ;;  %p49_p3 = por %p48_p2, %p47_p1 }
   0x7   : > { %s36_s15 = ssub.s32 %s1601_s12, %s1914_s14  ;;  %129 = sbr.rel (%p1159_p5) target bundleno = 48 (0x30), region = 16 }
   0x8   : > { %p38_p4 = scmp.eq.s32.totalorder %s36_s15, 0 }
   0xa   : > { %s1658_s17 = scalar_select %p38_p4, %s1593_s10, %s40_s16  }
   0xc   : > { %132 = sbr.rel (!%p49_p3) target bundleno = 48 (0x30), region = 20  ;;  %s134_s18 = sand.u32 (%p49_p3), 1, %s1593_s10  }
   0xd   : > { %s1429_s19 = sshll.u32 (%p49_p3), %s1601_s12, 4  ;;  %s1160_s20 = sshll.u32 (%p49_p3), %s134_s18, 8 }
   0xe   : > { %s1666_s23 = scalar_lea.vmem (%p49_p3), %s1906_s0, %s1429_s19  ;;  %s1671_s24 = scalar_lea.vmem (%p49_p3), [#allocation3], %s1160_s20 }
   0xf   : > { %v155_v0 = vld [vmem:[%s1666_s23] sm:$0xff] (%p49_p3)  ;;  %v157_v1 = vld [vmem:[%s1666_s23 + $0x8] sm:$0xff] (%p49_p3) }
  0x10   : > { %v159_v2 = vld [vmem:[%s1666_s23 + $0x40] sm:$0xff] (%p49_p3)  ;;  %156 = vst [vmem:[%s1671_s24] sm:$0xff] (%p49_p3), %v155_v0  ;;  %v161_v3 = vld [vmem:[%s1666_s23 + $0x48] sm:$0xff] (%p49_p3) }
  0x11   : > { %158 = vst [vmem:[%s1671_s24 + $0x8] sm:$0xff] %v157_v1  ;;  %v163_v4 = vld [vmem:[%s1666_s23 + $0x80] sm:$0xff]  ;;  %v165_v5 = vld [vmem:[%s1666_s23 + $0x88] sm:$0xff] }
  0x12   : > { %160 = vst [vmem:[%s1671_s24 + $0x10] sm:$0xff] %v159_v2  ;;  %v167_v6 = vld [vmem:[%s1666_s23 + $0xc0] sm:$0xff]  ;;  %v169_v7 = vld [vmem:[%s1666_s23 + $0xc8] sm:$0xff] }
  0x13   : > { %162 = vst [vmem:[%s1671_s24 + $0x18] sm:$0xff] %v161_v3  ;;  %v171_v8 = vld [vmem:[%s1666_s23 + $0x100] sm:$0xff]  ;;  %v173_v9 = vld [vmem:[%s1666_s23 + $0x108] sm:$0xff] }
  0x14   : > { %164 = vst [vmem:[%s1671_s24 + $0x20] sm:$0xff] %v163_v4  ;;  %v175_v10 = vld [vmem:[%s1666_s23 + $0x140] sm:$0xff]  ;;  %v177_v11 = vld [vmem:[%s1666_s23 + $0x148] sm:$0xff] }
  0x15   : > { %166 = vst [vmem:[%s1671_s24 + $0x28] sm:$0xff] %v165_v5  ;;  %v179_v12 = vld [vmem:[%s1666_s23 + $0x180] sm:$0xff]  ;;  %v181_v13 = vld [vmem:[%s1666_s23 + $0x188] sm:$0xff] }
  0x16   : > { %168 = vst [vmem:[%s1671_s24 + $0x30] sm:$0xff] %v167_v6  ;;  %v183_v14 = vld [vmem:[%s1666_s23 + $0x1c0] sm:$0xff]  ;;  %v185_v15 = vld [vmem:[%s1666_s23 + $0x1c8] sm:$0xff] }
  0x17   : > { %170 = vst [vmem:[%s1671_s24 + $0x38] sm:$0xff] %v169_v7  ;;  %v187_v16 = vld [vmem:[%s1666_s23 + $0x200] sm:$0xff]  ;;  %v189_v17 = vld [vmem:[%s1666_s23 + $0x208] sm:$0xff] }
  0x18   : > { %172 = vst [vmem:[%s1671_s24 + $0x40] sm:$0xff] %v171_v8  ;;  %v191_v18 = vld [vmem:[%s1666_s23 + $0x240] sm:$0xff]  ;;  %v193_v19 = vld [vmem:[%s1666_s23 + $0x248] sm:$0xff] }
  0x19   : > { %174 = vst [vmem:[%s1671_s24 + $0x48] sm:$0xff] %v173_v9  ;;  %v195_v20 = vld [vmem:[%s1666_s23 + $0x280] sm:$0xff]  ;;  %v197_v21 = vld [vmem:[%s1666_s23 + $0x288] sm:$0xff] }
  0x1a   : > { %176 = vst [vmem:[%s1671_s24 + $0x50] sm:$0xff] %v175_v10  ;;  %v199_v22 = vld [vmem:[%s1666_s23 + $0x2c0] sm:$0xff]  ;;  %v201_v23 = vld [vmem:[%s1666_s23 + $0x2c8] sm:$0xff] }
  0x1b   : > { %178 = vst [vmem:[%s1671_s24 + $0x58] sm:$0xff] %v177_v11  ;;  %v203_v24 = vld [vmem:[%s1666_s23 + $0x300] sm:$0xff]  ;;  %v205_v25 = vld [vmem:[%s1666_s23 + $0x308] sm:$0xff] }
  0x1c   : > { %180 = vst [vmem:[%s1671_s24 + $0x60] sm:$0xff] %v179_v12  ;;  %v207_v26 = vld [vmem:[%s1666_s23 + $0x340] sm:$0xff]  ;;  %v209_v27 = vld [vmem:[%s1666_s23 + $0x348] sm:$0xff] }
  0x1d   : > { %182 = vst [vmem:[%s1671_s24 + $0x68] sm:$0xff] %v181_v13  ;;  %v211_v28 = vld [vmem:[%s1666_s23 + $0x380] sm:$0xff]  ;;  %v213_v29 = vld [vmem:[%s1666_s23 + $0x388] sm:$0xff] }
  0x1e   : > { %184 = vst [vmem:[%s1671_s24 + $0x70] sm:$0xff] %v183_v14  ;;  %v215_v30 = vld [vmem:[%s1666_s23 + $0x3c0] sm:$0xff]  ;;  %v217_v31 = vld [vmem:[%s1666_s23 + $0x3c8] sm:$0xff] }
  0x1f   : > { %186 = vst [vmem:[%s1671_s24 + $0x78] sm:$0xff] %v185_v15 }
  0x20   : > { %188 = vst [vmem:[%s1671_s24 + $0x80] sm:$0xff] %v187_v16 }
  0x21   : > { %190 = vst [vmem:[%s1671_s24 + $0x88] sm:$0xff] %v189_v17 }
  0x22   : > { %192 = vst [vmem:[%s1671_s24 + $0x90] sm:$0xff] %v191_v18 }
  0x23   : > { %194 = vst [vmem:[%s1671_s24 + $0x98] sm:$0xff] %v193_v19 }
  0x24   : > { %196 = vst [vmem:[%s1671_s24 + $0xa0] sm:$0xff] %v195_v20 }
  0x25   : > { %198 = vst [vmem:[%s1671_s24 + $0xa8] sm:$0xff] %v197_v21 }
  0x26   : > { %200 = vst [vmem:[%s1671_s24 + $0xb0] sm:$0xff] %v199_v22 }
  0x27   : > { %202 = vst [vmem:[%s1671_s24 + $0xb8] sm:$0xff] %v201_v23 }
  0x28   : > { %204 = vst [vmem:[%s1671_s24 + $0xc0] sm:$0xff] %v203_v24 }
  0x29   : > { %206 = vst [vmem:[%s1671_s24 + $0xc8] sm:$0xff] %v205_v25 }
  0x2a   : > { %208 = vst [vmem:[%s1671_s24 + $0xd0] sm:$0xff] %v207_v26 }
  0x2b   : > { %210 = vst [vmem:[%s1671_s24 + $0xd8] sm:$0xff] %v209_v27 }
  0x2c   : > { %212 = vst [vmem:[%s1671_s24 + $0xe0] sm:$0xff] %v211_v28 }
  0x2d   : > { %214 = vst [vmem:[%s1671_s24 + $0xe8] sm:$0xff] %v213_v29 }
  0x2e   : > { %216 = vst [vmem:[%s1671_s24 + $0xf0] sm:$0xff] %v215_v30 }
  0x2f   : > { %218 = vst [vmem:[%s1671_s24 + $0xf8] sm:$0xff] %v217_v31 }
  0x30 PF: > { %p1163_p6 = scmp.ge.s32.totalorder %s1605_s13, 1  ;;  %p235_p7 = scmp.lt.s32.totalorder %s1605_s13, 5 }
  0x32   : > { %p236_p8 = pnand %p1163_p6, %p235_p7 }
  0x33   : > { %s242_s25 = sand.u32 (!%p236_p8), 1, %s1589_s9   ;;  %s1165_s26 = sshll.u32 (!%p236_p8), %s1597_s11, 6 }
  0x34   : > { %239 = sbr.rel (%p236_p8) target bundleno = 396 (0x18c), region = 47  ;;  %s1164_s27 = sshll.u32 (!%p236_p8), %s242_s25, 8 }
  0x35   : > { %p277_p9 = scmp.lt.s32.totalorder (!%p236_p8), %s1165_s26, 255  ;;  %s1743_s4 = scalar_lea.vmem (!%p236_p8), [#allocation3], %s1164_s27 }
  0x36   : > { %p1167_p10 = scmp.ne.s32.totalorder (!%p236_p8), %s1597_s11, 0 }
  0x39   : > { %s1916_s26 = smov (!%p277_p9, %s1165_s26), 255  ;;  %297 = sbr.rel (%p1167_p10) target bundleno = 79 (0x4f), region = 55 }
  0x3a   : > { %s1166_s28 = sshll.u32 %s1916_s26, 2 }
  0x3b   : > { %s1741_s3 = scalar_lea.vmem %s1907_s1, %s1166_s28 }
  0x3e   : > { %v1607_v32 = vmov 0.0  }
  0x3f   : > { %298 = vst [vmem:[#allocation2 + $0x30] sm:$0xff] %v1607_v32 }
  0x40   : > { %299 = vst [vmem:[#allocation2] sm:$0xff] %v1607_v32 }
  0x41   : > { %300 = vst [vmem:[#allocation2 + $0x58] sm:$0xff] %v1607_v32 }
  0x42   : > { %301 = vst [vmem:[#allocation2 + $0x18] sm:$0xff] %v1607_v32 }
  0x43   : > { %302 = vst [vmem:[#allocation2 + $0x50] sm:$0xff] %v1607_v32 }
  0x44   : > { %303 = vst [vmem:[#allocation2 + $0x68] sm:$0xff] %v1607_v32 }
  0x45   : > { %304 = vst [vmem:[#allocation2 + $0x8] sm:$0xff] %v1607_v32 }
  0x46   : > { %305 = vst [vmem:[#allocation2 + $0x48] sm:$0xff] %v1607_v32 }
  0x47   : > { %306 = vst [vmem:[#allocation2 + $0x40] sm:$0xff] %v1607_v32 }
  0x48   : > { %307 = vst [vmem:[#allocation2 + $0x20] sm:$0xff] %v1607_v32 }
  0x49   : > { %308 = vst [vmem:[#allocation2 + $0x10] sm:$0xff] %v1607_v32 }
  0x4a   : > { %309 = vst [vmem:[#allocation2 + $0x38] sm:$0xff] %v1607_v32 }
  0x4b   : > { %310 = vst [vmem:[#allocation2 + $0x60] sm:$0xff] %v1607_v32 }
  0x4c   : > { %311 = vst [vmem:[#allocation2 + $0x70] sm:$0xff] %v1607_v32 }
  0x4d   : > { %312 = vst [vmem:[#allocation2 + $0x78] sm:$0xff] %v1607_v32 }
  0x4e   : > { %313 = vst [vmem:[#allocation2 + $0x28] sm:$0xff] %v1607_v32 }
  0x4f PF: > { %v1469_v33 = vld [vmem:[%s1741_s3 + $0x38] sm:$0xff]  ;;  %v1468_v37 = vld [vmem:[%s1741_s3 + $0x30] sm:$0xff]  ;;  %v1467_v41 = vld [vmem:[%s1741_s3 + $0x28] sm:$0xff]  ;;  %p1424_p11 = scmp.ne.s32.totalorder %s1597_s11, 3 }
  0x50   : > { %v1477_v34 = vld [vmem:[%s1741_s3 + $0x78] sm:$0xff]  ;;  %778 = vmatpush.bf16.msra.mxu0 %v1469_v33  ;;  %v1476_v38 = vld [vmem:[%s1741_s3 + $0x70] sm:$0xff]  ;;  %v1475_v42 = vld [vmem:[%s1741_s3 + $0x68] sm:$0xff] }
  0x51   : > { %v1485_v35 = vld [vmem:[%s1741_s3 + $0xb8] sm:$0xff]  ;;  %827 = vmatpush.bf16.msra.mxu1 %v1477_v34  ;;  %v1484_v39 = vld [vmem:[%s1741_s3 + $0xb0] sm:$0xff]  ;;  %v1483_v43 = vld [vmem:[%s1741_s3 + $0xa8] sm:$0xff] }
  0x52   : > { %v1493_v36 = vld [vmem:[%s1741_s3 + $0xf8] sm:$0xff]  ;;  %876 = vmatpush.bf16.msra.mxu2 %v1485_v35  ;;  %v1492_v40 = vld [vmem:[%s1741_s3 + $0xf0] sm:$0xff]  ;;  %v1491_v44 = vld [vmem:[%s1741_s3 + $0xe8] sm:$0xff] }
  0x53   : > { %925 = vmatpush.bf16.msra.mxu3 %v1493_v36  ;;  %v1466_v45 = vld [vmem:[%s1741_s3 + $0x20] sm:$0xff]  ;;  %v1465_v49 = vld [vmem:[%s1741_s3 + $0x18] sm:$0xff]  ;;  %v1464_v53 = vld [vmem:[%s1741_s3 + $0x10] sm:$0xff] }
  0x54   : > { %779 = vmatpush.bf16.msra.mxu0 %v1468_v37  ;;  %v1474_v46 = vld [vmem:[%s1741_s3 + $0x60] sm:$0xff]  ;;  %v1473_v50 = vld [vmem:[%s1741_s3 + $0x58] sm:$0xff]  ;;  %v1472_v54 = vld [vmem:[%s1741_s3 + $0x50] sm:$0xff] }
  0x55   : > { %828 = vmatpush.bf16.msra.mxu1 %v1476_v38  ;;  %v1482_v47 = vld [vmem:[%s1741_s3 + $0xa0] sm:$0xff]  ;;  %v1481_v51 = vld [vmem:[%s1741_s3 + $0x98] sm:$0xff]  ;;  %v1480_v55 = vld [vmem:[%s1741_s3 + $0x90] sm:$0xff] }
  0x56   : > { %877 = vmatpush.bf16.msra.mxu2 %v1484_v39  ;;  %v1490_v48 = vld [vmem:[%s1741_s3 + $0xe0] sm:$0xff]  ;;  %v1489_v52 = vld [vmem:[%s1741_s3 + $0xd8] sm:$0xff]  ;;  %v1488_v56 = vld [vmem:[%s1741_s3 + $0xd0] sm:$0xff] }
  0x57   : > { %926 = vmatpush.bf16.msra.mxu3 %v1492_v40  ;;  %v1463_v57 = vld [vmem:[%s1741_s3 + $0x8] sm:$0xff]  ;;  %v1462_v61 = vld [vmem:[%s1741_s3] sm:$0xff]  ;;  %v1432_v2 = vld [vmem:[%s1743_s4 + $0xc] sm:$0xf0] }
  0x58   : > { %780 = vmatpush.bf16.msra.mxu0 %v1467_v41  ;;  %v1471_v58 = vld [vmem:[%s1741_s3 + $0x48] sm:$0xff]  ;;  %v1470_v62 = vld [vmem:[%s1741_s3 + $0x40] sm:$0xff]  ;;  %v1172_v4 = vld [vmem:[%s1743_s4 + $0x10] sm:$0xf0] }
  0x59   : > { %829 = vmatpush.bf16.msra.mxu1 %v1475_v42  ;;  %v1479_v59 = vld [vmem:[%s1741_s3 + $0x88] sm:$0xff]  ;;  %v1478_v63 = vld [vmem:[%s1741_s3 + $0x80] sm:$0xff]  ;;  %v1433_v6 = vld [vmem:[%s1743_s4 + $0x14] sm:$0xf0] }
  0x5a   : > { %878 = vmatpush.bf16.msra.mxu2 %v1483_v43  ;;  %v1487_v60 = vld [vmem:[%s1741_s3 + $0xc8] sm:$0xff]  ;;  %v1486_v0 = vld [vmem:[%s1741_s3 + $0xc0] sm:$0xff]  ;;  %v1180_v8 = vld [vmem:[%s1743_s4 + $0x18] sm:$0xf0] }
  0x5b   : > { %927 = vmatpush.bf16.msra.mxu3 %v1491_v44  ;;  %v1170_v1 = vld [vmem:[%s1743_s4] sm:$0xf]  ;;  %v1430_v3 = vld [vmem:[%s1743_s4 + $0x4] sm:$0xf]  ;;  %v1178_v5 = vld [vmem:[%s1743_s4 + $0x8] sm:$0xf] }
  0x5c   : > { %781 = vmatpush.bf16.msra.mxu0 %v1466_v45  ;;  %v1431_v7 = vld [vmem:[%s1743_s4 + $0xc] sm:$0xf]  ;;  %v1171_v9 = vor.u32 %v1432_v2, %v1170_v1  ;;  %v1175_v10 = vor.u32 %v1430_v3, %v1172_v4  ;;  %v1179_v11 = vor.u32 %v1433_v6, %v1178_v5  ;;  %v1186_v13 = vld [vmem:[%s1743_s4 + $0x20] sm:$0xf]  ;;  %v1436_v14 = vld [vmem:[%s1743_s4 + $0x2c] sm:$0xf0] }
  0x5d   : > { %830 = vmatpush.bf16.msra.mxu1 %v1474_v46  ;;  %v1183_v12 = vor.u32 %v1431_v7, %v1180_v8  ;;  %v1434_v15 = vld [vmem:[%s1743_s4 + $0x24] sm:$0xf]  ;;  %v1188_v16 = vld [vmem:[%s1743_s4 + $0x30] sm:$0xf0]  ;;  %v1194_v17 = vld [vmem:[%s1743_s4 + $0x28] sm:$0xf]  ;;  %v1187_v21 = vor.u32 %v1436_v14, %v1186_v13 }
  0x5e   : > { %879 = vmatpush.bf16.msra.mxu2 %v1482_v47  ;;  %v1437_v18 = vld [vmem:[%s1743_s4 + $0x34] sm:$0xf0]  ;;  %v1435_v19 = vld [vmem:[%s1743_s4 + $0x2c] sm:$0xf]  ;;  %v1196_v20 = vld [vmem:[%s1743_s4 + $0x38] sm:$0xf0]  ;;  %v1191_v22 = vor.u32 %v1434_v15, %v1188_v16 }
  0x5f   : > { %928 = vmatpush.bf16.msra.mxu3 %v1490_v48  ;;  %v1195_v23 = vor.u32 %v1437_v18, %v1194_v17  ;;  %v1199_v24 = vor.u32 %v1435_v19, %v1196_v20  ;;  %v1202_v25 = vld [vmem:[%s1743_s4 + $0x40] sm:$0xf]  ;;  %v1440_v26 = vld [vmem:[%s1743_s4 + $0x4c] sm:$0xf0]  ;;  %v1438_v27 = vld [vmem:[%s1743_s4 + $0x44] sm:$0xf] }
  0x60   : > { %782 = vmatpush.bf16.msra.mxu0 %v1465_v49  ;;  %v1204_v28 = vld [vmem:[%s1743_s4 + $0x50] sm:$0xf0]  ;;  %v1210_v29 = vld [vmem:[%s1743_s4 + $0x48] sm:$0xf]  ;;  %v1441_v30 = vld [vmem:[%s1743_s4 + $0x54] sm:$0xf0]  ;;  %v1203_v33 = vor.u32 %v1440_v26, %v1202_v25 }
  0x61   : > { %831 = vmatpush.bf16.msra.mxu1 %v1473_v50  ;;  %v1439_v31 = vld [vmem:[%s1743_s4 + $0x4c] sm:$0xf]  ;;  %v1212_v32 = vld [vmem:[%s1743_s4 + $0x58] sm:$0xf0]  ;;  %v1207_v34 = vor.u32 %v1438_v27, %v1204_v28  ;;  %v1211_v35 = vor.u32 %v1441_v30, %v1210_v29  ;;  %v1218_v37 = vld [vmem:[%s1743_s4 + $0x60] sm:$0xf] }
  0x62   : > { %880 = vmatpush.bf16.msra.mxu2 %v1481_v51  ;;  %v1215_v36 = vor.u32 %v1439_v31, %v1212_v32  ;;  %v1444_v38 = vld [vmem:[%s1743_s4 + $0x6c] sm:$0xf0]  ;;  %v1442_v39 = vld [vmem:[%s1743_s4 + $0x64] sm:$0xf]  ;;  %v1220_v40 = vld [vmem:[%s1743_s4 + $0x70] sm:$0xf0] }
  0x63   : > { %929 = vmatpush.bf16.msra.mxu3 %v1489_v52  ;;  %v1226_v41 = vld [vmem:[%s1743_s4 + $0x68] sm:$0xf]  ;;  %v1445_v42 = vld [vmem:[%s1743_s4 + $0x74] sm:$0xf0]  ;;  %v1443_v43 = vld [vmem:[%s1743_s4 + $0x6c] sm:$0xf]  ;;  %v1219_v45 = vor.u32 %v1444_v38, %v1218_v37  ;;  %v1223_v46 = vor.u32 %v1442_v39, %v1220_v40 }
  0x64   : > { %783 = vmatpush.bf16.msra.mxu0 %v1464_v53  ;;  %v1228_v44 = vld [vmem:[%s1743_s4 + $0x78] sm:$0xf0]  ;;  %v1227_v47 = vor.u32 %v1445_v42, %v1226_v41  ;;  %v1234_v49 = vld [vmem:[%s1743_s4 + $0x80] sm:$0xf]  ;;  %v1448_v50 = vld [vmem:[%s1743_s4 + $0x8c] sm:$0xf0] }
  0x65   : > { %832 = vmatpush.bf16.msra.mxu1 %v1472_v54  ;;  %v1231_v48 = vor.u32 %v1443_v43, %v1228_v44  ;;  %v1446_v51 = vld [vmem:[%s1743_s4 + $0x84] sm:$0xf]  ;;  %v1236_v52 = vld [vmem:[%s1743_s4 + $0x90] sm:$0xf0]  ;;  %v1242_v53 = vld [vmem:[%s1743_s4 + $0x88] sm:$0xf] }
  0x66   : > { %881 = vmatpush.bf16.msra.mxu2 %v1480_v55  ;;  %v1449_v54 = vld [vmem:[%s1743_s4 + $0x94] sm:$0xf0]  ;;  %v1447_v55 = vld [vmem:[%s1743_s4 + $0x8c] sm:$0xf]  ;;  %v1258_v1 = vld [vmem:[%s1743_s4 + $0xa8] sm:$0xf] }
  0x67   : > { %930 = vmatpush.bf16.msra.mxu3 %v1488_v56  ;;  %v1244_v56 = vld [vmem:[%s1743_s4 + $0x98] sm:$0xf0]  ;;  %v1453_v2 = vld [vmem:[%s1743_s4 + $0xb4] sm:$0xf0]  ;;  %v1451_v3 = vld [vmem:[%s1743_s4 + $0xac] sm:$0xf] }
  0x68   : > { %784 = vmatpush.bf16.msra.mxu0 %v1463_v57  ;;  %v1235_v57 = vor.u32 %v1448_v50, %v1234_v49  ;;  %v1260_v4 = vld [vmem:[%s1743_s4 + $0xb8] sm:$0xf0]  ;;  %v1259_v7 = vor.u32 %v1453_v2, %v1258_v1  ;;  %v1274_v13 = vld [vmem:[%s1743_s4 + $0xc8] sm:$0xf]  ;;  %v1457_v14 = vld [vmem:[%s1743_s4 + $0xd4] sm:$0xf0] }
  0x69   : > { %833 = vmatpush.bf16.msra.mxu1 %v1471_v58  ;;  %v1239_v58 = vor.u32 %v1446_v51, %v1236_v52  ;;  %v1263_v8 = vor.u32 %v1451_v3, %v1260_v4  ;;  %v1455_v15 = vld [vmem:[%s1743_s4 + $0xcc] sm:$0xf]  ;;  %v1276_v16 = vld [vmem:[%s1743_s4 + $0xd8] sm:$0xf0]  ;;  %v1275_v19 = vor.u32 %v1457_v14, %v1274_v13  ;;  %v1290_v25 = vld [vmem:[%s1743_s4 + $0xe8] sm:$0xf] }
  0x6a   : > { %882 = vmatpush.bf16.msra.mxu2 %v1479_v59  ;;  %v1243_v59 = vor.u32 %v1449_v54, %v1242_v53  ;;  %v1279_v20 = vor.u32 %v1455_v15, %v1276_v16  ;;  %v1461_v26 = vld [vmem:[%s1743_s4 + $0xf4] sm:$0xf0]  ;;  %v1459_v27 = vld [vmem:[%s1743_s4 + $0xec] sm:$0xf]  ;;  %v1292_v28 = vld [vmem:[%s1743_s4 + $0xf8] sm:$0xf0] }
  0x6b   : > { %931 = vmatpush.bf16.msra.mxu3 %v1487_v60  ;;  %v1247_v60 = vor.u32 %v1447_v55, %v1244_v56  ;;  %v1291_v31 = vor.u32 %v1461_v26, %v1290_v25  ;;  %v1295_v32 = vor.u32 %v1459_v27, %v1292_v28  ;;  %v314_v41 = vld [vmem:[#allocation2 + $0x30] sm:$0xff]  ;;  %v315_v50 = vld [vmem:[#allocation2] sm:$0xff]  ;;  %v317_v4 = vld [vmem:[#allocation2 + $0x18] sm:$0xff] }
  0x6c   : > { %785 = vmatpush.bf16.msra.mxu0 %v1462_v61  ;;  %v1250_v61 = vld [vmem:[%s1743_s4 + $0xa0] sm:$0xf]  ;;  %v318_v13 = vld [vmem:[#allocation2 + $0x50] sm:$0xff] }
  0x6d   : > { %834 = vmatpush.bf16.msra.mxu1 %v1470_v62  ;;  %v1452_v62 = vld [vmem:[%s1743_s4 + $0xac] sm:$0xf0] }
  0x6e   : > { %883 = vmatpush.bf16.msra.mxu2 %v1478_v63  ;;  %v1450_v63 = vld [vmem:[%s1743_s4 + $0xa4] sm:$0xf]  ;;  %v1251_v5 = vor.u32 %v1452_v62, %v1250_v61 }
  0x6f   : > { %932 = vmatpush.bf16.msra.mxu3 %v1486_v0  ;;  %786 = vmatmul.bf16.vlgmr.msra.gmra.mxu0 %v1171_v9  ;;  %v1252_v0 = vld [vmem:[%s1743_s4 + $0xb0] sm:$0xf0]  ;;  %v1266_v9 = vld [vmem:[%s1743_s4 + $0xc0] sm:$0xf] }
  0x70   : > { %835 = vmatmul.bf16.vlgmr.msra.gmra.mxu1 %v1175_v10  ;;  %v1255_v6 = vor.u32 %v1450_v63, %v1252_v0  ;;  %v1456_v10 = vld [vmem:[%s1743_s4 + $0xcc] sm:$0xf0] }
  0x71   : > { %884 = vmatmul.bf16.vlgmr.msra.gmra.mxu2 %v1179_v11  ;;  %v1454_v11 = vld [vmem:[%s1743_s4 + $0xc4] sm:$0xf]  ;;  %v1267_v17 = vor.u32 %v1456_v10, %v1266_v9 }
  0x72   : > { %933 = vmatmul.bf16.vlgmr.msra.gmra.mxu3 %v1183_v12  ;;  %v1268_v12 = vld [vmem:[%s1743_s4 + $0xd0] sm:$0xf0] }
  0x73   : > { %v1271_v18 = vor.u32 %v1454_v11, %v1268_v12 }
  0x7f   : > { %791 = vmatmul.bf16.gmra.mxu0 %v1187_v21  ;;  %v1282_v21 = vld [vmem:[%s1743_s4 + $0xe0] sm:$0xf] }
  0x80   : > { %840 = vmatmul.bf16.gmra.mxu1 %v1191_v22  ;;  %v1460_v22 = vld [vmem:[%s1743_s4 + $0xec] sm:$0xf0] }
  0x81   : > { %889 = vmatmul.bf16.gmra.mxu2 %v1195_v23  ;;  %v1458_v23 = vld [vmem:[%s1743_s4 + $0xe4] sm:$0xf]  ;;  %v1283_v29 = vor.u32 %v1460_v22, %v1282_v21  ;;  %v319_v22 = vld [vmem:[#allocation2 + $0x68] sm:$0xff] }
  0x82   : > { %938 = vmatmul.bf16.gmra.mxu3 %v1199_v24  ;;  %v1284_v24 = vld [vmem:[%s1743_s4 + $0xf0] sm:$0xf0] }
  0x83   : > { %v1287_v30 = vor.u32 %v1458_v23, %v1284_v24 }
  0x8f   : > { %796 = vmatmul.bf16.gmra.mxu0 %v1203_v33 }
  0x90   : > { %845 = vmatmul.bf16.gmra.mxu1 %v1207_v34 }
  0x91   : > { %894 = vmatmul.bf16.gmra.mxu2 %v1211_v35 }
  0x92   : > { %943 = vmatmul.bf16.gmra.mxu3 %v1215_v36 }
  0x9f   : > { %801 = vmatmul.bf16.gmra.mxu0 %v1219_v45 }
  0xa0   : > { %850 = vmatmul.bf16.gmra.mxu1 %v1223_v46 }
  0xa1   : > { %899 = vmatmul.bf16.gmra.mxu2 %v1227_v47 }
  0xa2   : > { %948 = vmatmul.bf16.gmra.mxu3 %v1231_v48 }
  0xaf   : > { %806 = vmatmul.bf16.gmra.mxu0 %v1235_v57 }
  0xb0   : > { %855 = vmatmul.bf16.gmra.mxu1 %v1239_v58 }
  0xb1   : > { %904 = vmatmul.bf16.gmra.mxu2 %v1243_v59  ;;  %v316_v59 = vld [vmem:[#allocation2 + $0x58] sm:$0xff] }
  0xb2   : > { %953 = vmatmul.bf16.gmra.mxu3 %v1247_v60 }
  0xbf   : > { %811 = vmatmul.bf16.gmra.mxu0 %v1251_v5 }
  0xc0   : > { %860 = vmatmul.bf16.gmra.mxu1 %v1255_v6 }
  0xc1   : > { %909 = vmatmul.bf16.gmra.mxu2 %v1259_v7 }
  0xc2   : > { %958 = vmatmul.bf16.gmra.mxu3 %v1263_v8 }
  0xcf   : > { %816 = vmatmul.bf16.gmra.mxu0 %v1267_v17 }
  0xd0   : > { %865 = vmatmul.bf16.gmra.mxu1 %v1271_v18 }
  0xd1   : > { %914 = vmatmul.bf16.gmra.mxu2 %v1275_v19 }
  0xd2   : > { %963 = vmatmul.bf16.gmra.mxu3 %v1279_v20 }
  0xdf   : > { %821 = vmatmul.bf16.gmra.mxu0 %v1283_v29 }
  0xe0   : > { %870 = vmatmul.bf16.gmra.mxu1 %v1287_v30 }
  0xe1   : > { %919 = vmatmul.bf16.gmra.mxu2 %v1291_v31  ;;  %v320_v31 = vld [vmem:[#allocation2 + $0x8] sm:$0xff] }
  0xe2   : > { %968 = vmatmul.bf16.gmra.mxu3 %v1295_v32 }
  0xec   : > { %v787_v33 = vpop.f32.mrf.mxu0 }
  0xed   : > { %v836_v34 = vpop.f32.mrf.mxu1 }
  0xee   : > { %v837_v35 = vadd.f32 %v836_v34, %v787_v33 }
  0xf4   : > { %v885_v36 = vpop.f32.mrf.mxu2  ;;  %v789_v39 = vpop.f32.mrf.mxu0 }
  0xf5   : > { %v934_v37 = vpop.f32.mrf.mxu3  ;;  %v886_v38 = vadd.f32 %v885_v36, %v837_v35  ;;  %v838_v40 = vpop.f32.mrf.mxu1 }
  0xf6   : > { %v839_v44 = vadd.f32 %v838_v40, %v789_v39  ;;  %v321_v40 = vld [vmem:[#allocation2 + $0x48] sm:$0xff] }
  0xf7   : > { %v935_v42 = vadd.f32 %v934_v37, %v886_v38 }
  0xf9   : > { %v974_v43 = vadd.f32 %v935_v42, %v314_v41 }
  0xfb   : > { %990 = vst [vmem:[#allocation2 + $0x30] sm:$0xff] %v974_v43 }
  0xfc   : > { %v887_v45 = vpop.f32.mrf.mxu2  ;;  %v792_v48 = vpop.f32.mrf.mxu0 }
  0xfd   : > { %v936_v46 = vpop.f32.mrf.mxu3  ;;  %v888_v47 = vadd.f32 %v887_v45, %v839_v44  ;;  %v841_v49 = vpop.f32.mrf.mxu1 }
  0xfe   : > { %v842_v53 = vadd.f32 %v841_v49, %v792_v48  ;;  %v322_v49 = vld [vmem:[#allocation2 + $0x40] sm:$0xff] }
  0xff   : > { %v937_v51 = vadd.f32 %v936_v46, %v888_v47 }
 0x101   : > { %v975_v52 = vadd.f32 %v937_v51, %v315_v50 }
 0x103   : > { %991 = vst [vmem:[#allocation2] sm:$0xff] %v975_v52 }
 0x104   : > { %v890_v54 = vpop.f32.mrf.mxu2  ;;  %v794_v57 = vpop.f32.mrf.mxu0 }
 0x105   : > { %v939_v55 = vpop.f32.mrf.mxu3  ;;  %v891_v56 = vadd.f32 %v890_v54, %v842_v53  ;;  %v843_v58 = vpop.f32.mrf.mxu1 }
 0x106   : > { %v844_v62 = vadd.f32 %v843_v58, %v794_v57  ;;  %v323_v58 = vld [vmem:[#allocation2 + $0x20] sm:$0xff] }
 0x107   : > { %v940_v60 = vadd.f32 %v939_v55, %v891_v56 }
 0x109   : > { %v976_v61 = vadd.f32 %v940_v60, %v316_v59 }
 0x10b   : > { %992 = vst [vmem:[#allocation2 + $0x58] sm:$0xff] %v976_v61 }
 0x10c   : > { %v892_v63 = vpop.f32.mrf.mxu2  ;;  %v797_v2 = vpop.f32.mrf.mxu0 }
 0x10d   : > { %v941_v0 = vpop.f32.mrf.mxu3  ;;  %v893_v1 = vadd.f32 %v892_v63, %v844_v62  ;;  %v846_v3 = vpop.f32.mrf.mxu1 }
 0x10e   : > { %v847_v7 = vadd.f32 %v846_v3, %v797_v2  ;;  %v324_v3 = vld [vmem:[#allocation2 + $0x10] sm:$0xff] }
 0x10f   : > { %v942_v5 = vadd.f32 %v941_v0, %v893_v1 }
 0x111   : > { %v977_v6 = vadd.f32 %v942_v5, %v317_v4 }
 0x113   : > { %993 = vst [vmem:[#allocation2 + $0x18] sm:$0xff] %v977_v6 }
 0x114   : > { %v895_v8 = vpop.f32.mrf.mxu2  ;;  %v799_v11 = vpop.f32.mrf.mxu0 }
 0x115   : > { %v944_v9 = vpop.f32.mrf.mxu3  ;;  %v896_v10 = vadd.f32 %v895_v8, %v847_v7  ;;  %v848_v12 = vpop.f32.mrf.mxu1 }
 0x116   : > { %v849_v16 = vadd.f32 %v848_v12, %v799_v11  ;;  %v325_v12 = vld [vmem:[#allocation2 + $0x38] sm:$0xff] }
 0x117   : > { %v945_v14 = vadd.f32 %v944_v9, %v896_v10 }
 0x119   : > { %v978_v15 = vadd.f32 %v945_v14, %v318_v13 }
 0x11b   : > { %994 = vst [vmem:[#allocation2 + $0x50] sm:$0xff] %v978_v15 }
 0x11c   : > { %v897_v17 = vpop.f32.mrf.mxu2  ;;  %v802_v20 = vpop.f32.mrf.mxu0 }
 0x11d   : > { %v946_v18 = vpop.f32.mrf.mxu3  ;;  %v898_v19 = vadd.f32 %v897_v17, %v849_v16  ;;  %v851_v21 = vpop.f32.mrf.mxu1 }
 0x11e   : > { %v852_v25 = vadd.f32 %v851_v21, %v802_v20  ;;  %v326_v21 = vld [vmem:[#allocation2 + $0x60] sm:$0xff] }
 0x11f   : > { %v947_v23 = vadd.f32 %v946_v18, %v898_v19 }
 0x121   : > { %v979_v24 = vadd.f32 %v947_v23, %v319_v22 }
 0x123   : > { %995 = vst [vmem:[#allocation2 + $0x68] sm:$0xff] %v979_v24 }
 0x124   : > { %v900_v26 = vpop.f32.mrf.mxu2  ;;  %v804_v29 = vpop.f32.mrf.mxu0 }
 0x125   : > { %v949_v27 = vpop.f32.mrf.mxu3  ;;  %v901_v28 = vadd.f32 %v900_v26, %v852_v25  ;;  %v853_v30 = vpop.f32.mrf.mxu1 }
 0x126   : > { %v854_v34 = vadd.f32 %v853_v30, %v804_v29 }
 0x127   : > { %v950_v32 = vadd.f32 %v949_v27, %v901_v28  ;;  %v327_v28 = vld [vmem:[#allocation2 + $0x70] sm:$0xff] }
 0x129   : > { %v980_v33 = vadd.f32 %v950_v32, %v320_v31 }
 0x12b   : > { %996 = vst [vmem:[#allocation2 + $0x8] sm:$0xff] %v980_v33 }
 0x12c   : > { %v902_v35 = vpop.f32.mrf.mxu2  ;;  %v807_v38 = vpop.f32.mrf.mxu0 }
 0x12d   : > { %v951_v36 = vpop.f32.mrf.mxu3  ;;  %v903_v37 = vadd.f32 %v902_v35, %v854_v34  ;;  %v856_v39 = vpop.f32.mrf.mxu1 }
 0x12e   : > { %v857_v43 = vadd.f32 %v856_v39, %v807_v38 }
 0x12f   : > { %v952_v41 = vadd.f32 %v951_v36, %v903_v37  ;;  %v328_v37 = vld [vmem:[#allocation2 + $0x78] sm:$0xff] }
 0x131   : > { %v981_v42 = vadd.f32 %v952_v41, %v321_v40 }
 0x133   : > { %997 = vst [vmem:[#allocation2 + $0x48] sm:$0xff] %v981_v42 }
 0x134   : > { %v905_v44 = vpop.f32.mrf.mxu2  ;;  %v809_v47 = vpop.f32.mrf.mxu0 }
 0x135   : > { %v954_v45 = vpop.f32.mrf.mxu3  ;;  %v906_v46 = vadd.f32 %v905_v44, %v857_v43  ;;  %v858_v48 = vpop.f32.mrf.mxu1 }
 0x136   : > { %v859_v52 = vadd.f32 %v858_v48, %v809_v47 }
 0x137   : > { %v955_v50 = vadd.f32 %v954_v45, %v906_v46  ;;  %v329_v45 = vld [vmem:[#allocation2 + $0x28] sm:$0xff] }
 0x139   : > { %v982_v51 = vadd.f32 %v955_v50, %v322_v49 }
 0x13b   : > { %998 = vst [vmem:[#allocation2 + $0x40] sm:$0xff] %v982_v51 }
 0x13c   : > { %v907_v53 = vpop.f32.mrf.mxu2  ;;  %v812_v56 = vpop.f32.mrf.mxu0 }
 0x13d   : > { %v956_v54 = vpop.f32.mrf.mxu3  ;;  %v908_v55 = vadd.f32 %v907_v53, %v859_v52  ;;  %v861_v57 = vpop.f32.mrf.mxu1 }
 0x13e   : > { %v862_v61 = vadd.f32 %v861_v57, %v812_v56 }
 0x13f   : > { %v957_v59 = vadd.f32 %v956_v54, %v908_v55 }
 0x141   : > { %v983_v60 = vadd.f32 %v957_v59, %v323_v58 }
 0x143   : > { %999 = vst [vmem:[#allocation2 + $0x20] sm:$0xff] %v983_v60 }
 0x144   : > { %v910_v62 = vpop.f32.mrf.mxu2  ;;  %v814_v1 = vpop.f32.mrf.mxu0 }
 0x145   : > { %v959_v63 = vpop.f32.mrf.mxu3  ;;  %v911_v0 = vadd.f32 %v910_v62, %v862_v61  ;;  %v863_v2 = vpop.f32.mrf.mxu1 }
 0x146   : > { %v864_v6 = vadd.f32 %v863_v2, %v814_v1 }
 0x147   : > { %v960_v4 = vadd.f32 %v959_v63, %v911_v0 }
 0x149   : > { %v984_v5 = vadd.f32 %v960_v4, %v324_v3 }
 0x14b   : > { %1000 = vst [vmem:[#allocation2 + $0x10] sm:$0xff] %v984_v5 }
 0x14c   : > { %v912_v7 = vpop.f32.mrf.mxu2  ;;  %v817_v10 = vpop.f32.mrf.mxu0 }
 0x14d   : > { %v961_v8 = vpop.f32.mrf.mxu3  ;;  %v913_v9 = vadd.f32 %v912_v7, %v864_v6  ;;  %v866_v11 = vpop.f32.mrf.mxu1 }
 0x14e   : > { %v867_v15 = vadd.f32 %v866_v11, %v817_v10 }
 0x14f   : > { %v962_v13 = vadd.f32 %v961_v8, %v913_v9 }
 0x151   : > { %v985_v14 = vadd.f32 %v962_v13, %v325_v12 }
 0x153   : > { %1001 = vst [vmem:[#allocation2 + $0x38] sm:$0xff] %v985_v14 }
 0x154   : > { %v915_v16 = vpop.f32.mrf.mxu2  ;;  %v819_v19 = vpop.f32.mrf.mxu0 }
 0x155   : > { %v964_v17 = vpop.f32.mrf.mxu3  ;;  %v916_v18 = vadd.f32 %v915_v16, %v867_v15  ;;  %v868_v20 = vpop.f32.mrf.mxu1 }
 0x156   : > { %v869_v24 = vadd.f32 %v868_v20, %v819_v19 }
 0x157   : > { %v965_v22 = vadd.f32 %v964_v17, %v916_v18 }
 0x159   : > { %v986_v23 = vadd.f32 %v965_v22, %v326_v21 }
 0x15b   : > { %1002 = vst [vmem:[#allocation2 + $0x60] sm:$0xff] %v986_v23 }
 0x15c   : > { %v917_v25 = vpop.f32.mrf.mxu2  ;;  %v822_v29 = vpop.f32.mrf.mxu0 }
 0x15d   : > { %v966_v26 = vpop.f32.mrf.mxu3  ;;  %v918_v27 = vadd.f32 %v917_v25, %v869_v24  ;;  %v871_v30 = vpop.f32.mrf.mxu1 }
 0x15e   : > { %v872_v33 = vadd.f32 %v871_v30, %v822_v29 }
 0x15f   : > { %v967_v31 = vadd.f32 %v966_v26, %v918_v27 }
 0x161   : > { %v987_v32 = vadd.f32 %v967_v31, %v327_v28 }
 0x163   : > { %1003 = vst [vmem:[#allocation2 + $0x70] sm:$0xff] %v987_v32 }
 0x164   : > { %v920_v34 = vpop.f32.mrf.mxu2  ;;  %v824_v39 = vpop.f32.mrf.mxu0 }
 0x165   : > { %v969_v35 = vpop.f32.mrf.mxu3  ;;  %v921_v36 = vadd.f32 %v920_v34, %v872_v33  ;;  %v873_v40 = vpop.f32.mrf.mxu1 }
 0x166   : > { %v874_v42 = vadd.f32 %v873_v40, %v824_v39 }
 0x167   : > { %v970_v38 = vadd.f32 %v969_v35, %v921_v36 }
 0x169   : > { %v988_v41 = vadd.f32 %v970_v38, %v328_v37 }
 0x16b   : > { %1004 = vst [vmem:[#allocation2 + $0x78] sm:$0xff] %v988_v41 }
 0x16c   : > { %v922_v43 = vpop.f32.mrf.mxu2 }
 0x16d   : > { %v923_v44 = vadd.f32 %v922_v43, %v874_v42  ;;  %v971_v46 = vpop.f32.mrf.mxu3 }
 0x16f   : > { %v972_v47 = vadd.f32 %v971_v46, %v923_v44  ;;  %1009 = sbr.rel (%p1424_p11) target bundleno = 396 (0x18c), region = 59 }
 0x171   : > { %v989_v48 = vadd.f32 %v972_v47, %v329_v45 }
 0x173   : > { %1005 = vst [vmem:[#allocation2 + $0x28] sm:$0xff] %v989_v48 }
 0x174   : > { %v1010_v49 = vld [vmem:[#allocation2 + $0x30] sm:$0xff]  ;;  %v1011_v50 = vld [vmem:[#allocation2] sm:$0xff]  ;;  %v1012_v51 = vld [vmem:[#allocation2 + $0x58] sm:$0xff] }
 0x175   : > { %1535 = vtanh.f32 %v1010_v49  ;;  %v1013_v52 = vld [vmem:[#allocation2 + $0x18] sm:$0xff]  ;;  %v1014_v53 = vld [vmem:[#allocation2 + $0x50] sm:$0xff]  ;;  %v1015_v54 = vld [vmem:[#allocation2 + $0x68] sm:$0xff] }
 0x176   : > { %1537 = vtanh.f32 %v1011_v50  ;;  %v1016_v55 = vld [vmem:[#allocation2 + $0x8] sm:$0xff]  ;;  %v1018_v57 = vld [vmem:[#allocation2 + $0x40] sm:$0xff]  ;;  %v1020_v61 = vld [vmem:[#allocation2 + $0x10] sm:$0xff] }
 0x177   : > { %1539 = vtanh.f32 %v1012_v51  ;;  %v1017_v56 = vld [vmem:[#allocation2 + $0x48] sm:$0xff]  ;;  %v1019_v59 = vld [vmem:[#allocation2 + $0x20] sm:$0xff]  ;;  %v1021_v63 = vld [vmem:[#allocation2 + $0x38] sm:$0xff] }
 0x178   : > { %1541 = vtanh.f32 %v1013_v52  ;;  %v1022_v1 = vld [vmem:[#allocation2 + $0x60] sm:$0xff]  ;;  %v1023_v3 = vld [vmem:[#allocation2 + $0x70] sm:$0xff]  ;;  %v1024_v5 = vld [vmem:[#allocation2 + $0x78] sm:$0xff] }
 0x179   : > { %1543 = vtanh.f32 %v1014_v53 }
 0x17a   : > { %1545 = vtanh.f32 %v1015_v54  ;;  %v1025_v7 = vld [vmem:[#allocation2 + $0x28] sm:$0xff] }
 0x17b   : > { %v1536_v58 = vpop.eup %1535  ;;  %1547 = vtanh.f32 %v1016_v55 }
 0x17c   : > { %v1538_v60 = vpop.eup %1537  ;;  %1042 = vst [vmem:[%s1908_s2] sm:$0xff] %v1536_v58  ;;  %1549 = vtanh.f32 %v1017_v56 }
 0x17d   : > { %v1540_v62 = vpop.eup %1539  ;;  %1043 = vst [vmem:[%s1908_s2 + $0x8] sm:$0xff] %v1538_v60  ;;  %1551 = vtanh.f32 %v1018_v57 }
 0x17e   : > { %v1542_v0 = vpop.eup %1541  ;;  %1044 = vst [vmem:[%s1908_s2 + $0x10] sm:$0xff] %v1540_v62  ;;  %1553 = vtanh.f32 %v1019_v59 }
 0x17f   : > { %v1544_v2 = vpop.eup %1543  ;;  %1045 = vst [vmem:[%s1908_s2 + $0x18] sm:$0xff] %v1542_v0  ;;  %1555 = vtanh.f32 %v1020_v61 }
 0x180   : > { %v1546_v4 = vpop.eup %1545  ;;  %1046 = vst [vmem:[%s1908_s2 + $0x20] sm:$0xff] %v1544_v2  ;;  %1557 = vtanh.f32 %v1021_v63 }
 0x181   : > { %v1548_v6 = vpop.eup %1547  ;;  %1047 = vst [vmem:[%s1908_s2 + $0x28] sm:$0xff] %v1546_v4  ;;  %1559 = vtanh.f32 %v1022_v1 }
 0x182   : > { %v1550_v8 = vpop.eup %1549  ;;  %1048 = vst [vmem:[%s1908_s2 + $0x30] sm:$0xff] %v1548_v6  ;;  %1561 = vtanh.f32 %v1023_v3 }
 0x183   : > { %v1552_v9 = vpop.eup %1551  ;;  %1049 = vst [vmem:[%s1908_s2 + $0x38] sm:$0xff] %v1550_v8  ;;  %1563 = vtanh.f32 %v1024_v5 }
 0x184   : > { %v1554_v10 = vpop.eup %1553  ;;  %1050 = vst [vmem:[%s1908_s2 + $0x40] sm:$0xff] %v1552_v9  ;;  %1565 = vtanh.f32 %v1025_v7 }
 0x185   : > { %v1556_v11 = vpop.eup %1555  ;;  %1051 = vst [vmem:[%s1908_s2 + $0x48] sm:$0xff] %v1554_v10 }
 0x186   : > { %v1558_v12 = vpop.eup %1557  ;;  %1052 = vst [vmem:[%s1908_s2 + $0x50] sm:$0xff] %v1556_v11 }
 0x187   : > { %v1560_v13 = vpop.eup %1559  ;;  %1053 = vst [vmem:[%s1908_s2 + $0x58] sm:$0xff] %v1558_v12 }
 0x188   : > { %v1562_v14 = vpop.eup %1561  ;;  %1054 = vst [vmem:[%s1908_s2 + $0x60] sm:$0xff] %v1560_v13 }
 0x189   : > { %v1564_v15 = vpop.eup %1563  ;;  %1055 = vst [vmem:[%s1908_s2 + $0x68] sm:$0xff] %v1562_v14 }
 0x18a   : > { %v1566_v16 = vpop.eup %1565  ;;  %1056 = vst [vmem:[%s1908_s2 + $0x70] sm:$0xff] %v1564_v15 }
 0x18b   : > { %1057 = vst [vmem:[%s1908_s2 + $0x78] sm:$0xff] %v1566_v16 }
 0x18c PF: > { %s12_s13 = sadd.s32 1, %s1605_s13   ;;  %s1909_s9 = smov %s1593_s10 }
 0x18d   : > { %p9_p12 = scmp.ge.s32.totalorder %s12_s13, 6   ;;  %s1910_s10 = smov %s1658_s17 }
 0x18e   : > { %s1911_s11 = smov %s1601_s12  ;;  %s1912_s12 = smov %s1914_s14 }
 0x18f   :  { %11 = sbr.rel (!%p9_p12) target bundleno = 3 (0x3), region = 97 }

</bundles_post_ra>
